<compile_context>
chip_gen: v7x
topology: tpu7x:2x2x1
jax: 0.10.0
libtpu: 0.0.40
codegen_flags: <defaults>
</compile_context>

<pallas_src>
import functools

import jax
import jax.numpy as jnp
from jax.experimental import pallas as pl
from jax.experimental.pallas import tpu as pltpu


def _round_up(a, b):
    return (a + b - 1) // b * b


def _sublane_tile(dtype):
    # Rows per vreg sublane tile: 8 for f32, 16 for bf16, 32 for 1-byte types.
    return 8 * (4 // jnp.dtype(dtype).itemsize)


def _feblock1_kernel(x_ref, w1_ref, s1_ref, c1_ref, w2_ref, s2_ref, c2_ref,
                     out_ref, pad_ref, *, tile, slab):
    # x_ref : (Nb, H, W*Cin)   f32  un-padded input block (lane-dense)
    # w*_ref: (3, W*Cin, W*C)  compute-dtype block-banded conv weights (per dy)
    # s*/c* : (1, W*C)         f32  folded BN scale / bias, pre-tiled over W
    # out   : (Nb, H, W*Cout)  f32  lane-dense output
    # pad   : (tile + Nb*slab, W*Cin) compute-dtype padded slab stack
    Nb, H, WCin = x_ref.shape
    WCout = out_ref.shape[2]
    cdt = pad_ref.dtype
    m_total = Nb * slab - tile            # matmul M (multiple of `tile`)

    # ---- zero the vertical-padding rows (top pad + one gap per slab) -------
    # Re-done every grid step so "parallel" (megacore) sharding never relies
    # on program_id == 0 having run on this core.  All stores are tile-aligned
    # when H is a multiple of `tile`.
    ztop = jnp.zeros((tile, WCin), cdt)
    zgap = jnp.zeros((slab - H, WCin), cdt)
    pad_ref[0:tile, :] = ztop
    for b in range(Nb):
        lo = tile + b * slab + H
        pad_ref[lo:lo + (slab - H), :] = zgap

    # ---- copy the batch block into the slab stack (aligned stores) ---------
    for b in range(Nb):
        base = tile + b * slab
        pad_ref[base:base + H, :] = x_ref[b].astype(cdt)

    # ---- conv1: 3 banded matmuls over the whole slab stack (fused batch) ---
    # acc row m has its centre at scratch row m + tile.
    acc1 = jnp.dot(pad_ref[tile - 1:tile - 1 + m_total, :], w1_ref[0],
                   preferred_element_type=jnp.float32)
    for dy in (1, 2):
        acc1 = acc1 + jnp.dot(
            pad_ref[tile - 1 + dy:tile - 1 + dy + m_total, :], w1_ref[dy],
            preferred_element_type=jnp.float32)
    # BN1 (folded affine) + ReLU once over the whole stack: the scale/bias
    # loads + broadcasts are emitted a single time (f32 epilogue).
    h1 = jnp.maximum(acc1 * s1_ref[...] + c1_ref[...], 0.0)

    # ---- write h1 back into the slab stack (border/gap rows stay zero) -----
    for b in range(Nb):
        base = tile + b * slab
        pad_ref[base:base + H, :] = h1[b * slab:b * slab + H, :].astype(cdt)

    # ---- conv2: same 3 banded matmuls -------------------------------------
    acc2 = jnp.dot(pad_ref[tile - 1:tile - 1 + m_total, :], w2_ref[0],
                   preferred_element_type=jnp.float32)
    for dy in (1, 2):
        acc2 = acc2 + jnp.dot(
            pad_ref[tile - 1 + dy:tile - 1 + dy + m_total, :], w2_ref[dy],
            preferred_element_type=jnp.float32)
    h2 = acc2 * s2_ref[...] + c2_ref[...]

    # ---- residual add + final ReLU, per-batch lane-dense aligned stores ----
    for b in range(Nb):
        out_ref[b] = jnp.maximum(
            x_ref[b] + h2[b * slab:b * slab + H, :], 0.0).astype(out_ref.dtype)


def _band_conv_weights(w_hwio, width):
    """(3, 3, Cin, Cout) HWIO weights -> (3, width*Cin, width*Cout) band matrix.

    band[dy, xw*Cin + c, x*Cout + o] = w[dy, xw - x + 1, c, o] for |xw - x| <= 1,
    else 0.  Clipping the band at the matrix edges implements SAME horizontal
    zero padding.  Pure jnp (jittable, no host round-trip).
    """
    _, _, cin, cout = w_hwio.shape
    x = jnp.arange(width)
    dx = jnp.arange(3)
    # sel[dx, xw, x] = 1 iff xw == x + dx - 1
    sel = (x[None, :, None] == (x[None, None, :] + dx[:, None, None] - 1))
    sel = sel.astype(w_hwio.dtype)
    band = jnp.einsum('dwx,ydco->ywcxo', sel, w_hwio)   # (3, W, Cin, W, Cout)
    return band.reshape(3, width * cin, width * cout)


def prepare_feblock1_params(w1, s1, b1, w2, s2, b2, *, width,
                            compute_dtype=jnp.bfloat16):
    """Build kernel operands once (band matrices + W-tiled BN scale/bias).

    w1: (3,3,Cin,Cin), w2: (3,3,Cin,Cout) HWIO; s*/b*: (1, C) folded BN params.
    Call this once per weight set (it is pure jnp, so it can also live under
    jit) and reuse the result across feblock1_pallas calls.
    """
    cin = w1.shape[2]
    cout = w2.shape[3]
    band1 = _band_conv_weights(w1, width).astype(compute_dtype)
    band2 = _band_conv_weights(w2, width).astype(compute_dtype)
    # BN scale/bias pre-tiled over W so the epilogue is a lane-dense f32 FMA.
    s1t = jnp.tile(s1.reshape(-1), width).reshape(1, width * cin).astype(jnp.float32)
    b1t = jnp.tile(b1.reshape(-1), width).reshape(1, width * cin).astype(jnp.float32)
    s2t = jnp.tile(s2.reshape(-1), width).reshape(1, width * cout).astype(jnp.float32)
    b2t = jnp.tile(b2.reshape(-1), width).reshape(1, width * cout).astype(jnp.float32)
    return (band1, s1t, b1t, band2, s2t, b2t)


def _const_spec(block_shape, index_map):
    # Grid-invariant operand: single-buffer it (constant index_map, so there is
    # nothing to pipeline; this halves its VMEM footprint).  Fall back to the
    # default double-buffered spec on JAX versions without pipeline_mode.
    try:
        return pl.BlockSpec(block_shape, index_map,
                            pipeline_mode=pl.Buffered(1))
    except TypeError:
        return pl.BlockSpec(block_shape, index_map)


def feblock1_pallas(x_nhwc, params, *, batch_block=None):
    """x_nhwc: (N, H, W, Cin) f32; params: output of prepare_feblock1_params."""
    band1, s1t, b1t, band2, s2t, b2t = params
    N, H, W, Cin = x_nhwc.shape
    WCin = band1.shape[1]
    WCout = band2.shape[2]
    Cout = WCout // W
    assert WCin == W * Cin, "params were built for a different W/Cin"
    # Residual add in FEBlock1 requires matching channel counts.
    assert Cin == Cout, "FEBlock1 residual requires inchannels == outchannels"
    compute_dtype = band1.dtype

    if batch_block is None:
        # Keep >= 2 grid steps when N >= 2 so the "parallel" axis can shard
        # across v7x's two TensorCores (and overlap in/out DMA across steps).
        cap = max(1, min(8, N // 2))
        batch_block = max(d for d in range(1, cap + 1) if N % d == 0)
    assert N % batch_block == 0

    # Padded slab-stack geometry (all sublane-tile aligned).
    tile = _sublane_tile(compute_dtype)           # 8 rows f32 / 16 rows bf16
    slab = _round_up(H, tile) + tile              # per-batch slab stride
    pad_rows = tile + batch_block * slab

    x2 = x_nhwc.reshape(N, H, WCin).astype(jnp.float32)

    # VMEM accounting (weights single-buffered, activations double-buffered).
    c_item = jnp.dtype(compute_dtype).itemsize
    weight_bytes = (band1.size + band2.size) * c_item
    act_bytes = 2 * batch_block * H * (WCin + WCout) * 4
    scratch_bytes = pad_rows * WCin * c_item
    scale_bytes = 2 * (WCin + WCout) * 4
    accounted = weight_bytes + act_bytes + scratch_bytes + scale_bytes
    vmem_limit = int(min(64 * 2**20,
                         max(16 * 2**20, accounted * 3 // 2 + (2 << 20))))

    kernel = pl.pallas_call(
        functools.partial(_feblock1_kernel, tile=tile, slab=slab),
        out_shape=jax.ShapeDtypeStruct((N, H, WCout), jnp.float32),
        grid_spec=pltpu.PrefetchScalarGridSpec(
            num_scalar_prefetch=0,
            grid=(N // batch_block,),
            in_specs=[
                pl.BlockSpec((batch_block, H, WCin), lambda n: (n, 0, 0)),
                _const_spec((3, WCin, WCin), lambda n: (0, 0, 0)),
                _const_spec((1, WCin), lambda n: (0, 0)),
                _const_spec((1, WCin), lambda n: (0, 0)),
                _const_spec((3, WCin, WCout), lambda n: (0, 0, 0)),
                _const_spec((1, WCout), lambda n: (0, 0)),
                _const_spec((1, WCout), lambda n: (0, 0)),
            ],
            out_specs=pl.BlockSpec((batch_block, H, WCout),
                                   lambda n: (n, 0, 0)),
            scratch_shapes=[pltpu.VMEM((pad_rows, WCin), compute_dtype)],
        ),
        compiler_params=pltpu.CompilerParams(
            dimension_semantics=("parallel",),
            vmem_limit_bytes=vmem_limit),
    )
    out = kernel(x2, band1, s1t, b1t, band2, s2t, b2t)
    return out.reshape(N, H, W, Cout)


def fold_bn(conv_bias, gamma, beta, mean, var, eps=1e-5):
    """Fold eval-mode BatchNorm (and conv bias) into per-channel scale/bias."""
    scale = gamma / jnp.sqrt(var + eps)
    bias = beta + (conv_bias - mean) * scale
    return scale.reshape(1, -1), bias.reshape(1, -1)


def reference_feblock1(x_nhwc, w1, s1, b1, w2, s2, b2):
    dn = jax.lax.conv_dimension_numbers(x_nhwc.shape, w1.shape,
                                        ("NHWC", "HWIO", "NHWC"))
    y = jax.lax.conv_general_dilated(x_nhwc, w1, (1, 1), "SAME",
                                     dimension_numbers=dn)
    y = jnp.maximum(y * s1 + b1, 0.0)
    y = jax.lax.conv_general_dilated(y, w2, (1, 1), "SAME",
                                     dimension_numbers=dn)
    y = y * s2 + b2
    return jnp.maximum(x_nhwc + y, 0.0)


if __name__ == "__main__":
    # Module-consistent shapes: batch=2, channels=32, spatial=16x16 (NHWC).
    N, H, W, C = 2, 16, 16, 32
    inchannels, outchannels = C, C

    key = jax.random.PRNGKey(0)
    keys = jax.random.split(key, 12)

    x = jax.random.normal(keys[0], (N, H, W, inchannels), jnp.float32)

    # Conv weights: init in PyTorch OIHW order, then convert to HWIO.
    w1_oihw = 0.1 * jax.random.normal(keys[1], (inchannels, inchannels, 3, 3),
                                      jnp.float32)
    w2_oihw = 0.1 * jax.random.normal(keys[2], (outchannels, inchannels, 3, 3),
                                      jnp.float32)
    cb1 = 0.1 * jax.random.normal(keys[3], (inchannels,), jnp.float32)
    cb2 = 0.1 * jax.random.normal(keys[4], (outchannels,), jnp.float32)
    w1 = jnp.transpose(w1_oihw, (2, 3, 1, 0))   # HWIO
    w2 = jnp.transpose(w2_oihw, (2, 3, 1, 0))   # HWIO

    # BatchNorm params (eval mode: running stats).
    g1 = 1.0 + 0.1 * jax.random.normal(keys[5], (inchannels,), jnp.float32)
    be1 = 0.1 * jax.random.normal(keys[6], (inchannels,), jnp.float32)
    rm1 = 0.1 * jax.random.normal(keys[7], (inchannels,), jnp.float32)
    rv1 = 1.0 + 0.1 * jax.random.uniform(keys[8], (inchannels,), jnp.float32)
    g2 = 1.0 + 0.1 * jax.random.normal(keys[9], (outchannels,), jnp.float32)
    be2 = 0.1 * jax.random.normal(keys[10], (outchannels,), jnp.float32)
    rm2 = 0.1 * jax.random.normal(keys[11], (outchannels,), jnp.float32)
    rv2 = 1.0 + 0.1 * jax.random.uniform(keys[0], (outchannels,), jnp.float32)

    s1, b1 = fold_bn(cb1, g1, be1, rm1, rv1)
    s2, b2 = fold_bn(cb2, g2, be2, rm2, rv2)

    ref = reference_feblock1(x, w1, s1, b1, w2, s2, b2)

    apply_fn = jax.jit(feblock1_pallas, static_argnames=("batch_block",))

    # Default path: bf16 matmul inputs (MXU-native on v5e/v6e/v7x),
    # f32 accumulation + f32 BN/ReLU/residual epilogue.  Weights are prepared
    # once and reused (no per-call band rebuild).
    # Note: h1 is requantized to bf16 before conv2 (dominant precision loss).
    params_bf16 = prepare_feblock1_params(w1, s1, b1, w2, s2, b2, width=W)
    out_bf16 = jax.block_until_ready(apply_fn(x, params_bf16))
    assert out_bf16.shape == (N, H, W, outchannels)
    assert jnp.allclose(out_bf16, ref, atol=5e-2, rtol=5e-2)

    # f32 matmul path (tight tolerance; safe on all generations).
    params_f32 = prepare_feblock1_params(w1, s1, b1, w2, s2, b2, width=W,
                                         compute_dtype=jnp.float32)
    out_f32 = jax.block_until_ready(apply_fn(x, params_f32))
    assert out_f32.shape == (N, H, W, outchannels)
    assert jnp.allclose(out_f32, ref, atol=2e-3, rtol=2e-3)

    print("KERNEL_OK")
</pallas_src>

<mosaic_0001>
module attributes {stable_mosaic.version = 11 : i64} {
  func.func @_feblock1_kernel(%arg0: i32, %arg1: memref<1x16x512xf32, #tpu.memory_space<vmem>>, %arg2: memref<3x512x512xbf16, #tpu.memory_space<vmem>>, %arg3: memref<1x512xf32, #tpu.memory_space<vmem>>, %arg4: memref<1x512xf32, #tpu.memory_space<vmem>>, %arg5: memref<3x512x512xbf16, #tpu.memory_space<vmem>>, %arg6: memref<1x512xf32, #tpu.memory_space<vmem>>, %arg7: memref<1x512xf32, #tpu.memory_space<vmem>>, %arg8: memref<1x16x512xf32, #tpu.memory_space<vmem>>, %arg9: memref<48x512xbf16, #tpu.memory_space<vmem>>) attributes {dimension_semantics = [#tpu.dimension_semantics<parallel>], iteration_bounds = array<i64: 2>, scalar_prefetch = 0 : i64, scratch_operands = 1 : i64, tpu.core_type = #tpu.core_type<tc>, window_params = [{transform_indices = @transform_0, window_bounds = array<i64: 1, 16, 512>}, {pipeline_mode = #tpu.pipeline_mode<synchronous>, transform_indices = @transform_1, window_bounds = array<i64: 3, 512, 512>}, {pipeline_mode = #tpu.pipeline_mode<synchronous>, transform_indices = @transform_2, window_bounds = array<i64: 1, 512>}, {pipeline_mode = #tpu.pipeline_mode<synchronous>, transform_indices = @transform_3, window_bounds = array<i64: 1, 512>}, {pipeline_mode = #tpu.pipeline_mode<synchronous>, transform_indices = @transform_4, window_bounds = array<i64: 3, 512, 512>}, {pipeline_mode = #tpu.pipeline_mode<synchronous>, transform_indices = @transform_5, window_bounds = array<i64: 1, 512>}, {pipeline_mode = #tpu.pipeline_mode<synchronous>, transform_indices = @transform_6, window_bounds = array<i64: 1, 512>}, {transform_indices = @transform_7, window_bounds = array<i64: 1, 16, 512>}]} {
    %cst = arith.constant 0.000000e+00 : bf16
    %0 = vector.broadcast %cst : bf16 to vector<16x512xbf16>
    %cst_0 = arith.constant 0.000000e+00 : bf16
    %1 = vector.broadcast %cst_0 : bf16 to vector<16x512xbf16>
    %c0 = arith.constant 0 : index
    %c0_1 = arith.constant 0 : index
    %2 = vector.load %arg9[%c0, %c0_1] : memref<48x512xbf16, #tpu.memory_space<vmem>>, vector<16x512xbf16>
    tpu.vector_store %arg9[%c0, %c0_1], %0 {strides = array<i32>} : memref<48x512xbf16, #tpu.memory_space<vmem>>, vector<16x512xbf16>,
    %c32 = arith.constant 32 : index
    %c0_2 = arith.constant 0 : index
    %3 = vector.load %arg9[%c32, %c0_2] : memref<48x512xbf16, #tpu.memory_space<vmem>>, vector<16x512xbf16>
    tpu.vector_store %arg9[%c32, %c0_2], %1 {strides = array<i32>} : memref<48x512xbf16, #tpu.memory_space<vmem>>, vector<16x512xbf16>,
    %c0_3 = arith.constant 0 : index
    %c0_4 = arith.constant 0 : index
    %c0_5 = arith.constant 0 : index
    %4 = vector.load %arg1[%c0_3, %c0_4, %c0_5] : memref<1x16x512xf32, #tpu.memory_space<vmem>>, vector<1x16x512xf32>
    %5 = vector.shape_cast %4 : vector<1x16x512xf32> to vector<16x512xf32>
    %6 = arith.truncf %5 : vector<16x512xf32> to vector<16x512xbf16>
    %c16 = arith.constant 16 : index
    %c0_6 = arith.constant 0 : index
    %7 = vector.load %arg9[%c16, %c0_6] : memref<48x512xbf16, #tpu.memory_space<vmem>>, vector<16x512xbf16>
    tpu.vector_store %arg9[%c16, %c0_6], %6 {strides = array<i32>} : memref<48x512xbf16, #tpu.memory_space<vmem>>, vector<16x512xbf16>,
    %c15 = arith.constant 15 : index
    %c0_7 = arith.constant 0 : index
    %8 = vector.load %arg9[%c15, %c0_7] : memref<48x512xbf16, #tpu.memory_space<vmem>>, vector<16x512xbf16>
    %c0_8 = arith.constant 0 : index
    %c0_9 = arith.constant 0 : index
    %c0_10 = arith.constant 0 : index
    %9 = vector.load %arg2[%c0_8, %c0_9, %c0_10] : memref<3x512x512xbf16, #tpu.memory_space<vmem>>, vector<1x512x512xbf16>
    %10 = vector.shape_cast %9 : vector<1x512x512xbf16> to vector<512x512xbf16>
    %cst_11 = arith.constant dense<0.000000e+00> : vector<16x512xf32>
    %11 = tpu.matmul %8, %10, %cst_11 {dimension_numbers = #tpu.dot_dimension_numbers<[1], [0], [0], [1], [0, 0, 1, 1], [], []>} : vector<16x512xbf16>, vector<512x512xbf16>, vector<16x512xf32> -> vector<16x512xf32>
    %c16_12 = arith.constant 16 : index
    %c0_13 = arith.constant 0 : index
    %12 = vector.load %arg9[%c16_12, %c0_13] : memref<48x512xbf16, #tpu.memory_space<vmem>>, vector<16x512xbf16>
    %c1 = arith.constant 1 : index
    %c0_14 = arith.constant 0 : index
    %c0_15 = arith.constant 0 : index
    %13 = vector.load %arg2[%c1, %c0_14, %c0_15] : memref<3x512x512xbf16, #tpu.memory_space<vmem>>, vector<1x512x512xbf16>
    %14 = vector.shape_cast %13 : vector<1x512x512xbf16> to vector<512x512xbf16>
    %cst_16 = arith.constant dense<0.000000e+00> : vector<16x512xf32>
    %15 = tpu.matmul %12, %14, %cst_16 {dimension_numbers = #tpu.dot_dimension_numbers<[1], [0], [0], [1], [0, 0, 1, 1], [], []>} : vector<16x512xbf16>, vector<512x512xbf16>, vector<16x512xf32> -> vector<16x512xf32>
    %16 = arith.addf %11, %15 : vector<16x512xf32>
    %c17 = arith.constant 17 : index
    %c0_17 = arith.constant 0 : index
    %17 = vector.load %arg9[%c17, %c0_17] : memref<48x512xbf16, #tpu.memory_space<vmem>>, vector<16x512xbf16>
    %c2 = arith.constant 2 : index
    %c0_18 = arith.constant 0 : index
    %c0_19 = arith.constant 0 : index
    %18 = vector.load %arg2[%c2, %c0_18, %c0_19] : memref<3x512x512xbf16, #tpu.memory_space<vmem>>, vector<1x512x512xbf16>
    %19 = vector.shape_cast %18 : vector<1x512x512xbf16> to vector<512x512xbf16>
    %cst_20 = arith.constant dense<0.000000e+00> : vector<16x512xf32>
    %20 = tpu.matmul %17, %19, %cst_20 {dimension_numbers = #tpu.dot_dimension_numbers<[1], [0], [0], [1], [0, 0, 1, 1], [], []>} : vector<16x512xbf16>, vector<512x512xbf16>, vector<16x512xf32> -> vector<16x512xf32>
    %21 = arith.addf %16, %20 : vector<16x512xf32>
    %c0_21 = arith.constant 0 : index
    %c0_22 = arith.constant 0 : index
    %22 = vector.load %arg3[%c0_21, %c0_22] : memref<1x512xf32, #tpu.memory_space<vmem>>, vector<1x512xf32>
    %23 = vector.broadcast %22 : vector<1x512xf32> to vector<16x512xf32>
    %24 = arith.mulf %21, %23 : vector<16x512xf32>
    %c0_23 = arith.constant 0 : index
    %c0_24 = arith.constant 0 : index
    %25 = vector.load %arg4[%c0_23, %c0_24] : memref<1x512xf32, #tpu.memory_space<vmem>>, vector<1x512xf32>
    %26 = vector.broadcast %25 : vector<1x512xf32> to vector<16x512xf32>
    %27 = arith.addf %24, %26 : vector<16x512xf32>
    %cst_25 = arith.constant 0.000000e+00 : f32
    %28 = vector.broadcast %cst_25 : f32 to vector<16x512xf32>
    %29 = arith.maximumf %27, %28 : vector<16x512xf32>
    %30 = arith.truncf %29 : vector<16x512xf32> to vector<16x512xbf16>
    %c16_26 = arith.constant 16 : index
    %c0_27 = arith.constant 0 : index
    %31 = vector.load %arg9[%c16_26, %c0_27] : memref<48x512xbf16, #tpu.memory_space<vmem>>, vector<16x512xbf16>
    tpu.vector_store %arg9[%c16_26, %c0_27], %30 {strides = array<i32>} : memref<48x512xbf16, #tpu.memory_space<vmem>>, vector<16x512xbf16>,
    %c15_28 = arith.constant 15 : index
    %c0_29 = arith.constant 0 : index
    %32 = vector.load %arg9[%c15_28, %c0_29] : memref<48x512xbf16, #tpu.memory_space<vmem>>, vector<16x512xbf16>
    %c0_30 = arith.constant 0 : index
    %c0_31 = arith.constant 0 : index
    %c0_32 = arith.constant 0 : index
    %33 = vector.load %arg5[%c0_30, %c0_31, %c0_32] : memref<3x512x512xbf16, #tpu.memory_space<vmem>>, vector<1x512x512xbf16>
    %34 = vector.shape_cast %33 : vector<1x512x512xbf16> to vector<512x512xbf16>
    %cst_33 = arith.constant dense<0.000000e+00> : vector<16x512xf32>
    %35 = tpu.matmul %32, %34, %cst_33 {dimension_numbers = #tpu.dot_dimension_numbers<[1], [0], [0], [1], [0, 0, 1, 1], [], []>} : vector<16x512xbf16>, vector<512x512xbf16>, vector<16x512xf32> -> vector<16x512xf32>
    %c16_34 = arith.constant 16 : index
    %c0_35 = arith.constant 0 : index
    %36 = vector.load %arg9[%c16_34, %c0_35] : memref<48x512xbf16, #tpu.memory_space<vmem>>, vector<16x512xbf16>
    %c1_36 = arith.constant 1 : index
    %c0_37 = arith.constant 0 : index
    %c0_38 = arith.constant 0 : index
    %37 = vector.load %arg5[%c1_36, %c0_37, %c0_38] : memref<3x512x512xbf16, #tpu.memory_space<vmem>>, vector<1x512x512xbf16>
    %38 = vector.shape_cast %37 : vector<1x512x512xbf16> to vector<512x512xbf16>
    %cst_39 = arith.constant dense<0.000000e+00> : vector<16x512xf32>
    %39 = tpu.matmul %36, %38, %cst_39 {dimension_numbers = #tpu.dot_dimension_numbers<[1], [0], [0], [1], [0, 0, 1, 1], [], []>} : vector<16x512xbf16>, vector<512x512xbf16>, vector<16x512xf32> -> vector<16x512xf32>
    %40 = arith.addf %35, %39 : vector<16x512xf32>
    %c17_40 = arith.constant 17 : index
    %c0_41 = arith.constant 0 : index
    %41 = vector.load %arg9[%c17_40, %c0_41] : memref<48x512xbf16, #tpu.memory_space<vmem>>, vector<16x512xbf16>
    %c2_42 = arith.constant 2 : index
    %c0_43 = arith.constant 0 : index
    %c0_44 = arith.constant 0 : index
    %42 = vector.load %arg5[%c2_42, %c0_43, %c0_44] : memref<3x512x512xbf16, #tpu.memory_space<vmem>>, vector<1x512x512xbf16>
    %43 = vector.shape_cast %42 : vector<1x512x512xbf16> to vector<512x512xbf16>
    %cst_45 = arith.constant dense<0.000000e+00> : vector<16x512xf32>
    %44 = tpu.matmul %41, %43, %cst_45 {dimension_numbers = #tpu.dot_dimension_numbers<[1], [0], [0], [1], [0, 0, 1, 1], [], []>} : vector<16x512xbf16>, vector<512x512xbf16>, vector<16x512xf32> -> vector<16x512xf32>
    %45 = arith.addf %40, %44 : vector<16x512xf32>
    %c0_46 = arith.constant 0 : index
    %c0_47 = arith.constant 0 : index
    %46 = vector.load %arg6[%c0_46, %c0_47] : memref<1x512xf32, #tpu.memory_space<vmem>>, vector<1x512xf32>
    %47 = vector.broadcast %46 : vector<1x512xf32> to vector<16x512xf32>
    %48 = arith.mulf %45, %47 : vector<16x512xf32>
    %c0_48 = arith.constant 0 : index
    %c0_49 = arith.constant 0 : index
    %49 = vector.load %arg7[%c0_48, %c0_49] : memref<1x512xf32, #tpu.memory_space<vmem>>, vector<1x512xf32>
    %50 = vector.broadcast %49 : vector<1x512xf32> to vector<16x512xf32>
    %51 = arith.addf %48, %50 : vector<16x512xf32>
    %c0_50 = arith.constant 0 : index
    %c0_51 = arith.constant 0 : index
    %c0_52 = arith.constant 0 : index
    %52 = vector.load %arg1[%c0_50, %c0_51, %c0_52] : memref<1x16x512xf32, #tpu.memory_space<vmem>>, vector<1x16x512xf32>
    %53 = vector.shape_cast %52 : vector<1x16x512xf32> to vector<16x512xf32>
    %54 = arith.addf %53, %51 : vector<16x512xf32>
    %cst_53 = arith.constant 0.000000e+00 : f32
    %55 = vector.broadcast %cst_53 : f32 to vector<16x512xf32>
    %56 = arith.maximumf %54, %55 : vector<16x512xf32>
    %c0_54 = arith.constant 0 : index
    %c0_55 = arith.constant 0 : index
    %c0_56 = arith.constant 0 : index
    %57 = vector.load %arg8[%c0_54, %c0_55, %c0_56] : memref<1x16x512xf32, #tpu.memory_space<vmem>>, vector<1x16x512xf32>
    %58 = vector.shape_cast %57 : vector<1x16x512xf32> to vector<16x512xf32>
    %59 = vector.shape_cast %56 : vector<16x512xf32> to vector<1x16x512xf32>
    tpu.vector_store %arg8[%c0_54, %c0_55, %c0_56], %59 {strides = array<i32>} : memref<1x16x512xf32, #tpu.memory_space<vmem>>, vector<1x16x512xf32>,
    return
  }
  func.func @transform_0(%arg0: i32) -> (i32, i32, i32) {
    %c0_i32 = arith.constant 0 : i32
    %c0_i32_0 = arith.constant 0 : i32
    %c0_i32_1 = arith.constant 0 : i32
    return %arg0, %c0_i32, %c0_i32_0 : i32, i32, i32
  }
  func.func @transform_1(%arg0: i32) -> (i32, i32, i32) {
    %c0_i32 = arith.constant 0 : i32
    %c0_i32_0 = arith.constant 0 : i32
    %c0_i32_1 = arith.constant 0 : i32
    %c0_i32_2 = arith.constant 0 : i32
    return %c0_i32, %c0_i32_0, %c0_i32_1 : i32, i32, i32
  }
  func.func @transform_2(%arg0: i32) -> (i32, i32) {
    %c0_i32 = arith.constant 0 : i32
    %c0_i32_0 = arith.constant 0 : i32
    %c0_i32_1 = arith.constant 0 : i32
    return %c0_i32, %c0_i32_0 : i32, i32
  }
  func.func @transform_3(%arg0: i32) -> (i32, i32) {
    %c0_i32 = arith.constant 0 : i32
    %c0_i32_0 = arith.constant 0 : i32
    %c0_i32_1 = arith.constant 0 : i32
    return %c0_i32, %c0_i32_0 : i32, i32
  }
  func.func @transform_4(%arg0: i32) -> (i32, i32, i32) {
    %c0_i32 = arith.constant 0 : i32
    %c0_i32_0 = arith.constant 0 : i32
    %c0_i32_1 = arith.constant 0 : i32
    %c0_i32_2 = arith.constant 0 : i32
    return %c0_i32, %c0_i32_0, %c0_i32_1 : i32, i32, i32
  }
  func.func @transform_5(%arg0: i32) -> (i32, i32) {
    %c0_i32 = arith.constant 0 : i32
    %c0_i32_0 = arith.constant 0 : i32
    %c0_i32_1 = arith.constant 0 : i32
    return %c0_i32, %c0_i32_0 : i32, i32
  }
  func.func @transform_6(%arg0: i32) -> (i32, i32) {
    %c0_i32 = arith.constant 0 : i32
    %c0_i32_0 = arith.constant 0 : i32
    %c0_i32_1 = arith.constant 0 : i32
    return %c0_i32, %c0_i32_0 : i32, i32
  }
  func.func @transform_7(%arg0: i32) -> (i32, i32, i32) {
    %c0_i32 = arith.constant 0 : i32
    %c0_i32_0 = arith.constant 0 : i32
    %c0_i32_1 = arith.constant 0 : i32
    return %arg0, %c0_i32, %c0_i32_0 : i32, i32, i32
  }
}

</mosaic_0001>

<bundles_post_ra>
// kernel: feblock1_pallas.1
= control target key start
LH: loop header
LB: loop body
LE: loop exit
PB: predicated region body
PF: predicated region fallthrough
CT: control target
= control target key end

     0   :  { %12 = vsyncpa [#allocation4], 0  ;;  %s9217_s0 = inlined_call_operand.vmem [shape: f32[2,16,512], index: 0, kind: input, shape index: {}]   ;;  %s9218_s1 = inlined_call_operand.hbm [shape: bf16[3,512,512], index: 1, kind: input, shape index: {}]   ;;  %s9219_s2 = inlined_call_operand.hbm [shape: f32[1,512], index: 2, kind: input, shape index: {}]   ;;  %s9220_s3 = inlined_call_operand.hbm [shape: f32[1,512], index: 3, kind: input, shape index: {}]   ;;  %s9221_s4 = inlined_call_operand.hbm [shape: bf16[3,512,512], index: 4, kind: input, shape index: {}]   ;;  %s9222_s5 = inlined_call_operand.hbm [shape: f32[1,512], index: 5, kind: input, shape index: {}]   ;;  %s9223_s6 = inlined_call_operand.hbm [shape: f32[1,512], index: 6, kind: input, shape index: {}]   ;;  %s9224_s7 = inlined_call_operand.vmem [shape: f32[2,16,512], index: 7, kind: output, shape index: {}]  }
   0x1   :  { %13 = vsyncpa [#allocation6], 0 }
   0x2   :  { %14 = vsyncpa [#allocation9], 0 }
   0x3   :  { %15 = vsyncpa [#allocation12], 0  ;;  %s8908_s24 = smov 0  }
   0x4 LB: > { %s8859_s25 = smov [#allocation5]   ;;  %s8914_s27 = sadd.s32 4294967295, %s8857_s24   ;;  %s8857_s24 = sphi %s8908_s24, %s21_s24  }
   0x5   : > { %s230_s26 = sshll.u32 %s8859_s25, 4  ;;  %p6571_p0 = scmp.ge.s32.totalorder %s8857_s24, 1  ;;  %s8919_s26 = int_to_ptr.vmem [resolvable:$true] %s230_s26 }
   0x6   : > { %p204_p1 = scmp.lt.s32.totalorder %s8857_s24, 3  ;;  %p9225_p2 = scmp.eq.s32.totalorder %s8914_s27, 0 }
   0x7   : > { %s8860_s29 = smov [#allocation8]   ;;  %s8861_s9 = smov [#allocation3]  }
   0x8   : > { %p8921_p3 = pnand %p6571_p0, %p204_p1  ;;  %s251_s30 = sshll.u32 %s8860_s29, 4  ;;  %s8927_s30 = int_to_ptr.vmem [resolvable:$true] %s251_s30 }
   0x9   : > { %s216_s10 = sshll.u32 %s8861_s9, 4  ;;  %s8862_s11 = smov [#allocation7]   ;;  %s8935_s10 = int_to_ptr.vmem [resolvable:$true] %s216_s10 }
   0xa   : > { %s9227_s28 = scalar_select %p8921_p3, 1, 0 }
   0xb   : > { %p7466_p4 = pneg %p8921_p3  ;;  %s8937_s12 = sshll.u32 %s8862_s11, 4  ;;  %s242_s12 = int_to_ptr.vmem [resolvable:$true] %s8937_s12 }
   0xc   : > { %s8667_s15 = scalar_lea.hbm %s9219_s2, 64 }
   0xd   : > { %p8931_p5 = pnand %p9225_p2, %p7466_p4  ;;  %p8668_p6 = scmp.ne.s32.totalorder %s9219_s2, %s8667_s15 }
   0xe   : > { %p8674_p10 = scmp.lt.u32.totalorder %s8667_s15, %s9219_s2 }
   0xf   : > { %p8947_p7 = pneg %p8931_p5 }
  0x11   : > { %p8670_p8 = pnand %p8947_p7, %p8668_p6 }
  0x13   : > { %p8671_p9 = pneg %p8670_p8 }
  0x15   : > { %p8676_p11 = pnand %p8674_p10, %p8671_p9 }
  0x17   : > { %8679 = shalt.err (!%p8676_p11)
}
  0x18   : > { %s8680_s21 = scalar_lea.vmem %s8919_s26, 64  ;;  %p8688_p1 = scmp.lt.s32.totalorder %s8919_s26, %s8919_s26 }
  0x19   : > { %p8681_p12 = scmp.ne.s32.totalorder %s8919_s26, %s8680_s21  ;;  %p8689_p4 = scmp.lt.s32.totalorder %s8680_s21, %s8680_s21 }
  0x1b   : > { %p8683_p13 = pnand %p8681_p12, %p8947_p7  ;;  %p8690_p6 = por %p8689_p4, %p8688_p1 }
  0x1d   : > { %p8684_p0 = pneg %p8683_p13 }
  0x1f   : > { %p8691_p8 = pnand %p8690_p6, %p8684_p0 }
  0x21   : > { %8694 = shalt.err (!%p8691_p8)
}
  0x22   : > { %7472 = dma.hbm_to_vmem [thread:$0]  (!%p8931_p5), %s9219_s2, 64, %s8919_s26, [#allocation6]  }
  0x23   : > { %s8695_s9 = scalar_lea.hbm %s9221_s4, 49152 }
  0x24   : > { %p8696_p9 = scmp.ne.s32.totalorder %s9221_s4, %s8695_s9  ;;  %p8702_p12 = scmp.lt.u32.totalorder %s8695_s9, %s9221_s4 }
  0x26   : > { %p8698_p10 = pnand %p8696_p9, %p8947_p7 }
  0x28   : > { %p8699_p11 = pneg %p8698_p10 }
  0x2a   : > { %p8704_p13 = pnand %p8702_p12, %p8699_p11 }
  0x2c   : > { %8707 = shalt.err (!%p8704_p13)
}
  0x2d   : > { %s8708_s26 = scalar_lea.vmem %s8927_s30, 49152  ;;  %p8716_p6 = scmp.lt.s32.totalorder %s8927_s30, %s8927_s30 }
  0x2e   : > { %p8709_p0 = scmp.ne.s32.totalorder %s8927_s30, %s8708_s26  ;;  %p8717_p8 = scmp.lt.s32.totalorder %s8708_s26, %s8708_s26 }
  0x30   : > { %p8711_p1 = pnand %p8709_p0, %p8947_p7  ;;  %p8718_p9 = por %p8717_p8, %p8716_p6 }
  0x32   : > { %p8712_p4 = pneg %p8711_p1 }
  0x34   : > { %p8719_p10 = pnand %p8718_p9, %p8712_p4 }
  0x36   : > { %8722 = shalt.err (!%p8719_p10)
}
  0x37   : > { %s8863_s16 = smov 256   ;;  %s8864_s17 = smov 16  }
  0x38   : > { %7478 = dma.hbm_to_vmem [thread:$0]  (!%p8931_p5), %s9221_s4, 49152, %s8927_s30, [#allocation9], %s8863_s16, %s8863_s16, %s8864_s17  }
  0x39   : > { %s8723_s23 = scalar_lea.hbm %s9218_s1, 49152 }
  0x3a   : > { %p8724_p11 = scmp.ne.s32.totalorder %s9218_s1, %s8723_s23  ;;  %p8730_p0 = scmp.lt.u32.totalorder %s8723_s23, %s9218_s1 }
  0x3c   : > { %p8726_p12 = pnand %p8724_p11, %p8947_p7 }
  0x3e   : > { %p8727_p13 = pneg %p8726_p12 }
  0x40   : > { %p8732_p1 = pnand %p8730_p0, %p8727_p13 }
  0x42   : > { %8735 = shalt.err (!%p8732_p1)
}
  0x43   : > { %s8736_s30 = scalar_lea.vmem %s8935_s10, 49152  ;;  %p8744_p9 = scmp.lt.s32.totalorder %s8935_s10, %s8935_s10 }
  0x44   : > { %p8737_p4 = scmp.ne.s32.totalorder %s8935_s10, %s8736_s30  ;;  %p8745_p10 = scmp.lt.s32.totalorder %s8736_s30, %s8736_s30 }
  0x46   : > { %p8739_p6 = pnand %p8737_p4, %p8947_p7  ;;  %p8746_p11 = por %p8745_p10, %p8744_p9 }
  0x48   : > { %p8740_p8 = pneg %p8739_p6 }
  0x4a   : > { %p8747_p12 = pnand %p8746_p11, %p8740_p8 }
  0x4c   : > { %8750 = shalt.err (!%p8747_p12)
}
  0x4d   : > { %7469 = dma.hbm_to_vmem [thread:$0]  (!%p8931_p5), %s9218_s1, 49152, %s8935_s10, [#allocation4], %s8863_s16, %s8863_s16, %s8864_s17  }
  0x4e   : > { %s8751_s19 = scalar_lea.hbm %s9220_s3, 64 }
  0x4f   : > { %p8752_p13 = scmp.ne.s32.totalorder %s9220_s3, %s8751_s19  ;;  %p8758_p4 = scmp.lt.u32.totalorder %s8751_s19, %s9220_s3 }
  0x51   : > { %p8754_p0 = pnand %p8752_p13, %p8947_p7 }
  0x53   : > { %p8755_p1 = pneg %p8754_p0 }
  0x55   : > { %p8760_p6 = pnand %p8758_p4, %p8755_p1 }
  0x57   : > { %8763 = shalt.err (!%p8760_p6)
}
  0x58   : > { %s8764_s25 = scalar_lea.vmem %s242_s12, 64  ;;  %p8772_p11 = scmp.lt.s32.totalorder %s242_s12, %s242_s12 }
  0x59   : > { %p8765_p8 = scmp.ne.s32.totalorder %s242_s12, %s8764_s25  ;;  %p8773_p12 = scmp.lt.s32.totalorder %s8764_s25, %s8764_s25 }
  0x5b   : > { %p8767_p9 = pnand %p8765_p8, %p8947_p7  ;;  %p8774_p2 = por %p8773_p12, %p8772_p11 }
  0x5d   : > { %p8768_p10 = pneg %p8767_p9 }
  0x5f   : > { %p8775_p3 = pnand %p8774_p2, %p8768_p10 }
  0x61   : > { %8778 = shalt.err (!%p8775_p3)
}
  0x62   : > { %7475 = dma.hbm_to_vmem [thread:$0]  (!%p8931_p5), %s9220_s3, 64, %s242_s12, [#allocation6]  }
  0x63   : > { %s8865_s17 = smov [#allocation10]   ;;  %s8866_s9 = smov [#allocation11]  }
  0x64   : > { %s265_s29 = sshll.u32 %s8865_s17, 4  ;;  %s276_s11 = sshll.u32 %s8866_s9, 4  ;;  %s266_s29 = int_to_ptr.vmem [resolvable:$true] %s265_s29  ;;  %s277_s11 = int_to_ptr.vmem [resolvable:$true] %s276_s11 }
  0x65   : > { %s8779_s14 = scalar_lea.hbm %s9222_s5, 64 }
  0x66   : > { %p8780_p2 = scmp.ne.s32.totalorder %s9222_s5, %s8779_s14  ;;  %p8786_p0 = scmp.lt.u32.totalorder %s8779_s14, %s9222_s5 }
  0x68   : > { %p8782_p3 = pnand %p8780_p2, %p8947_p7 }
  0x6a   : > { %p8783_p13 = pneg %p8782_p3 }
  0x6c   : > { %p8788_p1 = pnand %p8786_p0, %p8783_p13 }
  0x6e   : > { %8791 = shalt.err (!%p8788_p1)
}
  0x6f   : > { %s8792_s12 = scalar_lea.vmem %s266_s29, 64  ;;  %p8800_p9 = scmp.lt.s32.totalorder %s266_s29, %s266_s29 }
  0x70   : > { %p8793_p4 = scmp.ne.s32.totalorder %s266_s29, %s8792_s12  ;;  %p8801_p10 = scmp.lt.s32.totalorder %s8792_s12, %s8792_s12 }
  0x72   : > { %p8795_p6 = pnand %p8793_p4, %p8947_p7  ;;  %p8802_p11 = por %p8801_p10, %p8800_p9 }
  0x74   : > { %p8796_p8 = pneg %p8795_p6 }
  0x76   : > { %p8803_p12 = pnand %p8802_p11, %p8796_p8 }
  0x78   : > { %8806 = shalt.err (!%p8803_p12)
}
  0x79   : > { %7481 = dma.hbm_to_vmem [thread:$0]  (!%p8931_p5), %s9222_s5, 64, %s266_s29, [#allocation9]  }
  0x7a   : > { %s8807_s10 = scalar_lea.hbm %s9223_s6, 64 }
  0x7b   : > { %p8808_p2 = scmp.ne.s32.totalorder %s9223_s6, %s8807_s10  ;;  %p8814_p0 = scmp.lt.u32.totalorder %s8807_s10, %s9223_s6 }
  0x7d   : > { %p8810_p3 = pnand %p8808_p2, %p8947_p7 }
  0x7f   : > { %p8811_p13 = pneg %p8810_p3 }
  0x81   : > { %p8816_p1 = pnand %p8814_p0, %p8811_p13 }
  0x83   : > { %8819 = shalt.err (!%p8816_p1)
}
  0x84   : > { %s8820_s13 = scalar_lea.vmem %s277_s11, 64  ;;  %p8828_p9 = scmp.lt.s32.totalorder %s277_s11, %s277_s11 }
  0x85   : > { %p8821_p4 = scmp.ne.s32.totalorder %s277_s11, %s8820_s13  ;;  %p8829_p10 = scmp.lt.s32.totalorder %s8820_s13, %s8820_s13 }
  0x87   : > { %p8823_p6 = pnand %p8821_p4, %p8947_p7  ;;  %p8830_p11 = por %p8829_p10, %p8828_p9 }
  0x89   : > { %p8824_p8 = pneg %p8823_p6 }
  0x8b   : > { %p8831_p12 = pnand %p8830_p11, %p8824_p8 }
  0x8d   : > { %8834 = shalt.err (!%p8831_p12)
}
  0x8e   : > { %7484 = dma.hbm_to_vmem [thread:$0]  (!%p8931_p5), %s9223_s6, 64, %s277_s11, [#allocation12]  }
  0x8f   : > { %p9230_p2 = scmp.ne.s32.totalorder %s9227_s28, 0 }
  0x90   : > { %p9231_p3 = scmp.eq.s32.totalorder (!%p9230_p2), %s8914_s27, 0 }
  0x91   : > { %297 = sbr.rel (%p9230_p2) target bundleno = 1317 (0x525), region = 48 }
  0x98   : > { %8840 = dma.done.wait (%p9231_p3), [#allocation4], 49152   ;;  %p9232_p7 = pmov %p9231_p3 }
  0x99   : > { %p9233_p13 = pmov %p9231_p3 }
  0x9a   : > { %8842 = vsyncadd (%p9232_p7), [#allocation4], 4294918144 }
  0x9b   : > { %8844 = dma.done.wait (%p9233_p13), [#allocation6], 128   ;;  %p9234_p0 = pmov %p9231_p3 }
  0x9d   : > { %8846 = vsyncadd (%p9234_p0), [#allocation6], 4294967168  ;;  %p9235_p1 = pmov %p9234_p0 }
  0x9e   : > { %p9236_p5 = pmov %p9234_p0 }
  0x9f   : > { %8848 = dma.done.wait (%p9235_p1), [#allocation9], 49216  }
  0xa0   : > { %8850 = vsyncadd (%p9236_p5), [#allocation9], 4294918080  ;;  %p9237_p4 = pmov %p9234_p0 }
  0xa1   : > { %p9238_p6 = pmov %p9234_p0 }
  0xa2   : > { %8852 = dma.done.wait (%p9237_p4), [#allocation12], 64  }
  0xa3   : > { %8854 = vsyncadd (%p9238_p6), [#allocation12], 4294967232  ;;  %v7514_v0 = vld [vmem:[#allocation3 + $0x404] ss:$16 sps:$4 sm:$0xff]   ;;  %v7516_v1 = vld [vmem:[#allocation3 + $0x40c] ss:$16 sps:$4 sm:$0xff]  }
  0xa4   : > { %1289 = vmatprep.subr.bf16.mxu0 %v7514_v0  ;;  %v7518_v2 = vld [vmem:[#allocation3 + $0x400] ss:$16 sps:$4 sm:$0xff]   ;;  %v7519_v3 = vld [vmem:[#allocation3 + $0x408] ss:$16 sps:$4 sm:$0xff]   ;;  %1375 = vmatprep.subr.bf16.mxu1 %v7516_v1  ;;  %v7520_v4 = vld [vmem:[#allocation3 + $0x424] ss:$16 sps:$4 sm:$0xff]  }
  0xa5   : > { %1290 = vmatpush1.bf16.msra.mxu0 %v7518_v2  ;;  %1376 = vmatpush1.bf16.msra.mxu1 %v7519_v3  ;;  %v7522_v5 = vld [vmem:[#allocation3 + $0x42c] ss:$16 sps:$4 sm:$0xff]   ;;  %v7524_v6 = vld [vmem:[#allocation3 + $0x420] ss:$16 sps:$4 sm:$0xff]   ;;  %v7525_v7 = vld [vmem:[#allocation3 + $0x428] ss:$16 sps:$4 sm:$0xff]  }
  0xa6   : > { %1291 = vmatprep.subr.bf16.mxu0 %v7520_v4  ;;  %1377 = vmatprep.subr.bf16.mxu1 %v7522_v5  ;;  %v7526_v8 = vld [vmem:[#allocation3 + $0x444] ss:$16 sps:$4 sm:$0xff]   ;;  %v7528_v9 = vld [vmem:[#allocation3 + $0x44c] ss:$16 sps:$4 sm:$0xff]   ;;  %v7530_v10 = vld [vmem:[#allocation3 + $0x440] ss:$16 sps:$4 sm:$0xff]  }
  0xa7   : > { %v7531_v11 = vld [vmem:[#allocation3 + $0x448] ss:$16 sps:$4 sm:$0xff]   ;;  %v7532_v12 = vld [vmem:[#allocation3 + $0x464] ss:$16 sps:$4 sm:$0xff]   ;;  %v7534_v13 = vld [vmem:[#allocation3 + $0x46c] ss:$16 sps:$4 sm:$0xff]  }
  0xa8   : > { %v7536_v14 = vld [vmem:[#allocation3 + $0x460] ss:$16 sps:$4 sm:$0xff]   ;;  %v7537_v15 = vld [vmem:[#allocation3 + $0x468] ss:$16 sps:$4 sm:$0xff]   ;;  %v7538_v16 = vld [vmem:[#allocation3 + $0x484] ss:$16 sps:$4 sm:$0xff]  }
  0xa9   : > { %1292 = vmatpush1.bf16.msra.mxu0 %v7524_v6  ;;  %1378 = vmatpush1.bf16.msra.mxu1 %v7525_v7  ;;  %v7540_v17 = vld [vmem:[#allocation3 + $0x48c] ss:$16 sps:$4 sm:$0xff]   ;;  %v7542_v18 = vld [vmem:[#allocation3 + $0x480] ss:$16 sps:$4 sm:$0xff]   ;;  %v7543_v19 = vld [vmem:[#allocation3 + $0x488] ss:$16 sps:$4 sm:$0xff]  }
  0xaa   : > { %1293 = vmatprep.subr.bf16.mxu0 %v7526_v8  ;;  %1379 = vmatprep.subr.bf16.mxu1 %v7528_v9  ;;  %v7544_v20 = vld [vmem:[#allocation3 + $0x4a4] ss:$16 sps:$4 sm:$0xff]   ;;  %v7546_v21 = vld [vmem:[#allocation3 + $0x4ac] ss:$16 sps:$4 sm:$0xff]   ;;  %v7548_v22 = vld [vmem:[#allocation3 + $0x4a0] ss:$16 sps:$4 sm:$0xff]  }
  0xab   : > { %v7549_v23 = vld [vmem:[#allocation3 + $0x4a8] ss:$16 sps:$4 sm:$0xff]   ;;  %v7550_v24 = vld [vmem:[#allocation3 + $0x4c4] ss:$16 sps:$4 sm:$0xff]   ;;  %v7552_v25 = vld [vmem:[#allocation3 + $0x4cc] ss:$16 sps:$4 sm:$0xff]  }
  0xac   : > { %v7554_v26 = vld [vmem:[#allocation3 + $0x4c0] ss:$16 sps:$4 sm:$0xff]   ;;  %v7555_v27 = vld [vmem:[#allocation3 + $0x4c8] ss:$16 sps:$4 sm:$0xff]   ;;  %v7556_v28 = vld [vmem:[#allocation3 + $0x4e4] ss:$16 sps:$4 sm:$0xff]  }
  0xad   : > { %1294 = vmatpush1.bf16.msra.mxu0 %v7530_v10  ;;  %1380 = vmatpush1.bf16.msra.mxu1 %v7531_v11  ;;  %v7558_v29 = vld [vmem:[#allocation3 + $0x4ec] ss:$16 sps:$4 sm:$0xff]   ;;  %v7560_v30 = vld [vmem:[#allocation3 + $0x4e0] ss:$16 sps:$4 sm:$0xff]   ;;  %v7561_v31 = vld [vmem:[#allocation3 + $0x4e8] ss:$16 sps:$4 sm:$0xff]  }
  0xae   : > { %1295 = vmatprep.subr.bf16.mxu0 %v7532_v12  ;;  %1381 = vmatprep.subr.bf16.mxu1 %v7534_v13  ;;  %v7562_v32 = vld [vmem:[#allocation3 + $0x504] ss:$16 sps:$4 sm:$0xff]   ;;  %p349_p8 = scmp.lt.s32.totalorder %s8914_s27, 1  ;;  %v7564_v33 = vld [vmem:[#allocation3 + $0x50c] ss:$16 sps:$4 sm:$0xff]   ;;  %v8867_v0 = vmov 0  }
  0xaf   : > { %v7566_v34 = vld [vmem:[#allocation3 + $0x500] ss:$16 sps:$4 sm:$0xff]   ;;  %v7567_v35 = vld [vmem:[#allocation3 + $0x508] ss:$16 sps:$4 sm:$0xff]   ;;  %v7568_v36 = vld [vmem:[#allocation3 + $0x524] ss:$16 sps:$4 sm:$0xff]  }
  0xb0   : > { %s9240_s27 = smov (!%p349_p8, %s8914_s27), 1  ;;  %v7570_v37 = vld [vmem:[#allocation3 + $0x52c] ss:$16 sps:$4 sm:$0xff]   ;;  %v7572_v38 = vld [vmem:[#allocation3 + $0x520] ss:$16 sps:$4 sm:$0xff]   ;;  %361 = vst [vmem:[#allocation2 + $0x8] sm:$0xff] %v8867_v0 }
  0xb1   : > { %1296 = vmatpush1.bf16.msra.mxu0 %v7536_v14  ;;  %1382 = vmatpush1.bf16.msra.mxu1 %v7537_v15  ;;  %v7573_v39 = vld [vmem:[#allocation3 + $0x528] ss:$16 sps:$4 sm:$0xff]   ;;  %v7574_v40 = vld [vmem:[#allocation3 + $0x544] ss:$16 sps:$4 sm:$0xff]   ;;  %s7360_s28 = sshll.u32 %s9240_s27, 6  ;;  %360 = vst [vmem:[#allocation2] sm:$0xff] %v8867_v0 }
  0xb2   : > { %1297 = vmatprep.subr.bf16.mxu0 %v7538_v16  ;;  %1383 = vmatprep.subr.bf16.mxu1 %v7540_v17  ;;  %v7576_v41 = vld [vmem:[#allocation3 + $0x54c] ss:$16 sps:$4 sm:$0xff]   ;;  %v7578_v42 = vld [vmem:[#allocation3 + $0x540] ss:$16 sps:$4 sm:$0xff]   ;;  %v7579_v43 = vld [vmem:[#allocation3 + $0x548] ss:$16 sps:$4 sm:$0xff]   ;;  %s9097_s11 = scalar_lea.vmem %s9217_s0, %s7360_s28  ;;  %s358_s19 = scalar_lea.vmem %s9224_s7, %s7360_s28 }
  0xb3   : > { %v7580_v44 = vld [vmem:[#allocation3 + $0x564] ss:$16 sps:$4 sm:$0xff]   ;;  %v7582_v45 = vld [vmem:[#allocation3 + $0x56c] ss:$16 sps:$4 sm:$0xff]   ;;  %v7584_v48 = vld [vmem:[#allocation3 + $0x560] ss:$16 sps:$4 sm:$0xff]  }
  0xb4   : > { %v369_v46 = vld [vmem:[%s9097_s11 + $0x8] sm:$0xff]  ;;  %v7586_v51 = vld [vmem:[#allocation3 + $0x584] ss:$16 sps:$4 sm:$0xff]   ;;  %v7590_v55 = vld [vmem:[#allocation3 + $0x580] ss:$16 sps:$4 sm:$0xff]   ;;  %362 = vst [vmem:[#allocation2 + $0x10] sm:$0xff] %v8867_v0 }
  0xb5   : > { %1298 = vmatpush1.bf16.msra.mxu0 %v7542_v18  ;;  %1384 = vmatpush1.bf16.msra.mxu1 %v7543_v19  ;;  %v373_v47 = vld [vmem:[%s9097_s11 + $0x28] sm:$0xff]  ;;  %v368_v53 = vld [vmem:[%s9097_s11] sm:$0xff]  ;;  %363 = vst [vmem:[#allocation2 + $0x18] sm:$0xff] %v8867_v0  ;;  %364 = vst [vmem:[#allocation2 + $0x40] sm:$0xff] %v8867_v0  ;;  %vm1461_vm0 = vsmask.f32 256 }
  0xb6   : > { %1299 = vmatprep.subr.bf16.mxu0 %v7544_v20  ;;  %1385 = vmatprep.subr.bf16.mxu1 %v7546_v21  ;;  %v7585_v49 = vld [vmem:[#allocation3 + $0x568] ss:$16 sps:$4 sm:$0xff]   ;;  %v9101_v50 = vpack.c.bf16 %v373_v47, %v369_v46  ;;  %v7588_v52 = vld [vmem:[#allocation3 + $0x58c] ss:$16 sps:$4 sm:$0xff]   ;;  %v372_v54 = vld [vmem:[%s9097_s11 + $0x20] sm:$0xff]  ;;  %365 = vst [vmem:[#allocation2 + $0x48] sm:$0xff] %v8867_v0 }
  0xb7   : > { %v7591_v56 = vld [vmem:[#allocation3 + $0x588] ss:$16 sps:$4 sm:$0xff]   ;;  %v9108_v57 = vpack.c.bf16 %v372_v54, %v368_v53  ;;  %v7592_v58 = vld [vmem:[#allocation3 + $0x5a4] ss:$16 sps:$4 sm:$0xff]   ;;  %v7594_v59 = vld [vmem:[#allocation3 + $0x5ac] ss:$16 sps:$4 sm:$0xff]  }
  0xb8   : > { %381 = vst [vmem:[#allocation2 + $0x28] sm:$0xff] %v9101_v50  ;;  %1321 = vmatprep.mubr.bf16.mxu0 %v9101_v50  ;;  %1407 = vmatprep.mubr.bf16.mxu1 %v9101_v50  ;;  %v7596_v60 = vld [vmem:[#allocation3 + $0x5a0] ss:$16 sps:$4 sm:$0xff]   ;;  %v7597_v61 = vld [vmem:[#allocation3 + $0x5a8] ss:$16 sps:$4 sm:$0xff]   ;;  %366 = vst [vmem:[#allocation2 + $0x50] sm:$0xff] %v8867_v0 }
  0xb9   : > { %1300 = vmatpush1.bf16.msra.mxu0 %v7548_v22  ;;  %1386 = vmatpush1.bf16.msra.mxu1 %v7549_v23  ;;  %380 = vst [vmem:[#allocation2 + $0x20] sm:$0xff] %v9108_v57  ;;  %v7598_v62 = vld [vmem:[#allocation3 + $0x5c4] ss:$16 sps:$4 sm:$0xff]   ;;  %v7600_v63 = vld [vmem:[#allocation3 + $0x5cc] ss:$16 sps:$4 sm:$0xff]   ;;  %367 = vst [vmem:[#allocation2 + $0x58] sm:$0xff] %v8867_v0 }
  0xba   : > { %1301 = vmatprep.subr.bf16.mxu0 %v7550_v24  ;;  %1387 = vmatprep.subr.bf16.mxu1 %v7552_v25  ;;  %v7602_v1 = vld [vmem:[#allocation3 + $0x5c0] ss:$16 sps:$4 sm:$0xff]   ;;  %v7603_v2 = vld [vmem:[#allocation3 + $0x5c8] ss:$16 sps:$4 sm:$0xff]   ;;  %v7604_v3 = vld [vmem:[#allocation3 + $0x5e4] ss:$16 sps:$4 sm:$0xff]  }
  0xbb   : > { %v7606_v4 = vld [vmem:[#allocation3 + $0x5ec] ss:$16 sps:$4 sm:$0xff]   ;;  %v7608_v5 = vld [vmem:[#allocation3 + $0x5e0] ss:$16 sps:$4 sm:$0xff]   ;;  %v7609_v6 = vld [vmem:[#allocation3 + $0x5e8] ss:$16 sps:$4 sm:$0xff]  }
  0xbc   : > { %v7612_v7 = vld [vmem:[#allocation3 + $0x604] ss:$16 sps:$4 sm:$0xff]   ;;  %v7615_v8 = vld [vmem:[#allocation3 + $0x60c] ss:$16 sps:$4 sm:$0xff]   ;;  %v7610_v9 = vld [vmem:[#allocation3 + $0x600] ss:$16 sps:$4 sm:$0xff]  }
  0xbd   : > { %1302 = vmatpush1.bf16.msra.mxu0 %v7554_v26  ;;  %1388 = vmatpush1.bf16.msra.mxu1 %v7555_v27  ;;  %v7613_v10 = vld [vmem:[#allocation3 + $0x608] ss:$16 sps:$4 sm:$0xff]   ;;  %v7618_v11 = vld [vmem:[#allocation3 + $0x624] ss:$16 sps:$4 sm:$0xff]   ;;  %v7621_v12 = vld [vmem:[#allocation3 + $0x62c] ss:$16 sps:$4 sm:$0xff]  }
  0xbe   : > { %1303 = vmatprep.subr.bf16.mxu0 %v7556_v28  ;;  %1389 = vmatprep.subr.bf16.mxu1 %v7558_v29  ;;  %v7616_v13 = vld [vmem:[#allocation3 + $0x620] ss:$16 sps:$4 sm:$0xff]   ;;  %v7619_v14 = vld [vmem:[#allocation3 + $0x628] ss:$16 sps:$4 sm:$0xff]   ;;  %v7624_v15 = vld [vmem:[#allocation3 + $0x644] ss:$16 sps:$4 sm:$0xff]  }
  0xbf   : > { %v7627_v16 = vld [vmem:[#allocation3 + $0x64c] ss:$16 sps:$4 sm:$0xff]   ;;  %v7622_v17 = vld [vmem:[#allocation3 + $0x640] ss:$16 sps:$4 sm:$0xff]   ;;  %v7625_v18 = vld [vmem:[#allocation3 + $0x648] ss:$16 sps:$4 sm:$0xff]  }
  0xc0   : > { %v7630_v19 = vld [vmem:[#allocation3 + $0x664] ss:$16 sps:$4 sm:$0xff]   ;;  %v7633_v20 = vld [vmem:[#allocation3 + $0x66c] ss:$16 sps:$4 sm:$0xff]   ;;  %v7628_v21 = vld [vmem:[#allocation3 + $0x660] ss:$16 sps:$4 sm:$0xff]  }
  0xc1   : > { %1304 = vmatpush1.bf16.msra.mxu0 %v7560_v30  ;;  %1390 = vmatpush1.bf16.msra.mxu1 %v7561_v31  ;;  %v7631_v22 = vld [vmem:[#allocation3 + $0x668] ss:$16 sps:$4 sm:$0xff]   ;;  %v7636_v23 = vld [vmem:[#allocation3 + $0x684] ss:$16 sps:$4 sm:$0xff]   ;;  %v7639_v24 = vld [vmem:[#allocation3 + $0x68c] ss:$16 sps:$4 sm:$0xff]  }
  0xc2   : > { %1305 = vmatprep.subr.bf16.mxu0 %v7562_v32  ;;  %1391 = vmatprep.subr.bf16.mxu1 %v7564_v33  ;;  %v7634_v25 = vld [vmem:[#allocation3 + $0x680] ss:$16 sps:$4 sm:$0xff]   ;;  %v7637_v26 = vld [vmem:[#allocation3 + $0x688] ss:$16 sps:$4 sm:$0xff]   ;;  %v7642_v27 = vld [vmem:[#allocation3 + $0x6a4] ss:$16 sps:$4 sm:$0xff]  }
  0xc3   : > { %v7645_v28 = vld [vmem:[#allocation3 + $0x6ac] ss:$16 sps:$4 sm:$0xff]   ;;  %v7640_v29 = vld [vmem:[#allocation3 + $0x6a0] ss:$16 sps:$4 sm:$0xff]   ;;  %v7643_v30 = vld [vmem:[#allocation3 + $0x6a8] ss:$16 sps:$4 sm:$0xff]  }
  0xc4   : > { %v7648_v31 = vld [vmem:[#allocation3 + $0x6c4] ss:$16 sps:$4 sm:$0xff]   ;;  %v7651_v32 = vld [vmem:[#allocation3 + $0x6cc] ss:$16 sps:$4 sm:$0xff]   ;;  %v7658_v47 = vld [vmem:[#allocation3 + $0x700] ss:$16 sps:$4 sm:$0xff]  }
  0xc5   : > { %1306 = vmatpush1.bf16.msra.mxu0 %v7566_v34  ;;  %1392 = vmatpush1.bf16.msra.mxu1 %v7567_v35  ;;  %v371_v33 = vld [vmem:[%s9097_s11 + $0x18] sm:$0xff]  ;;  %v7646_v35 = vld [vmem:[#allocation3 + $0x6c0] ss:$16 sps:$4 sm:$0xff]   ;;  %v7672_v54 = vld [vmem:[#allocation3 + $0x744] ss:$16 sps:$4 sm:$0xff]  }
  0xc6   : > { %1307 = vmatprep.subr.bf16.mxu0 %v7568_v36  ;;  %1393 = vmatprep.subr.bf16.mxu1 %v7570_v37  ;;  %v375_v34 = vld [vmem:[%s9097_s11 + $0x38] sm:$0xff]  ;;  %vm2463_vm1 = vsmask.f32 7424 }
  0xc7   : > { %v7649_v36 = vld [vmem:[#allocation3 + $0x6c8] ss:$16 sps:$4 sm:$0xff]   ;;  %v9115_v37 = vpack.c.bf16 %v375_v34, %v371_v33  ;;  %v7663_v46 = vld [vmem:[#allocation3 + $0x70c] ss:$16 sps:$4 sm:$0xff]   ;;  %v7726_v34 = vld [vmem:[#allocation3 + $0x64] ss:$16 sps:$4 sm:$0xff]  }
  0xc8   : > { %v7667_v53 = vld [vmem:[#allocation3 + $0x728] ss:$16 sps:$4 sm:$0xff]   ;;  %v7687_v0 = vld [vmem:[#allocation3 + $0x78c] ss:$16 sps:$4 sm:$0xff]  }
  0xc9   : > { %1308 = vmatpush1.bf16.msra.mxu0 %v7572_v38  ;;  %1394 = vmatpush1.bf16.msra.mxu1 %v7573_v39  ;;  %v7654_v38 = vld [vmem:[#allocation3 + $0x6e4] ss:$16 sps:$4 sm:$0xff]   ;;  %v7657_v39 = vld [vmem:[#allocation3 + $0x6ec] ss:$16 sps:$4 sm:$0xff]   ;;  %383 = vst [vmem:[#allocation2 + $0x38] sm:$0xff] %v9115_v37 }
  0xca   : > { %1309 = vmatprep.subr.bf16.mxu0 %v7574_v40  ;;  %1395 = vmatprep.subr.bf16.mxu1 %v7576_v41  ;;  %v370_v40 = vld [vmem:[%s9097_s11 + $0x10] sm:$0xff]  ;;  %v7721_v33 = vld [vmem:[#allocation3 + $0x48] ss:$16 sps:$4 sm:$0xff]  }
  0xcb   : > { %v374_v41 = vld [vmem:[%s9097_s11 + $0x30] sm:$0xff] }
  0xcd   : > { %1310 = vmatpush1.bf16.msra.mxu0 %v7578_v42  ;;  %1396 = vmatpush1.bf16.msra.mxu1 %v7579_v43  ;;  %v7652_v42 = vld [vmem:[#allocation3 + $0x6e0] ss:$16 sps:$4 sm:$0xff]   ;;  %v7655_v43 = vld [vmem:[#allocation3 + $0x6e8] ss:$16 sps:$4 sm:$0xff]  }
  0xce   : > { %1311 = vmatprep.subr.bf16.mxu0 %v7580_v44  ;;  %1397 = vmatprep.subr.bf16.mxu1 %v7582_v45  ;;  %v9122_v44 = vpack.c.bf16 %v374_v41, %v370_v40  ;;  %v7660_v45 = vld [vmem:[#allocation3 + $0x704] ss:$16 sps:$4 sm:$0xff]   ;;  %v7735_v40 = vld [vmem:[#allocation3 + $0x8c] ss:$16 sps:$4 sm:$0xff]   ;;  %v7730_v41 = vld [vmem:[#allocation3 + $0x80] ss:$16 sps:$4 sm:$0xff]  }
  0xd0   : > { %382 = vst [vmem:[#allocation2 + $0x30] sm:$0xff] %v9122_v44 }
  0xd1   : > { %1312 = vmatpush1.bf16.msra.mxu0 %v7584_v48  ;;  %1398 = vmatpush1.bf16.msra.mxu1 %v7585_v49  ;;  %v7661_v48 = vld [vmem:[#allocation3 + $0x708] ss:$16 sps:$4 sm:$0xff]   ;;  %v7666_v49 = vld [vmem:[#allocation3 + $0x724] ss:$16 sps:$4 sm:$0xff]  }
  0xd2   : > { %1313 = vmatprep.subr.bf16.mxu0 %v7586_v51  ;;  %1399 = vmatprep.subr.bf16.mxu1 %v7588_v52  ;;  %v7669_v51 = vld [vmem:[#allocation3 + $0x72c] ss:$16 sps:$4 sm:$0xff]   ;;  %v7664_v52 = vld [vmem:[#allocation3 + $0x720] ss:$16 sps:$4 sm:$0xff]  }
  0xd5   : > { %1314 = vmatpush1.bf16.msra.mxu0 %v7590_v55  ;;  %1400 = vmatpush1.bf16.msra.mxu1 %v7591_v56  ;;  %v7675_v55 = vld [vmem:[#allocation3 + $0x74c] ss:$16 sps:$4 sm:$0xff]   ;;  %v7670_v56 = vld [vmem:[#allocation3 + $0x740] ss:$16 sps:$4 sm:$0xff]  }
  0xd6   : > { %1315 = vmatprep.subr.bf16.mxu0 %v7592_v58  ;;  %1401 = vmatprep.subr.bf16.mxu1 %v7594_v59  ;;  %v7673_v58 = vld [vmem:[#allocation3 + $0x748] ss:$16 sps:$4 sm:$0xff]   ;;  %v7678_v59 = vld [vmem:[#allocation3 + $0x764] ss:$16 sps:$4 sm:$0xff]  }
  0xd9   : > { %1316 = vmatpush1.bf16.msra.mxu0 %v7596_v60  ;;  %1402 = vmatpush1.bf16.msra.mxu1 %v7597_v61  ;;  %v7681_v60 = vld [vmem:[#allocation3 + $0x76c] ss:$16 sps:$4 sm:$0xff]   ;;  %v7676_v61 = vld [vmem:[#allocation3 + $0x760] ss:$16 sps:$4 sm:$0xff]  }
  0xda   : > { %1317 = vmatprep.subr.bf16.mxu0 %v7598_v62  ;;  %1403 = vmatprep.subr.bf16.mxu1 %v7600_v63  ;;  %v7679_v62 = vld [vmem:[#allocation3 + $0x768] ss:$16 sps:$4 sm:$0xff]   ;;  %v7684_v63 = vld [vmem:[#allocation3 + $0x784] ss:$16 sps:$4 sm:$0xff]  }
  0xdd   : > { %1318 = vmatpush1.bf16.msra.mxu0 %v7602_v1  ;;  %1404 = vmatpush1.bf16.msra.mxu1 %v7603_v2  ;;  %v7682_v1 = vld [vmem:[#allocation3 + $0x780] ss:$16 sps:$4 sm:$0xff]   ;;  %v7685_v2 = vld [vmem:[#allocation3 + $0x788] ss:$16 sps:$4 sm:$0xff]  }
  0xde   : > { %1319 = vmatprep.subr.bf16.mxu0 %v7604_v3  ;;  %1405 = vmatprep.subr.bf16.mxu1 %v7606_v4  ;;  %v7690_v3 = vld [vmem:[#allocation3 + $0x7a4] ss:$16 sps:$4 sm:$0xff]   ;;  %v7693_v4 = vld [vmem:[#allocation3 + $0x7ac] ss:$16 sps:$4 sm:$0xff]  }
  0xe1   : > { %1320 = vmatpush1.bf16.msra.mxu0 %v7608_v5  ;;  %1406 = vmatpush1.bf16.msra.mxu1 %v7609_v6  ;;  %v7688_v5 = vld [vmem:[#allocation3 + $0x7a0] ss:$16 sps:$4 sm:$0xff]   ;;  %v7691_v6 = vld [vmem:[#allocation3 + $0x7a8] ss:$16 sps:$4 sm:$0xff]  }
  0xe2   : > { %1332 = vmatprep.subr.bf16.mxu0 %v7612_v7  ;;  %1418 = vmatprep.subr.bf16.mxu1 %v7615_v8  ;;  %v7696_v7 = vld [vmem:[#allocation3 + $0x7c4] ss:$16 sps:$4 sm:$0xff]   ;;  %v7699_v8 = vld [vmem:[#allocation3 + $0x7cc] ss:$16 sps:$4 sm:$0xff]  }
  0xe4   : > { %1322 = vmatmul.mubr.bf16.vlgmr.msra.gmra.mrb[0].mxu0 %v9108_v57  ;;  %1408 = vmatmul.mubr.bf16.vlgmr.msra.gmra.mrb[0].mxu1 %v9108_v57 }
  0xe5   : > { %1333 = vmatpush1.bf16.msra.mxu0 %v7610_v9  ;;  %1419 = vmatpush1.bf16.msra.mxu1 %v7613_v10  ;;  %v7694_v9 = vld [vmem:[#allocation3 + $0x7c0] ss:$16 sps:$4 sm:$0xff]   ;;  %v7697_v10 = vld [vmem:[#allocation3 + $0x7c8] ss:$16 sps:$4 sm:$0xff]  }
  0xe6   : > { %1334 = vmatprep.subr.bf16.mxu0 %v7618_v11  ;;  %1420 = vmatprep.subr.bf16.mxu1 %v7621_v12  ;;  %v7702_v11 = vld [vmem:[#allocation3 + $0x7e4] ss:$16 sps:$4 sm:$0xff]   ;;  %v7705_v12 = vld [vmem:[#allocation3 + $0x7ec] ss:$16 sps:$4 sm:$0xff]  }
  0xe7   : > { %1364 = vmatprep.mubr.bf16.mxu0 %v9115_v37  ;;  %1450 = vmatprep.mubr.bf16.mxu1 %v9115_v37 }
  0xe9   : > { %1335 = vmatpush1.bf16.msra.mxu0 %v7616_v13  ;;  %1421 = vmatpush1.bf16.msra.mxu1 %v7619_v14  ;;  %v1479_v13 = vshrl.u32 %v9101_v50, 16  ;;  %v7700_v14 = vld [vmem:[#allocation3 + $0x7e0] ss:$16 sps:$4 sm:$0xff]  }
  0xea   : > { %1336 = vmatprep.subr.bf16.mxu0 %v7624_v15  ;;  %1422 = vmatprep.subr.bf16.mxu1 %v7627_v16  ;;  %v7703_v15 = vld [vmem:[#allocation3 + $0x7e8] ss:$16 sps:$4 sm:$0xff]   ;;  %v7708_v16 = vld [vmem:[#allocation3 + $0x4] ss:$16 sps:$4 sm:$0xff]  }
  0xed   : > { %1337 = vmatpush1.bf16.msra.mxu0 %v7622_v17  ;;  %1423 = vmatpush1.bf16.msra.mxu1 %v7625_v18  ;;  %v7711_v17 = vld [vmem:[#allocation3 + $0xc] ss:$16 sps:$4 sm:$0xff]   ;;  %v1481_v18 = vrot.slane %v1479_v13, 7  ;;  %v7786_v13 = vld [vmem:[#allocation3 + $0x1a4] ss:$16 sps:$4 sm:$0xff]  }
  0xee   : > { %1338 = vmatprep.subr.bf16.mxu0 %v7630_v19  ;;  %1424 = vmatprep.subr.bf16.mxu1 %v7633_v20  ;;  %v7706_v19 = vld [vmem:[#allocation3] ss:$16 sps:$4 sm:$0xff]   ;;  %v7709_v20 = vld [vmem:[#allocation3 + $0x8] ss:$16 sps:$4 sm:$0xff]  }
  0xf1   : > { %1339 = vmatpush1.bf16.msra.mxu0 %v7628_v21  ;;  %1425 = vmatpush1.bf16.msra.mxu1 %v7631_v22  ;;  %v1482_v21 = vshll.u32 %v9101_v50, 16  ;;  %v7714_v22 = vld [vmem:[#allocation3 + $0x24] ss:$16 sps:$4 sm:$0xff]  }
  0xf2   : > { %1340 = vmatprep.subr.bf16.mxu0 %v7636_v23  ;;  %1426 = vmatprep.subr.bf16.mxu1 %v7639_v24  ;;  %v7717_v23 = vld [vmem:[#allocation3 + $0x2c] ss:$16 sps:$4 sm:$0xff]   ;;  %v7720_v50 = vld [vmem:[#allocation3 + $0x44] ss:$16 sps:$4 sm:$0xff]  }
  0xf3   : > { %v385_v24 = vld [vmem:[#allocation2 + $0x8] sm:$0x80] }
  0xf5   : > { %1341 = vmatpush1.bf16.msra.mxu0 %v7634_v25  ;;  %1427 = vmatpush1.bf16.msra.mxu1 %v7637_v26  ;;  %v7712_v25 = vld [vmem:[#allocation3 + $0x20] ss:$16 sps:$4 sm:$0xff]   ;;  %v1475_v26 = vshrl.u32 %v385_v24, 16  ;;  %v7798_v24 = vld [vmem:[#allocation3 + $0x1e4] ss:$16 sps:$4 sm:$0xff]  }
  0xf6   : > { %1342 = vmatprep.subr.bf16.mxu0 %v7642_v27  ;;  %1428 = vmatprep.subr.bf16.mxu1 %v7645_v28  ;;  %v1484_v27 = vor.u32 %v1482_v21, %v1481_v18  ;;  %v7715_v28 = vld [vmem:[#allocation3 + $0x28] ss:$16 sps:$4 sm:$0xff]   ;;  %v1467_v18 = vshrl.u32 %v9108_v57, 16  ;;  %v7790_v21 = vld [vmem:[#allocation3 + $0x1c0] ss:$16 sps:$4 sm:$0xff]  }
  0xf9   : > { %1343 = vmatpush1.bf16.msra.mxu0 %v7640_v29  ;;  %1429 = vmatpush1.bf16.msra.mxu1 %v7643_v30  ;;  %v7723_v29 = vld [vmem:[#allocation3 + $0x4c] ss:$16 sps:$4 sm:$0xff]   ;;  %v1477_v30 = vrot.slane %v1475_v26, 7 }
  0xfa   : > { %1344 = vmatprep.subr.bf16.mxu0 %v7648_v31  ;;  %1430 = vmatprep.subr.bf16.mxu1 %v7651_v32  ;;  %v7718_v32 = vld [vmem:[#allocation3 + $0x40] ss:$16 sps:$4 sm:$0xff]  }
  0xfb   : > { %v1485_v31 = vsel %vm1461_vm0, %v1477_v30, %v1484_v27  ;;  %v1470_v27 = vshll.u32 %v9108_v57, 16  ;;  %v1506_v30 = vshll.u32 %v9115_v37, 16  ;;  %v7805_v57 = vld [vmem:[#allocation3 + $0x208] ss:$16 sps:$4 sm:$0xff]  }
  0xfd   : > { %1345 = vmatpush1.bf16.msra.mxu0 %v7646_v35  ;;  %1431 = vmatpush1.bf16.msra.mxu1 %v7649_v36  ;;  %v7729_v35 = vld [vmem:[#allocation3 + $0x6c] ss:$16 sps:$4 sm:$0xff]   ;;  %v7724_v36 = vld [vmem:[#allocation3 + $0x60] ss:$16 sps:$4 sm:$0xff]  }
  0xfe   : > { %1346 = vmatprep.subr.bf16.mxu0 %v7654_v38  ;;  %1432 = vmatprep.subr.bf16.mxu1 %v7657_v39  ;;  %v7727_v38 = vld [vmem:[#allocation3 + $0x68] ss:$16 sps:$4 sm:$0xff]   ;;  %v7732_v39 = vld [vmem:[#allocation3 + $0x84] ss:$16 sps:$4 sm:$0xff]  }
 0x101   : > { %1347 = vmatpush1.bf16.msra.mxu0 %v7652_v42  ;;  %1433 = vmatpush1.bf16.msra.mxu1 %v7655_v43  ;;  %v7733_v42 = vld [vmem:[#allocation3 + $0x88] ss:$16 sps:$4 sm:$0xff]   ;;  %v7738_v43 = vld [vmem:[#allocation3 + $0xa4] ss:$16 sps:$4 sm:$0xff]  }
 0x102   : > { %1348 = vmatprep.subr.bf16.mxu0 %v7660_v45  ;;  %1434 = vmatprep.subr.bf16.mxu1 %v7663_v46  ;;  %v7736_v45 = vld [vmem:[#allocation3 + $0xa0] ss:$16 sps:$4 sm:$0xff]   ;;  %v7739_v46 = vld [vmem:[#allocation3 + $0xa8] ss:$16 sps:$4 sm:$0xff]  }
 0x105   : > { %1349 = vmatpush1.bf16.msra.mxu0 %v7658_v47  ;;  %1435 = vmatpush1.bf16.msra.mxu1 %v7661_v48  ;;  %v7744_v47 = vld [vmem:[#allocation3 + $0xc4] ss:$16 sps:$4 sm:$0xff]   ;;  %v7747_v48 = vld [vmem:[#allocation3 + $0xcc] ss:$16 sps:$4 sm:$0xff]  }
 0x106   : > { %1350 = vmatprep.subr.bf16.mxu0 %v7666_v49  ;;  %1436 = vmatprep.subr.bf16.mxu1 %v7669_v51  ;;  %v7742_v49 = vld [vmem:[#allocation3 + $0xc0] ss:$16 sps:$4 sm:$0xff]   ;;  %v7745_v51 = vld [vmem:[#allocation3 + $0xc8] ss:$16 sps:$4 sm:$0xff]  }
 0x109   : > { %1351 = vmatpush1.bf16.msra.mxu0 %v7664_v52  ;;  %1437 = vmatpush1.bf16.msra.mxu1 %v7667_v53  ;;  %v7750_v52 = vld [vmem:[#allocation3 + $0xe4] ss:$16 sps:$4 sm:$0xff]   ;;  %v7753_v53 = vld [vmem:[#allocation3 + $0xec] ss:$16 sps:$4 sm:$0xff]  }
 0x10a   : > { %1352 = vmatprep.subr.bf16.mxu0 %v7672_v54  ;;  %1438 = vmatprep.subr.bf16.mxu1 %v7675_v55  ;;  %v7748_v54 = vld [vmem:[#allocation3 + $0xe0] ss:$16 sps:$4 sm:$0xff]   ;;  %v7751_v55 = vld [vmem:[#allocation3 + $0xe8] ss:$16 sps:$4 sm:$0xff]  }
 0x10d   : > { %1353 = vmatpush1.bf16.msra.mxu0 %v7670_v56  ;;  %1439 = vmatpush1.bf16.msra.mxu1 %v7673_v58  ;;  %v7756_v56 = vld [vmem:[#allocation3 + $0x104] ss:$16 sps:$4 sm:$0xff]   ;;  %v7759_v58 = vld [vmem:[#allocation3 + $0x10c] ss:$16 sps:$4 sm:$0xff]  }
 0x10e   : > { %1354 = vmatprep.subr.bf16.mxu0 %v7678_v59  ;;  %1440 = vmatprep.subr.bf16.mxu1 %v7681_v60  ;;  %v7754_v59 = vld [vmem:[#allocation3 + $0x100] ss:$16 sps:$4 sm:$0xff]   ;;  %v7757_v60 = vld [vmem:[#allocation3 + $0x108] ss:$16 sps:$4 sm:$0xff]  }
 0x111   : > { %1355 = vmatpush1.bf16.msra.mxu0 %v7676_v61  ;;  %1441 = vmatpush1.bf16.msra.mxu1 %v7679_v62  ;;  %v7762_v61 = vld [vmem:[#allocation3 + $0x124] ss:$16 sps:$4 sm:$0xff]   ;;  %v7765_v62 = vld [vmem:[#allocation3 + $0x12c] ss:$16 sps:$4 sm:$0xff]  }
 0x112   : > { %1356 = vmatprep.subr.bf16.mxu0 %v7684_v63  ;;  %1442 = vmatprep.subr.bf16.mxu1 %v7687_v0  ;;  %v7760_v63 = vld [vmem:[#allocation3 + $0x120] ss:$16 sps:$4 sm:$0xff]   ;;  %v7763_v0 = vld [vmem:[#allocation3 + $0x128] ss:$16 sps:$4 sm:$0xff]  }
 0x115   : > { %1357 = vmatpush1.bf16.msra.mxu0 %v7682_v1  ;;  %1443 = vmatpush1.bf16.msra.mxu1 %v7685_v2  ;;  %v7768_v1 = vld [vmem:[#allocation3 + $0x144] ss:$16 sps:$4 sm:$0xff]   ;;  %v7771_v2 = vld [vmem:[#allocation3 + $0x14c] ss:$16 sps:$4 sm:$0xff]  }
 0x116   : > { %1358 = vmatprep.subr.bf16.mxu0 %v7690_v3  ;;  %1444 = vmatprep.subr.bf16.mxu1 %v7693_v4  ;;  %v7766_v3 = vld [vmem:[#allocation3 + $0x140] ss:$16 sps:$4 sm:$0xff]   ;;  %v7769_v4 = vld [vmem:[#allocation3 + $0x148] ss:$16 sps:$4 sm:$0xff]  }
 0x119   : > { %1359 = vmatpush1.bf16.msra.mxu0 %v7688_v5  ;;  %1445 = vmatpush1.bf16.msra.mxu1 %v7691_v6  ;;  %v7774_v5 = vld [vmem:[#allocation3 + $0x164] ss:$16 sps:$4 sm:$0xff]   ;;  %v7777_v6 = vld [vmem:[#allocation3 + $0x16c] ss:$16 sps:$4 sm:$0xff]  }
 0x11a   : > { %1360 = vmatprep.subr.bf16.mxu0 %v7696_v7  ;;  %1446 = vmatprep.subr.bf16.mxu1 %v7699_v8  ;;  %v7772_v7 = vld [vmem:[#allocation3 + $0x160] ss:$16 sps:$4 sm:$0xff]   ;;  %v7775_v8 = vld [vmem:[#allocation3 + $0x168] ss:$16 sps:$4 sm:$0xff]  }
 0x11d   : > { %1361 = vmatpush1.bf16.msra.mxu0 %v7694_v9  ;;  %1447 = vmatpush1.bf16.msra.mxu1 %v7697_v10  ;;  %v7780_v9 = vld [vmem:[#allocation3 + $0x184] ss:$16 sps:$4 sm:$0xff]   ;;  %v7783_v10 = vld [vmem:[#allocation3 + $0x18c] ss:$16 sps:$4 sm:$0xff]  }
 0x11e   : > { %1362 = vmatprep.subr.bf16.mxu0 %v7702_v11  ;;  %1448 = vmatprep.subr.bf16.mxu1 %v7705_v12  ;;  %v7778_v11 = vld [vmem:[#allocation3 + $0x180] ss:$16 sps:$4 sm:$0xff]   ;;  %v7781_v12 = vld [vmem:[#allocation3 + $0x188] ss:$16 sps:$4 sm:$0xff]  }
 0x121   : > { %1363 = vmatpush1.bf16.msra.mxu0 %v7700_v14  ;;  %1449 = vmatpush1.bf16.msra.mxu1 %v7703_v15  ;;  %v7789_v14 = vld [vmem:[#allocation3 + $0x1ac] ss:$16 sps:$4 sm:$0xff]   ;;  %v7784_v15 = vld [vmem:[#allocation3 + $0x1a0] ss:$16 sps:$4 sm:$0xff]  }
 0x122   : > { %2154 = vmatprep.subr.bf16.mxu0 %v7708_v16  ;;  %2240 = vmatprep.subr.bf16.mxu1 %v7711_v17  ;;  %v7787_v16 = vld [vmem:[#allocation3 + $0x1a8] ss:$16 sps:$4 sm:$0xff]   ;;  %v7792_v17 = vld [vmem:[#allocation3 + $0x1c4] ss:$16 sps:$4 sm:$0xff]  }
 0x124   : > { %1365 = vmatmul.mubr.bf16.vlgmr.msra.gmra.mrb[0].mxu0 %v9122_v44  ;;  %1451 = vmatmul.mubr.bf16.vlgmr.msra.gmra.mrb[0].mxu1 %v9122_v44  ;;  %v7741_v44 = vld [vmem:[#allocation3 + $0xac] ss:$16 sps:$4 sm:$0xff]  }
 0x125   : > { %2155 = vmatpush1.bf16.msra.mxu0 %v7706_v19  ;;  %2241 = vmatpush1.bf16.msra.mxu1 %v7709_v20  ;;  %v7795_v19 = vld [vmem:[#allocation3 + $0x1cc] ss:$16 sps:$4 sm:$0xff]   ;;  %v384_v20 = vld [vmem:[#allocation2] sm:$0x80] }
 0x126   : > { %2156 = vmatprep.subr.bf16.mxu0 %v7714_v22  ;;  %2242 = vmatprep.subr.bf16.mxu1 %v7717_v23  ;;  %v1503_v22 = vshrl.u32 %v9115_v37, 16  ;;  %v7793_v23 = vld [vmem:[#allocation3 + $0x1c8] ss:$16 sps:$4 sm:$0xff]   ;;  %v1463_v26 = vshrl.u32 %v384_v20, 16  ;;  %v7810_v37 = vld [vmem:[#allocation3 + $0x224] ss:$16 sps:$4 sm:$0xff]  }
 0x127   : > { %2186 = vmatprep.mubr.bf16.mxu0 %v1485_v31  ;;  %2272 = vmatprep.mubr.bf16.mxu1 %v1485_v31  ;;  %v7796_v31 = vld [vmem:[#allocation3 + $0x1e0] ss:$16 sps:$4 sm:$0xff]   ;;  %v7865_v20 = vld [vmem:[#allocation3 + $0x348] ss:$16 sps:$4 sm:$0xff]  }
 0x129   : > { %2157 = vmatpush1.bf16.msra.mxu0 %v7712_v25  ;;  %2243 = vmatpush1.bf16.msra.mxu1 %v7715_v28  ;;  %v1469_v25 = vrot.slane %v1467_v18, 7  ;;  %v387_v28 = vld [vmem:[#allocation2 + $0x18] sm:$0x80] }
 0x12a   : > { %2158 = vmatprep.subr.bf16.mxu0 %v7720_v50  ;;  %2244 = vmatprep.subr.bf16.mxu1 %v7723_v29  ;;  %v7801_v50 = vld [vmem:[#allocation3 + $0x1ec] ss:$16 sps:$4 sm:$0xff]   ;;  %v1505_v29 = vrot.slane %v1503_v22, 7 }
 0x12b   : > { %v7867_v18 = vld [vmem:[#allocation3 + $0x34c] ss:$16 sps:$4 sm:$0xff]  }
 0x12c   : > { %v7873_v22 = vld [vmem:[#allocation3 + $0x36c] ss:$16 sps:$4 sm:$0xff]  }
 0x12d   : > { %2159 = vmatpush1.bf16.msra.mxu0 %v7718_v32  ;;  %2245 = vmatpush1.bf16.msra.mxu1 %v7721_v33  ;;  %v7799_v32 = vld [vmem:[#allocation3 + $0x1e8] ss:$16 sps:$4 sm:$0xff]   ;;  %v1499_v33 = vshrl.u32 %v387_v28, 16 }
 0x12e   : > { %2160 = vmatprep.subr.bf16.mxu0 %v7726_v34  ;;  %2246 = vmatprep.subr.bf16.mxu1 %v7729_v35  ;;  %v7804_v34 = vld [vmem:[#allocation3 + $0x204] ss:$16 sps:$4 sm:$0xff]   ;;  %v1465_v35 = vrot.slane %v1463_v26, 7  ;;  %v7879_v26 = vld [vmem:[#allocation3 + $0x38c] ss:$16 sps:$4 sm:$0xff]  }
 0x12f   : > { %v7877_v28 = vld [vmem:[#allocation3 + $0x388] ss:$16 sps:$4 sm:$0xff]  }
 0x131   : > { %2161 = vmatpush1.bf16.msra.mxu0 %v7724_v36  ;;  %2247 = vmatpush1.bf16.msra.mxu1 %v7727_v38  ;;  %v1472_v36 = vor.u32 %v1470_v27, %v1469_v25  ;;  %v7807_v38 = vld [vmem:[#allocation3 + $0x20c] ss:$16 sps:$4 sm:$0xff]   ;;  %v7876_v25 = vld [vmem:[#allocation3 + $0x384] ss:$16 sps:$4 sm:$0xff]   ;;  %v7874_v27 = vld [vmem:[#allocation3 + $0x380] ss:$16 sps:$4 sm:$0xff]  }
 0x132   : > { %2162 = vmatprep.subr.bf16.mxu0 %v7732_v39  ;;  %2248 = vmatprep.subr.bf16.mxu1 %v7735_v40  ;;  %v7802_v39 = vld [vmem:[#allocation3 + $0x200] ss:$16 sps:$4 sm:$0xff]   ;;  %v1501_v40 = vrot.slane %v1499_v33, 7  ;;  %v7883_v33 = vld [vmem:[#allocation3 + $0x3a8] ss:$16 sps:$4 sm:$0xff]  }
 0x135   : > { %2163 = vmatpush1.bf16.msra.mxu0 %v7730_v41  ;;  %2249 = vmatpush1.bf16.msra.mxu1 %v7733_v42  ;;  %v1508_v41 = vor.u32 %v1506_v30, %v1505_v29  ;;  %v1473_v42 = vsel %vm1461_vm0, %v1465_v35, %v1472_v36  ;;  %v7885_v29 = vld [vmem:[#allocation3 + $0x3ac] ss:$16 sps:$4 sm:$0xff]   ;;  %v7880_v30 = vld [vmem:[#allocation3 + $0x3a0] ss:$16 sps:$4 sm:$0xff]  }
 0x136   : > { %2164 = vmatprep.subr.bf16.mxu0 %v7738_v43  ;;  %2250 = vmatprep.subr.bf16.mxu1 %v7741_v44  ;;  %v7813_v43 = vld [vmem:[#allocation3 + $0x22c] ss:$16 sps:$4 sm:$0xff]   ;;  %v7808_v44 = vld [vmem:[#allocation3 + $0x220] ss:$16 sps:$4 sm:$0xff]  }
 0x137   : > { %v7891_v35 = vld [vmem:[#allocation3 + $0x3cc] ss:$16 sps:$4 sm:$0xff]  }
 0x138   : > { %v2327_v36 = vld [vmem:[#allocation2 + $0x28] sm:$0xff] }
 0x139   : > { %2165 = vmatpush1.bf16.msra.mxu0 %v7736_v45  ;;  %2251 = vmatpush1.bf16.msra.mxu1 %v7739_v46  ;;  %v7811_v45 = vld [vmem:[#allocation3 + $0x228] ss:$16 sps:$4 sm:$0xff]   ;;  %v1509_v46 = vsel %vm1461_vm0, %v1501_v40, %v1508_v41  ;;  %v7886_v40 = vld [vmem:[#allocation3 + $0x3c0] ss:$16 sps:$4 sm:$0xff]  }
 0x13a   : > { %2166 = vmatprep.subr.bf16.mxu0 %v7744_v47  ;;  %2252 = vmatprep.subr.bf16.mxu1 %v7747_v48  ;;  %v7816_v47 = vld [vmem:[#allocation3 + $0x244] ss:$16 sps:$4 sm:$0xff]   ;;  %v7819_v48 = vld [vmem:[#allocation3 + $0x24c] ss:$16 sps:$4 sm:$0xff]   ;;  %v7889_v41 = vld [vmem:[#allocation3 + $0x3c8] ss:$16 sps:$4 sm:$0xff]  }
 0x13d   : > { %2167 = vmatpush1.bf16.msra.mxu0 %v7742_v49  ;;  %2253 = vmatpush1.bf16.msra.mxu1 %v7745_v51  ;;  %v7814_v49 = vld [vmem:[#allocation3 + $0x240] ss:$16 sps:$4 sm:$0xff]   ;;  %v7817_v51 = vld [vmem:[#allocation3 + $0x248] ss:$16 sps:$4 sm:$0xff]  }
 0x13e   : > { %2168 = vmatprep.subr.bf16.mxu0 %v7750_v52  ;;  %2254 = vmatprep.subr.bf16.mxu1 %v7753_v53  ;;  %v7822_v52 = vld [vmem:[#allocation3 + $0x264] ss:$16 sps:$4 sm:$0xff]   ;;  %v7825_v53 = vld [vmem:[#allocation3 + $0x26c] ss:$16 sps:$4 sm:$0xff]  }
 0x141   : > { %2169 = vmatpush1.bf16.msra.mxu0 %v7748_v54  ;;  %2255 = vmatpush1.bf16.msra.mxu1 %v7751_v55  ;;  %v7820_v54 = vld [vmem:[#allocation3 + $0x260] ss:$16 sps:$4 sm:$0xff]   ;;  %v7823_v55 = vld [vmem:[#allocation3 + $0x268] ss:$16 sps:$4 sm:$0xff]  }
 0x142   : > { %2170 = vmatprep.subr.bf16.mxu0 %v7756_v56  ;;  %2256 = vmatprep.subr.bf16.mxu1 %v7759_v58  ;;  %v7828_v56 = vld [vmem:[#allocation3 + $0x284] ss:$16 sps:$4 sm:$0xff]   ;;  %v7831_v58 = vld [vmem:[#allocation3 + $0x28c] ss:$16 sps:$4 sm:$0xff]  }
 0x145   : > { %2171 = vmatpush1.bf16.msra.mxu0 %v7754_v59  ;;  %2257 = vmatpush1.bf16.msra.mxu1 %v7757_v60  ;;  %v7826_v59 = vld [vmem:[#allocation3 + $0x280] ss:$16 sps:$4 sm:$0xff]   ;;  %v7829_v60 = vld [vmem:[#allocation3 + $0x288] ss:$16 sps:$4 sm:$0xff]  }
 0x146   : > { %2172 = vmatprep.subr.bf16.mxu0 %v7762_v61  ;;  %2258 = vmatprep.subr.bf16.mxu1 %v7765_v62  ;;  %v7834_v61 = vld [vmem:[#allocation3 + $0x2a4] ss:$16 sps:$4 sm:$0xff]   ;;  %v7837_v62 = vld [vmem:[#allocation3 + $0x2ac] ss:$16 sps:$4 sm:$0xff]  }
 0x149   : > { %2173 = vmatpush1.bf16.msra.mxu0 %v7760_v63  ;;  %2259 = vmatpush1.bf16.msra.mxu1 %v7763_v0  ;;  %v7832_v63 = vld [vmem:[#allocation3 + $0x2a0] ss:$16 sps:$4 sm:$0xff]   ;;  %v7835_v0 = vld [vmem:[#allocation3 + $0x2a8] ss:$16 sps:$4 sm:$0xff]  }
 0x14a   : > { %2174 = vmatprep.subr.bf16.mxu0 %v7768_v1  ;;  %2260 = vmatprep.subr.bf16.mxu1 %v7771_v2  ;;  %v7840_v1 = vld [vmem:[#allocation3 + $0x2c4] ss:$16 sps:$4 sm:$0xff]   ;;  %v7843_v2 = vld [vmem:[#allocation3 + $0x2cc] ss:$16 sps:$4 sm:$0xff]  }
 0x14d   : > { %2175 = vmatpush1.bf16.msra.mxu0 %v7766_v3  ;;  %2261 = vmatpush1.bf16.msra.mxu1 %v7769_v4  ;;  %v7838_v3 = vld [vmem:[#allocation3 + $0x2c0] ss:$16 sps:$4 sm:$0xff]   ;;  %v7841_v4 = vld [vmem:[#allocation3 + $0x2c8] ss:$16 sps:$4 sm:$0xff]  }
 0x14e   : > { %2176 = vmatprep.subr.bf16.mxu0 %v7774_v5  ;;  %2262 = vmatprep.subr.bf16.mxu1 %v7777_v6  ;;  %v7846_v5 = vld [vmem:[#allocation3 + $0x2e4] ss:$16 sps:$4 sm:$0xff]   ;;  %v7849_v6 = vld [vmem:[#allocation3 + $0x2ec] ss:$16 sps:$4 sm:$0xff]  }
 0x151   : > { %2177 = vmatpush1.bf16.msra.mxu0 %v7772_v7  ;;  %2263 = vmatpush1.bf16.msra.mxu1 %v7775_v8  ;;  %v7844_v7 = vld [vmem:[#allocation3 + $0x2e0] ss:$16 sps:$4 sm:$0xff]   ;;  %v7847_v8 = vld [vmem:[#allocation3 + $0x2e8] ss:$16 sps:$4 sm:$0xff]  }
 0x152   : > { %2178 = vmatprep.subr.bf16.mxu0 %v7780_v9  ;;  %2264 = vmatprep.subr.bf16.mxu1 %v7783_v10  ;;  %v7852_v9 = vld [vmem:[#allocation3 + $0x304] ss:$16 sps:$4 sm:$0xff]   ;;  %v7855_v10 = vld [vmem:[#allocation3 + $0x30c] ss:$16 sps:$4 sm:$0xff]  }
 0x155   : > { %2179 = vmatpush1.bf16.msra.mxu0 %v7778_v11  ;;  %2265 = vmatpush1.bf16.msra.mxu1 %v7781_v12  ;;  %v7850_v11 = vld [vmem:[#allocation3 + $0x300] ss:$16 sps:$4 sm:$0xff]   ;;  %v7853_v12 = vld [vmem:[#allocation3 + $0x308] ss:$16 sps:$4 sm:$0xff]  }
 0x156   : > { %2180 = vmatprep.subr.bf16.mxu0 %v7786_v13  ;;  %2266 = vmatprep.subr.bf16.mxu1 %v7789_v14  ;;  %v7858_v13 = vld [vmem:[#allocation3 + $0x324] ss:$16 sps:$4 sm:$0xff]   ;;  %v7861_v14 = vld [vmem:[#allocation3 + $0x32c] ss:$16 sps:$4 sm:$0xff]  }
 0x159   : > { %2181 = vmatpush1.bf16.msra.mxu0 %v7784_v15  ;;  %2267 = vmatpush1.bf16.msra.mxu1 %v7787_v16  ;;  %v7856_v15 = vld [vmem:[#allocation3 + $0x320] ss:$16 sps:$4 sm:$0xff]   ;;  %v7859_v16 = vld [vmem:[#allocation3 + $0x328] ss:$16 sps:$4 sm:$0xff]  }
 0x15a   : > { %2182 = vmatprep.subr.bf16.mxu0 %v7792_v17  ;;  %2268 = vmatprep.subr.bf16.mxu1 %v7795_v19  ;;  %v7864_v17 = vld [vmem:[#allocation3 + $0x344] ss:$16 sps:$4 sm:$0xff]   ;;  %v7862_v19 = vld [vmem:[#allocation3 + $0x340] ss:$16 sps:$4 sm:$0xff]  }
 0x15d   : > { %2183 = vmatpush1.bf16.msra.mxu0 %v7790_v21  ;;  %2269 = vmatpush1.bf16.msra.mxu1 %v7793_v23  ;;  %v7870_v21 = vld [vmem:[#allocation3 + $0x364] ss:$16 sps:$4 sm:$0xff]   ;;  %v7868_v23 = vld [vmem:[#allocation3 + $0x360] ss:$16 sps:$4 sm:$0xff]  }
 0x15e   : > { %2184 = vmatprep.subr.bf16.mxu0 %v7798_v24  ;;  %2270 = vmatprep.subr.bf16.mxu1 %v7801_v50  ;;  %v7871_v24 = vld [vmem:[#allocation3 + $0x368] ss:$16 sps:$4 sm:$0xff]   ;;  %v7882_v50 = vld [vmem:[#allocation3 + $0x3a4] ss:$16 sps:$4 sm:$0xff]  }
 0x161   : > { %2185 = vmatpush1.bf16.msra.mxu0 %v7796_v31  ;;  %2271 = vmatpush1.bf16.msra.mxu1 %v7799_v32  ;;  %v8666_v31 = vld [vmem:[#allocation2 + $0x30] sm:$0xff] }
 0x162   : > { %2197 = vmatprep.subr.bf16.mxu0 %v7804_v34  ;;  %2283 = vmatprep.subr.bf16.mxu1 %v7807_v38  ;;  %v1491_v32 = vshrl.u32 %v8666_v31, 16  ;;  %v7888_v34 = vld [vmem:[#allocation3 + $0x3c4] ss:$16 sps:$4 sm:$0xff]  }
 0x163   : > { %v386_v38 = vld [vmem:[#allocation2 + $0x10] sm:$0x80] }
 0x164   : > { %2187 = vmatmul.mubr.bf16.vlgmr.msra.gmra.mrb[0].mxu0 %v1473_v42  ;;  %2273 = vmatmul.mubr.bf16.vlgmr.msra.gmra.mrb[0].mxu1 %v1473_v42  ;;  %v2479_v42 = vshll.u32 %v2327_v36, 16 }
 0x165   : > { %2198 = vmatpush1.bf16.msra.mxu0 %v7802_v39  ;;  %2284 = vmatpush1.bf16.msra.mxu1 %v7805_v57  ;;  %v1493_v39 = vrot.slane %v1491_v32, 7  ;;  %v1494_v57 = vshll.u32 %v8666_v31, 16  ;;  %v7957_v31 = vld [vmem:[#allocation3 + $0x92c] ss:$16 sps:$4 sm:$0xff]   ;;  %v7952_v32 = vld [vmem:[#allocation3 + $0x920] ss:$16 sps:$4 sm:$0xff]  }
 0x166   : > { %2199 = vmatprep.subr.bf16.mxu0 %v7810_v37  ;;  %2285 = vmatprep.subr.bf16.mxu1 %v7813_v43  ;;  %v7894_v37 = vld [vmem:[#allocation3 + $0x3e4] ss:$16 sps:$4 sm:$0xff]   ;;  %v1487_v43 = vshrl.u32 %v386_v38, 16  ;;  %v7961_v38 = vld [vmem:[#allocation3 + $0x948] ss:$16 sps:$4 sm:$0xff]  }
 0x167   : > { %2229 = vmatprep.mubr.bf16.mxu0 %v1509_v46  ;;  %2315 = vmatprep.mubr.bf16.mxu1 %v1509_v46  ;;  %v7892_v46 = vld [vmem:[#allocation3 + $0x3e0] ss:$16 sps:$4 sm:$0xff]  }
 0x169   : > { %2200 = vmatpush1.bf16.msra.mxu0 %v7808_v44  ;;  %2286 = vmatpush1.bf16.msra.mxu1 %v7811_v45  ;;  %v2331_v44 = vld [vmem:[#allocation2 + $0x48] sm:$0x1]  ;;  %v7897_v45 = vld [vmem:[#allocation3 + $0x3ec] ss:$16 sps:$4 sm:$0xff]  }
 0x16a   : > { %2201 = vmatprep.subr.bf16.mxu0 %v7816_v47  ;;  %2287 = vmatprep.subr.bf16.mxu1 %v7819_v48  ;;  %v2477_v47 = vshrl.u32 %v2327_v36, 16  ;;  %v2481_v48 = vrot.slane %v2479_v42, 1  ;;  %v7958_v36 = vld [vmem:[#allocation3 + $0x940] ss:$16 sps:$4 sm:$0xff]   ;;  %v7972_v42 = vld [vmem:[#allocation3 + $0x984] ss:$16 sps:$4 sm:$0xff]  }
 0x16d   : > { %2202 = vmatpush1.bf16.msra.mxu0 %v7814_v49  ;;  %2288 = vmatpush1.bf16.msra.mxu1 %v7817_v51  ;;  %v2484_v49 = vshll.u32 %v2331_v44, 16  ;;  %v7895_v51 = vld [vmem:[#allocation3 + $0x3e8] ss:$16 sps:$4 sm:$0xff]  }
 0x16e   : > { %2203 = vmatprep.subr.bf16.mxu0 %v7822_v52  ;;  %2289 = vmatprep.subr.bf16.mxu1 %v7825_v53  ;;  %v7900_v52 = vld [vmem:[#allocation3 + $0x804] ss:$16 sps:$4 sm:$0xff]   ;;  %v1489_v53 = vrot.slane %v1487_v43, 7  ;;  %v7970_v43 = vld [vmem:[#allocation3 + $0x980] ss:$16 sps:$4 sm:$0xff]  }
 0x16f   : > { %v7973_v44 = vld [vmem:[#allocation3 + $0x988] ss:$16 sps:$4 sm:$0xff]  }
 0x171   : > { %2204 = vmatpush1.bf16.msra.mxu0 %v7820_v54  ;;  %2290 = vmatpush1.bf16.msra.mxu1 %v7823_v55  ;;  %v1496_v54 = vor.u32 %v1494_v57, %v1493_v39  ;;  %v7903_v55 = vld [vmem:[#allocation3 + $0x80c] ss:$16 sps:$4 sm:$0xff]   ;;  %v7966_v39 = vld [vmem:[#allocation3 + $0x964] ss:$16 sps:$4 sm:$0xff]  }
 0x172   : > { %2205 = vmatprep.subr.bf16.mxu0 %v7828_v56  ;;  %2291 = vmatprep.subr.bf16.mxu1 %v7831_v58  ;;  %v7898_v56 = vld [vmem:[#allocation3 + $0x800] ss:$16 sps:$4 sm:$0xff]   ;;  %v7901_v58 = vld [vmem:[#allocation3 + $0x808] ss:$16 sps:$4 sm:$0xff]   ;;  %v7969_v57 = vld [vmem:[#allocation3 + $0x96c] ss:$16 sps:$4 sm:$0xff]  }
 0x175   : > { %2206 = vmatpush1.bf16.msra.mxu0 %v7826_v59  ;;  %2292 = vmatpush1.bf16.msra.mxu1 %v7829_v60  ;;  %v2482_v59 = vor.u32 %v2481_v48, %v2477_v47  ;;  %v2486_v60 = vrot.slane %v2484_v49, 1  ;;  %v2326_v47 = vld [vmem:[#allocation2 + $0x20] sm:$0xff]  ;;  %v7979_v49 = vld [vmem:[#allocation3 + $0x9a8] ss:$16 sps:$4 sm:$0xff]  }
 0x176   : > { %2207 = vmatprep.subr.bf16.mxu0 %v7834_v61  ;;  %2293 = vmatprep.subr.bf16.mxu1 %v7837_v62  ;;  %v1497_v61 = vsel %vm1461_vm0, %v1489_v53, %v1496_v54  ;;  %v7906_v62 = vld [vmem:[#allocation3 + $0x824] ss:$16 sps:$4 sm:$0xff]   ;;  %v7976_v48 = vld [vmem:[#allocation3 + $0x9a0] ss:$16 sps:$4 sm:$0xff]   ;;  %v7987_v53 = vld [vmem:[#allocation3 + $0x9cc] ss:$16 sps:$4 sm:$0xff]  }
 0x177   : > { %v2330_v54 = vld [vmem:[#allocation2 + $0x40] sm:$0x1] }
 0x179   : > { %2208 = vmatpush1.bf16.msra.mxu0 %v7832_v63  ;;  %2294 = vmatpush1.bf16.msra.mxu1 %v7835_v0  ;;  %v7909_v63 = vld [vmem:[#allocation3 + $0x82c] ss:$16 sps:$4 sm:$0xff]   ;;  %v7904_v0 = vld [vmem:[#allocation3 + $0x820] ss:$16 sps:$4 sm:$0xff]  }
 0x17a   : > { %2209 = vmatprep.subr.bf16.mxu0 %v7840_v1  ;;  %2295 = vmatprep.subr.bf16.mxu1 %v7843_v2  ;;  %v2487_v1 = vsel %vm2463_vm1, %v2482_v59, %v2486_v60  ;;  %v7907_v2 = vld [vmem:[#allocation3 + $0x828] ss:$16 sps:$4 sm:$0xff]   ;;  %v7990_v60 = vld [vmem:[#allocation3 + $0x9e4] ss:$16 sps:$4 sm:$0xff]  }
 0x17b   : > { %v2333_v59 = vld [vmem:[#allocation2 + $0x58] sm:$0x1] }
 0x17d   : > { %2210 = vmatpush1.bf16.msra.mxu0 %v7838_v3  ;;  %2296 = vmatpush1.bf16.msra.mxu1 %v7841_v4  ;;  %v7912_v3 = vld [vmem:[#allocation3 + $0x844] ss:$16 sps:$4 sm:$0xff]   ;;  %v7915_v4 = vld [vmem:[#allocation3 + $0x84c] ss:$16 sps:$4 sm:$0xff]  }
 0x17e   : > { %2211 = vmatprep.subr.bf16.mxu0 %v7846_v5  ;;  %2297 = vmatprep.subr.bf16.mxu1 %v7849_v6  ;;  %v7910_v5 = vld [vmem:[#allocation3 + $0x840] ss:$16 sps:$4 sm:$0xff]   ;;  %v7913_v6 = vld [vmem:[#allocation3 + $0x848] ss:$16 sps:$4 sm:$0xff]  }
 0x181   : > { %2212 = vmatpush1.bf16.msra.mxu0 %v7844_v7  ;;  %2298 = vmatpush1.bf16.msra.mxu1 %v7847_v8  ;;  %v7918_v7 = vld [vmem:[#allocation3 + $0x864] ss:$16 sps:$4 sm:$0xff]   ;;  %v7921_v8 = vld [vmem:[#allocation3 + $0x86c] ss:$16 sps:$4 sm:$0xff]  }
 0x182   : > { %2213 = vmatprep.subr.bf16.mxu0 %v7852_v9  ;;  %2299 = vmatprep.subr.bf16.mxu1 %v7855_v10  ;;  %v7916_v9 = vld [vmem:[#allocation3 + $0x860] ss:$16 sps:$4 sm:$0xff]   ;;  %v7919_v10 = vld [vmem:[#allocation3 + $0x868] ss:$16 sps:$4 sm:$0xff]  }
 0x185   : > { %2214 = vmatpush1.bf16.msra.mxu0 %v7850_v11  ;;  %2300 = vmatpush1.bf16.msra.mxu1 %v7853_v12  ;;  %v7924_v11 = vld [vmem:[#allocation3 + $0x884] ss:$16 sps:$4 sm:$0xff]   ;;  %v7927_v12 = vld [vmem:[#allocation3 + $0x88c] ss:$16 sps:$4 sm:$0xff]  }
 0x186   : > { %2215 = vmatprep.subr.bf16.mxu0 %v7858_v13  ;;  %2301 = vmatprep.subr.bf16.mxu1 %v7861_v14  ;;  %v7922_v13 = vld [vmem:[#allocation3 + $0x880] ss:$16 sps:$4 sm:$0xff]   ;;  %v7925_v14 = vld [vmem:[#allocation3 + $0x888] ss:$16 sps:$4 sm:$0xff]  }
 0x189   : > { %2216 = vmatpush1.bf16.msra.mxu0 %v7856_v15  ;;  %2302 = vmatpush1.bf16.msra.mxu1 %v7859_v16  ;;  %v7930_v15 = vld [vmem:[#allocation3 + $0x8a4] ss:$16 sps:$4 sm:$0xff]   ;;  %v7933_v16 = vld [vmem:[#allocation3 + $0x8ac] ss:$16 sps:$4 sm:$0xff]  }
 0x18a   : > { %2217 = vmatprep.subr.bf16.mxu0 %v7864_v17  ;;  %2303 = vmatprep.subr.bf16.mxu1 %v7867_v18  ;;  %v7928_v17 = vld [vmem:[#allocation3 + $0x8a0] ss:$16 sps:$4 sm:$0xff]   ;;  %v7931_v18 = vld [vmem:[#allocation3 + $0x8a8] ss:$16 sps:$4 sm:$0xff]  }
 0x18d   : > { %2218 = vmatpush1.bf16.msra.mxu0 %v7862_v19  ;;  %2304 = vmatpush1.bf16.msra.mxu1 %v7865_v20  ;;  %v7936_v19 = vld [vmem:[#allocation3 + $0x8c4] ss:$16 sps:$4 sm:$0xff]   ;;  %v7939_v20 = vld [vmem:[#allocation3 + $0x8cc] ss:$16 sps:$4 sm:$0xff]  }
 0x18e   : > { %2219 = vmatprep.subr.bf16.mxu0 %v7870_v21  ;;  %2305 = vmatprep.subr.bf16.mxu1 %v7873_v22  ;;  %v7934_v21 = vld [vmem:[#allocation3 + $0x8c0] ss:$16 sps:$4 sm:$0xff]   ;;  %v7937_v22 = vld [vmem:[#allocation3 + $0x8c8] ss:$16 sps:$4 sm:$0xff]  }
 0x191   : > { %2220 = vmatpush1.bf16.msra.mxu0 %v7868_v23  ;;  %2306 = vmatpush1.bf16.msra.mxu1 %v7871_v24  ;;  %v7942_v23 = vld [vmem:[#allocation3 + $0x8e4] ss:$16 sps:$4 sm:$0xff]   ;;  %v7945_v24 = vld [vmem:[#allocation3 + $0x8ec] ss:$16 sps:$4 sm:$0xff]  }
 0x192   : > { %2221 = vmatprep.subr.bf16.mxu0 %v7876_v25  ;;  %2307 = vmatprep.subr.bf16.mxu1 %v7879_v26  ;;  %v7940_v25 = vld [vmem:[#allocation3 + $0x8e0] ss:$16 sps:$4 sm:$0xff]   ;;  %v7943_v26 = vld [vmem:[#allocation3 + $0x8e8] ss:$16 sps:$4 sm:$0xff]  }
 0x195   : > { %2222 = vmatpush1.bf16.msra.mxu0 %v7874_v27  ;;  %2308 = vmatpush1.bf16.msra.mxu1 %v7877_v28  ;;  %v7948_v27 = vld [vmem:[#allocation3 + $0x904] ss:$16 sps:$4 sm:$0xff]   ;;  %v7951_v28 = vld [vmem:[#allocation3 + $0x90c] ss:$16 sps:$4 sm:$0xff]  }
 0x196   : > { %2223 = vmatprep.subr.bf16.mxu0 %v7882_v50  ;;  %2309 = vmatprep.subr.bf16.mxu1 %v7885_v29  ;;  %v7946_v50 = vld [vmem:[#allocation3 + $0x900] ss:$16 sps:$4 sm:$0xff]   ;;  %v7949_v29 = vld [vmem:[#allocation3 + $0x908] ss:$16 sps:$4 sm:$0xff]  }
 0x199   : > { %2224 = vmatpush1.bf16.msra.mxu0 %v7880_v30  ;;  %2310 = vmatpush1.bf16.msra.mxu1 %v7883_v33  ;;  %v7954_v30 = vld [vmem:[#allocation3 + $0x924] ss:$16 sps:$4 sm:$0xff]   ;;  %v7955_v33 = vld [vmem:[#allocation3 + $0x928] ss:$16 sps:$4 sm:$0xff]  }
 0x19a   : > { %2225 = vmatprep.subr.bf16.mxu0 %v7888_v34  ;;  %2311 = vmatprep.subr.bf16.mxu1 %v7891_v35  ;;  %v7960_v34 = vld [vmem:[#allocation3 + $0x944] ss:$16 sps:$4 sm:$0xff]   ;;  %v7963_v35 = vld [vmem:[#allocation3 + $0x94c] ss:$16 sps:$4 sm:$0xff]  }
 0x19d   : > { %2226 = vmatpush1.bf16.msra.mxu0 %v7886_v40  ;;  %2312 = vmatpush1.bf16.msra.mxu1 %v7889_v41  ;;  %v7964_v40 = vld [vmem:[#allocation3 + $0x960] ss:$16 sps:$4 sm:$0xff]   ;;  %v7967_v41 = vld [vmem:[#allocation3 + $0x968] ss:$16 sps:$4 sm:$0xff]  }
 0x19e   : > { %2227 = vmatprep.subr.bf16.mxu0 %v7894_v37  ;;  %2313 = vmatprep.subr.bf16.mxu1 %v7897_v45  ;;  %v7975_v37 = vld [vmem:[#allocation3 + $0x98c] ss:$16 sps:$4 sm:$0xff]   ;;  %v7978_v45 = vld [vmem:[#allocation3 + $0x9a4] ss:$16 sps:$4 sm:$0xff]  }
 0x1a1   : > { %2228 = vmatpush1.bf16.msra.mxu0 %v7892_v46  ;;  %2314 = vmatpush1.bf16.msra.mxu1 %v7895_v51  ;;  %v7981_v46 = vld [vmem:[#allocation3 + $0x9ac] ss:$16 sps:$4 sm:$0xff]  }
 0x1a2   : > { %3156 = vmatprep.subr.bf16.mxu0 %v7900_v52  ;;  %3242 = vmatprep.subr.bf16.mxu1 %v7903_v55  ;;  %v2329_v51 = vld [vmem:[#allocation2 + $0x38] sm:$0xff]  ;;  %v7984_v52 = vld [vmem:[#allocation3 + $0x9c4] ss:$16 sps:$4 sm:$0xff]   ;;  %v2467_v55 = vshll.u32 %v2326_v47, 16 }
 0x1a4   : > { %2230 = vmatmul.mubr.bf16.vlgmr.msra.gmra.mrb[0].mxu0 %v1497_v61  ;;  %2316 = vmatmul.mubr.bf16.vlgmr.msra.gmra.mrb[0].mxu1 %v1497_v61  ;;  %v7993_v61 = vld [vmem:[#allocation3 + $0x9ec] ss:$16 sps:$4 sm:$0xff]  }
 0x1a5   : > { %3157 = vmatpush1.bf16.msra.mxu0 %v7898_v56  ;;  %3243 = vmatpush1.bf16.msra.mxu1 %v7901_v58  ;;  %v7982_v56 = vld [vmem:[#allocation3 + $0x9c0] ss:$16 sps:$4 sm:$0xff]   ;;  %v7985_v58 = vld [vmem:[#allocation3 + $0x9c8] ss:$16 sps:$4 sm:$0xff]  }
 0x1a6   : > { %3158 = vmatprep.subr.bf16.mxu0 %v7906_v62  ;;  %3244 = vmatprep.subr.bf16.mxu1 %v7909_v63  ;;  %v2503_v62 = vshll.u32 %v2329_v51, 16  ;;  %v2465_v63 = vshrl.u32 %v2326_v47, 16  ;;  %v8050_v47 = vld [vmem:[#allocation3 + $0xb24] ss:$16 sps:$4 sm:$0xff]  }
 0x1a7   : > { %3188 = vmatprep.mubr.bf16.mxu0 %v2487_v1  ;;  %3274 = vmatprep.mubr.bf16.mxu1 %v2487_v1  ;;  %v2472_v1 = vshll.u32 %v2330_v54, 16  ;;  %v8054_v54 = vld [vmem:[#allocation3 + $0xb40] ss:$16 sps:$4 sm:$0xff]  }
 0x1a9   : > { %3159 = vmatpush1.bf16.msra.mxu0 %v7904_v0  ;;  %3245 = vmatpush1.bf16.msra.mxu1 %v7907_v2  ;;  %v2469_v0 = vrot.slane %v2467_v55, 1  ;;  %v7988_v2 = vld [vmem:[#allocation3 + $0x9e0] ss:$16 sps:$4 sm:$0xff]   ;;  %v8057_v55 = vld [vmem:[#allocation3 + $0xb48] ss:$16 sps:$4 sm:$0xff]  }
 0x1aa   : > { %3160 = vmatprep.subr.bf16.mxu0 %v7912_v3  ;;  %3246 = vmatprep.subr.bf16.mxu1 %v7915_v4  ;;  %v7991_v3 = vld [vmem:[#allocation3 + $0x9e8] ss:$16 sps:$4 sm:$0xff]   ;;  %v7996_v4 = vld [vmem:[#allocation3 + $0xa04] ss:$16 sps:$4 sm:$0xff]  }
 0x1ad   : > { %3161 = vmatpush1.bf16.msra.mxu0 %v7910_v5  ;;  %3247 = vmatpush1.bf16.msra.mxu1 %v7913_v6  ;;  %v7999_v5 = vld [vmem:[#allocation3 + $0xa0c] ss:$16 sps:$4 sm:$0xff]   ;;  %v2501_v6 = vshrl.u32 %v2329_v51, 16  ;;  %v8051_v51 = vld [vmem:[#allocation3 + $0xb28] ss:$16 sps:$4 sm:$0xff]  }
 0x1ae   : > { %3162 = vmatprep.subr.bf16.mxu0 %v7918_v7  ;;  %3248 = vmatprep.subr.bf16.mxu1 %v7921_v8  ;;  %v2505_v7 = vrot.slane %v2503_v62, 1  ;;  %v2508_v8 = vshll.u32 %v2333_v59, 16  ;;  %v8060_v59 = vld [vmem:[#allocation3 + $0xb60] ss:$16 sps:$4 sm:$0xff]   ;;  %v8071_v62 = vld [vmem:[#allocation3 + $0xb8c] ss:$16 sps:$4 sm:$0xff]  }
 0x1b1   : > { %3163 = vmatpush1.bf16.msra.mxu0 %v7916_v9  ;;  %3249 = vmatpush1.bf16.msra.mxu1 %v7919_v10  ;;  %v2470_v9 = vor.u32 %v2469_v0, %v2465_v63  ;;  %v2474_v10 = vrot.slane %v2472_v1, 1  ;;  %v8066_v63 = vld [vmem:[#allocation3 + $0xb80] ss:$16 sps:$4 sm:$0xff]   ;;  %v8069_v0 = vld [vmem:[#allocation3 + $0xb88] ss:$16 sps:$4 sm:$0xff]  }
 0x1b2   : > { %3164 = vmatprep.subr.bf16.mxu0 %v7924_v11  ;;  %3250 = vmatprep.subr.bf16.mxu1 %v7927_v12  ;;  %v7994_v11 = vld [vmem:[#allocation3 + $0xa00] ss:$16 sps:$4 sm:$0xff]   ;;  %v7997_v12 = vld [vmem:[#allocation3 + $0xa08] ss:$16 sps:$4 sm:$0xff]   ;;  %v8074_v1 = vld [vmem:[#allocation3 + $0xba4] ss:$16 sps:$4 sm:$0xff]  }
 0x1b5   : > { %3165 = vmatpush1.bf16.msra.mxu0 %v7922_v13  ;;  %3251 = vmatpush1.bf16.msra.mxu1 %v7925_v14  ;;  %v8002_v13 = vld [vmem:[#allocation3 + $0xa24] ss:$16 sps:$4 sm:$0xff]   ;;  %v8005_v14 = vld [vmem:[#allocation3 + $0xa2c] ss:$16 sps:$4 sm:$0xff]  }
 0x1b6   : > { %3166 = vmatprep.subr.bf16.mxu0 %v7930_v15  ;;  %3252 = vmatprep.subr.bf16.mxu1 %v7933_v16  ;;  %v2506_v15 = vor.u32 %v2505_v7, %v2501_v6  ;;  %v2510_v16 = vrot.slane %v2508_v8, 1  ;;  %v8080_v6 = vld [vmem:[#allocation3 + $0xbc4] ss:$16 sps:$4 sm:$0xff]   ;;  %v8083_v7 = vld [vmem:[#allocation3 + $0xbcc] ss:$16 sps:$4 sm:$0xff]  }
 0x1b7   : > { %v2332_v8 = vld [vmem:[#allocation2 + $0x50] sm:$0x1] }
 0x1b9   : > { %3167 = vmatpush1.bf16.msra.mxu0 %v7928_v17  ;;  %3253 = vmatpush1.bf16.msra.mxu1 %v7931_v18  ;;  %v2475_v17 = vsel %vm2463_vm1, %v2470_v9, %v2474_v10  ;;  %v8000_v18 = vld [vmem:[#allocation3 + $0xa20] ss:$16 sps:$4 sm:$0xff]  }
 0x1ba   : > { %3168 = vmatprep.subr.bf16.mxu0 %v7936_v19  ;;  %3254 = vmatprep.subr.bf16.mxu1 %v7939_v20  ;;  %v8003_v19 = vld [vmem:[#allocation3 + $0xa28] ss:$16 sps:$4 sm:$0xff]   ;;  %v8008_v20 = vld [vmem:[#allocation3 + $0xa44] ss:$16 sps:$4 sm:$0xff]   ;;  %v8078_v10 = vld [vmem:[#allocation3 + $0xbc0] ss:$16 sps:$4 sm:$0xff]  }
 0x1bd   : > { %3169 = vmatpush1.bf16.msra.mxu0 %v7934_v21  ;;  %3255 = vmatpush1.bf16.msra.mxu1 %v7937_v22  ;;  %v8011_v21 = vld [vmem:[#allocation3 + $0xa4c] ss:$16 sps:$4 sm:$0xff]   ;;  %v2511_v22 = vsel %vm2463_vm1, %v2506_v15, %v2510_v16  ;;  %v2496_v16 = vshll.u32 %v2332_v8, 16  ;;  %v8162_v8 = vld [vmem:[#allocation8 + $0x580] ss:$16 sps:$4 sm:$0xff]  }
 0x1be   : > { %3170 = vmatprep.subr.bf16.mxu0 %v7942_v23  ;;  %3256 = vmatprep.subr.bf16.mxu1 %v7945_v24  ;;  %v8006_v23 = vld [vmem:[#allocation3 + $0xa40] ss:$16 sps:$4 sm:$0xff]   ;;  %v8009_v24 = vld [vmem:[#allocation3 + $0xa48] ss:$16 sps:$4 sm:$0xff]  }
 0x1c1   : > { %3171 = vmatpush1.bf16.msra.mxu0 %v7940_v25  ;;  %3257 = vmatpush1.bf16.msra.mxu1 %v7943_v26  ;;  %v8014_v25 = vld [vmem:[#allocation3 + $0xa64] ss:$16 sps:$4 sm:$0xff]   ;;  %v8017_v26 = vld [vmem:[#allocation3 + $0xa6c] ss:$16 sps:$4 sm:$0xff]  }
 0x1c2   : > { %3172 = vmatprep.subr.bf16.mxu0 %v7948_v27  ;;  %3258 = vmatprep.subr.bf16.mxu1 %v7951_v28  ;;  %v8012_v27 = vld [vmem:[#allocation3 + $0xa60] ss:$16 sps:$4 sm:$0xff]   ;;  %v8015_v28 = vld [vmem:[#allocation3 + $0xa68] ss:$16 sps:$4 sm:$0xff]  }
 0x1c5   : > { %3173 = vmatpush1.bf16.msra.mxu0 %v7946_v50  ;;  %3259 = vmatpush1.bf16.msra.mxu1 %v7949_v29  ;;  %v8020_v50 = vld [vmem:[#allocation3 + $0xa84] ss:$16 sps:$4 sm:$0xff]   ;;  %v8023_v29 = vld [vmem:[#allocation3 + $0xa8c] ss:$16 sps:$4 sm:$0xff]  }
 0x1c6   : > { %3174 = vmatprep.subr.bf16.mxu0 %v7954_v30  ;;  %3260 = vmatprep.subr.bf16.mxu1 %v7957_v31  ;;  %v8018_v30 = vld [vmem:[#allocation3 + $0xa80] ss:$16 sps:$4 sm:$0xff]   ;;  %v8021_v31 = vld [vmem:[#allocation3 + $0xa88] ss:$16 sps:$4 sm:$0xff]  }
 0x1c9   : > { %3175 = vmatpush1.bf16.msra.mxu0 %v7952_v32  ;;  %3261 = vmatpush1.bf16.msra.mxu1 %v7955_v33  ;;  %v8026_v32 = vld [vmem:[#allocation3 + $0xaa4] ss:$16 sps:$4 sm:$0xff]   ;;  %v8029_v33 = vld [vmem:[#allocation3 + $0xaac] ss:$16 sps:$4 sm:$0xff]  }
 0x1ca   : > { %3176 = vmatprep.subr.bf16.mxu0 %v7960_v34  ;;  %3262 = vmatprep.subr.bf16.mxu1 %v7963_v35  ;;  %v8024_v34 = vld [vmem:[#allocation3 + $0xaa0] ss:$16 sps:$4 sm:$0xff]   ;;  %v8027_v35 = vld [vmem:[#allocation3 + $0xaa8] ss:$16 sps:$4 sm:$0xff]  }
 0x1cd   : > { %3177 = vmatpush1.bf16.msra.mxu0 %v7958_v36  ;;  %3263 = vmatpush1.bf16.msra.mxu1 %v7961_v38  ;;  %v8032_v36 = vld [vmem:[#allocation3 + $0xac4] ss:$16 sps:$4 sm:$0xff]   ;;  %v8035_v38 = vld [vmem:[#allocation3 + $0xacc] ss:$16 sps:$4 sm:$0xff]  }
 0x1ce   : > { %3178 = vmatprep.subr.bf16.mxu0 %v7966_v39  ;;  %3264 = vmatprep.subr.bf16.mxu1 %v7969_v57  ;;  %v8030_v39 = vld [vmem:[#allocation3 + $0xac0] ss:$16 sps:$4 sm:$0xff]   ;;  %v8033_v57 = vld [vmem:[#allocation3 + $0xac8] ss:$16 sps:$4 sm:$0xff]  }
 0x1d1   : > { %3179 = vmatpush1.bf16.msra.mxu0 %v7964_v40  ;;  %3265 = vmatpush1.bf16.msra.mxu1 %v7967_v41  ;;  %v8038_v40 = vld [vmem:[#allocation3 + $0xae4] ss:$16 sps:$4 sm:$0xff]   ;;  %v8041_v41 = vld [vmem:[#allocation3 + $0xaec] ss:$16 sps:$4 sm:$0xff]  }
 0x1d2   : > { %3180 = vmatprep.subr.bf16.mxu0 %v7972_v42  ;;  %3266 = vmatprep.subr.bf16.mxu1 %v7975_v37  ;;  %v8036_v42 = vld [vmem:[#allocation3 + $0xae0] ss:$16 sps:$4 sm:$0xff]   ;;  %v8039_v37 = vld [vmem:[#allocation3 + $0xae8] ss:$16 sps:$4 sm:$0xff]  }
 0x1d5   : > { %3181 = vmatpush1.bf16.msra.mxu0 %v7970_v43  ;;  %3267 = vmatpush1.bf16.msra.mxu1 %v7973_v44  ;;  %v8044_v43 = vld [vmem:[#allocation3 + $0xb04] ss:$16 sps:$4 sm:$0xff]   ;;  %v8047_v44 = vld [vmem:[#allocation3 + $0xb0c] ss:$16 sps:$4 sm:$0xff]  }
 0x1d6   : > { %3182 = vmatprep.subr.bf16.mxu0 %v7978_v45  ;;  %3268 = vmatprep.subr.bf16.mxu1 %v7981_v46  ;;  %v8042_v45 = vld [vmem:[#allocation3 + $0xb00] ss:$16 sps:$4 sm:$0xff]   ;;  %v8045_v46 = vld [vmem:[#allocation3 + $0xb08] ss:$16 sps:$4 sm:$0xff]  }
 0x1d9   : > { %3183 = vmatpush1.bf16.msra.mxu0 %v7976_v48  ;;  %3269 = vmatpush1.bf16.msra.mxu1 %v7979_v49  ;;  %v8053_v48 = vld [vmem:[#allocation3 + $0xb2c] ss:$16 sps:$4 sm:$0xff]   ;;  %v8048_v49 = vld [vmem:[#allocation3 + $0xb20] ss:$16 sps:$4 sm:$0xff]  }
 0x1da   : > { %3184 = vmatprep.subr.bf16.mxu0 %v7984_v52  ;;  %3270 = vmatprep.subr.bf16.mxu1 %v7987_v53  ;;  %v8056_v52 = vld [vmem:[#allocation3 + $0xb44] ss:$16 sps:$4 sm:$0xff]   ;;  %v8059_v53 = vld [vmem:[#allocation3 + $0xb4c] ss:$16 sps:$4 sm:$0xff]  }
 0x1dd   : > { %3185 = vmatpush1.bf16.msra.mxu0 %v7982_v56  ;;  %3271 = vmatpush1.bf16.msra.mxu1 %v7985_v58  ;;  %v8062_v56 = vld [vmem:[#allocation3 + $0xb64] ss:$16 sps:$4 sm:$0xff]   ;;  %v8065_v58 = vld [vmem:[#allocation3 + $0xb6c] ss:$16 sps:$4 sm:$0xff]  }
 0x1de   : > { %3186 = vmatprep.subr.bf16.mxu0 %v7990_v60  ;;  %3272 = vmatprep.subr.bf16.mxu1 %v7993_v61  ;;  %v8063_v60 = vld [vmem:[#allocation3 + $0xb68] ss:$16 sps:$4 sm:$0xff]   ;;  %v8068_v61 = vld [vmem:[#allocation3 + $0xb84] ss:$16 sps:$4 sm:$0xff]  }
 0x1e1   : > { %3187 = vmatpush1.bf16.msra.mxu0 %v7988_v2  ;;  %3273 = vmatpush1.bf16.msra.mxu1 %v7991_v3  ;;  %v8077_v2 = vld [vmem:[#allocation3 + $0xbac] ss:$16 sps:$4 sm:$0xff]   ;;  %v2328_v3 = vld [vmem:[#allocation2 + $0x30] sm:$0xff] }
 0x1e2   : > { %3199 = vmatprep.subr.bf16.mxu0 %v7996_v4  ;;  %3285 = vmatprep.subr.bf16.mxu1 %v7999_v5  ;;  %v8072_v4 = vld [vmem:[#allocation3 + $0xba0] ss:$16 sps:$4 sm:$0xff]   ;;  %v8075_v5 = vld [vmem:[#allocation3 + $0xba8] ss:$16 sps:$4 sm:$0xff]   ;;  %v2491_v9 = vshll.u32 %v2328_v3, 16 }
 0x1e4   : > { %3189 = vmatmul.mubr.bf16.vlgmr.msra.gmra.mrb[0].mxu0 %v2475_v17  ;;  %3275 = vmatmul.mubr.bf16.vlgmr.msra.gmra.mrb[0].mxu1 %v2475_v17  ;;  %v2493_v15 = vrot.slane %v2491_v9, 1  ;;  %v8084_v17 = vld [vmem:[#allocation3 + $0xbe0] ss:$16 sps:$4 sm:$0xff]  }
 0x1e5   : > { %3200 = vmatpush1.bf16.msra.mxu0 %v7994_v11  ;;  %3286 = vmatpush1.bf16.msra.mxu1 %v7997_v12  ;;  %v8081_v11 = vld [vmem:[#allocation3 + $0xbc8] ss:$16 sps:$4 sm:$0xff]   ;;  %v8086_v12 = vld [vmem:[#allocation3 + $0xbe4] ss:$16 sps:$4 sm:$0xff]   ;;  %v8165_v9 = vld [vmem:[#allocation8 + $0x588] ss:$16 sps:$4 sm:$0xff]  }
 0x1e6   : > { %3201 = vmatprep.subr.bf16.mxu0 %v8002_v13  ;;  %3287 = vmatprep.subr.bf16.mxu1 %v8005_v14  ;;  %v8089_v13 = vld [vmem:[#allocation3 + $0xbec] ss:$16 sps:$4 sm:$0xff]   ;;  %v2489_v14 = vshrl.u32 %v2328_v3, 16  ;;  %v8161_v3 = vld [vmem:[#allocation8 + $0x56c] ss:$16 sps:$4 sm:$0xff]  }
 0x1e7   : > { %3231 = vmatprep.mubr.bf16.mxu0 %v2511_v22  ;;  %3317 = vmatprep.mubr.bf16.mxu1 %v2511_v22  ;;  %v2498_v22 = vrot.slane %v2496_v16, 1  ;;  %v8174_v16 = vld [vmem:[#allocation8 + $0x5c0] ss:$16 sps:$4 sm:$0xff]  }
 0x1e9   : > { %3202 = vmatpush1.bf16.msra.mxu0 %v8000_v18  ;;  %3288 = vmatpush1.bf16.msra.mxu1 %v8003_v19  ;;  %v8087_v18 = vld [vmem:[#allocation3 + $0xbe8] ss:$16 sps:$4 sm:$0xff]   ;;  %v8092_v19 = vld [vmem:[#allocation8 + $0x404] ss:$16 sps:$4 sm:$0xff]  }
 0x1ea   : > { %3203 = vmatprep.subr.bf16.mxu0 %v8008_v20  ;;  %3289 = vmatprep.subr.bf16.mxu1 %v8011_v21  ;;  %v8095_v20 = vld [vmem:[#allocation8 + $0x40c] ss:$16 sps:$4 sm:$0xff]   ;;  %v2494_v21 = vor.u32 %v2493_v15, %v2489_v14  ;;  %v8176_v14 = vld [vmem:[#allocation8 + $0x5c4] ss:$16 sps:$4 sm:$0xff]  }
 0x1eb   : > { %v8179_v15 = vld [vmem:[#allocation8 + $0x5cc] ss:$16 sps:$4 sm:$0xff]  }
 0x1ed   : > { %3204 = vmatpush1.bf16.msra.mxu0 %v8006_v23  ;;  %3290 = vmatpush1.bf16.msra.mxu1 %v8009_v24  ;;  %v8090_v23 = vld [vmem:[#allocation8 + $0x400] ss:$16 sps:$4 sm:$0xff]   ;;  %v8093_v24 = vld [vmem:[#allocation8 + $0x408] ss:$16 sps:$4 sm:$0xff]  }
 0x1ee   : > { %3205 = vmatprep.subr.bf16.mxu0 %v8014_v25  ;;  %3291 = vmatprep.subr.bf16.mxu1 %v8017_v26  ;;  %v8098_v25 = vld [vmem:[#allocation8 + $0x424] ss:$16 sps:$4 sm:$0xff]   ;;  %v8101_v26 = vld [vmem:[#allocation8 + $0x42c] ss:$16 sps:$4 sm:$0xff]  }
 0x1f1   : > { %3206 = vmatpush1.bf16.msra.mxu0 %v8012_v27  ;;  %3292 = vmatpush1.bf16.msra.mxu1 %v8015_v28  ;;  %v2499_v27 = vsel %vm2463_vm1, %v2494_v21, %v2498_v22  ;;  %v8096_v28 = vld [vmem:[#allocation8 + $0x420] ss:$16 sps:$4 sm:$0xff]   ;;  %v8183_v21 = vld [vmem:[#allocation8 + $0x5e8] ss:$16 sps:$4 sm:$0xff]   ;;  %v8188_v22 = vld [vmem:[#allocation8 + $0x604] ss:$16 sps:$4 sm:$0xff]  }
 0x1f2   : > { %3207 = vmatprep.subr.bf16.mxu0 %v8020_v50  ;;  %3293 = vmatprep.subr.bf16.mxu1 %v8023_v29  ;;  %v8099_v50 = vld [vmem:[#allocation8 + $0x428] ss:$16 sps:$4 sm:$0xff]   ;;  %v8104_v29 = vld [vmem:[#allocation8 + $0x444] ss:$16 sps:$4 sm:$0xff]  }
 0x1f5   : > { %3208 = vmatpush1.bf16.msra.mxu0 %v8018_v30  ;;  %3294 = vmatpush1.bf16.msra.mxu1 %v8021_v31  ;;  %v8107_v30 = vld [vmem:[#allocation8 + $0x44c] ss:$16 sps:$4 sm:$0xff]   ;;  %v8102_v31 = vld [vmem:[#allocation8 + $0x440] ss:$16 sps:$4 sm:$0xff]  }
 0x1f6   : > { %3209 = vmatprep.subr.bf16.mxu0 %v8026_v32  ;;  %3295 = vmatprep.subr.bf16.mxu1 %v8029_v33  ;;  %v8105_v32 = vld [vmem:[#allocation8 + $0x448] ss:$16 sps:$4 sm:$0xff]   ;;  %v8110_v33 = vld [vmem:[#allocation8 + $0x464] ss:$16 sps:$4 sm:$0xff]  }
 0x1f9   : > { %3210 = vmatpush1.bf16.msra.mxu0 %v8024_v34  ;;  %3296 = vmatpush1.bf16.msra.mxu1 %v8027_v35  ;;  %v8113_v34 = vld [vmem:[#allocation8 + $0x46c] ss:$16 sps:$4 sm:$0xff]   ;;  %v8108_v35 = vld [vmem:[#allocation8 + $0x460] ss:$16 sps:$4 sm:$0xff]  }
 0x1fa   : > { %3211 = vmatprep.subr.bf16.mxu0 %v8032_v36  ;;  %3297 = vmatprep.subr.bf16.mxu1 %v8035_v38  ;;  %v8111_v36 = vld [vmem:[#allocation8 + $0x468] ss:$16 sps:$4 sm:$0xff]   ;;  %v8116_v38 = vld [vmem:[#allocation8 + $0x484] ss:$16 sps:$4 sm:$0xff]  }
 0x1fd   : > { %3212 = vmatpush1.bf16.msra.mxu0 %v8030_v39  ;;  %3298 = vmatpush1.bf16.msra.mxu1 %v8033_v57  ;;  %v8119_v39 = vld [vmem:[#allocation8 + $0x48c] ss:$16 sps:$4 sm:$0xff]   ;;  %v8114_v57 = vld [vmem:[#allocation8 + $0x480] ss:$16 sps:$4 sm:$0xff]  }
 0x1fe   : > { %3213 = vmatprep.subr.bf16.mxu0 %v8038_v40  ;;  %3299 = vmatprep.subr.bf16.mxu1 %v8041_v41  ;;  %v8117_v40 = vld [vmem:[#allocation8 + $0x488] ss:$16 sps:$4 sm:$0xff]   ;;  %v8122_v41 = vld [vmem:[#allocation8 + $0x4a4] ss:$16 sps:$4 sm:$0xff]  }
 0x201   : > { %3214 = vmatpush1.bf16.msra.mxu0 %v8036_v42  ;;  %3300 = vmatpush1.bf16.msra.mxu1 %v8039_v37  ;;  %v8125_v42 = vld [vmem:[#allocation8 + $0x4ac] ss:$16 sps:$4 sm:$0xff]   ;;  %v8120_v37 = vld [vmem:[#allocation8 + $0x4a0] ss:$16 sps:$4 sm:$0xff]  }
 0x202   : > { %3215 = vmatprep.subr.bf16.mxu0 %v8044_v43  ;;  %3301 = vmatprep.subr.bf16.mxu1 %v8047_v44  ;;  %v8123_v43 = vld [vmem:[#allocation8 + $0x4a8] ss:$16 sps:$4 sm:$0xff]   ;;  %v8128_v44 = vld [vmem:[#allocation8 + $0x4c4] ss:$16 sps:$4 sm:$0xff]  }
 0x205   : > { %3216 = vmatpush1.bf16.msra.mxu0 %v8042_v45  ;;  %3302 = vmatpush1.bf16.msra.mxu1 %v8045_v46  ;;  %v8131_v45 = vld [vmem:[#allocation8 + $0x4cc] ss:$16 sps:$4 sm:$0xff]   ;;  %v8126_v46 = vld [vmem:[#allocation8 + $0x4c0] ss:$16 sps:$4 sm:$0xff]  }
 0x206   : > { %3217 = vmatprep.subr.bf16.mxu0 %v8050_v47  ;;  %3303 = vmatprep.subr.bf16.mxu1 %v8053_v48  ;;  %v8129_v47 = vld [vmem:[#allocation8 + $0x4c8] ss:$16 sps:$4 sm:$0xff]   ;;  %v8134_v48 = vld [vmem:[#allocation8 + $0x4e4] ss:$16 sps:$4 sm:$0xff]  }
 0x209   : > { %3218 = vmatpush1.bf16.msra.mxu0 %v8048_v49  ;;  %3304 = vmatpush1.bf16.msra.mxu1 %v8051_v51  ;;  %v8137_v49 = vld [vmem:[#allocation8 + $0x4ec] ss:$16 sps:$4 sm:$0xff]   ;;  %v8132_v51 = vld [vmem:[#allocation8 + $0x4e0] ss:$16 sps:$4 sm:$0xff]  }
 0x20a   : > { %3219 = vmatprep.subr.bf16.mxu0 %v8056_v52  ;;  %3305 = vmatprep.subr.bf16.mxu1 %v8059_v53  ;;  %v8135_v52 = vld [vmem:[#allocation8 + $0x4e8] ss:$16 sps:$4 sm:$0xff]   ;;  %v8140_v53 = vld [vmem:[#allocation8 + $0x504] ss:$16 sps:$4 sm:$0xff]  }
 0x20d   : > { %3220 = vmatpush1.bf16.msra.mxu0 %v8054_v54  ;;  %3306 = vmatpush1.bf16.msra.mxu1 %v8057_v55  ;;  %v8143_v54 = vld [vmem:[#allocation8 + $0x50c] ss:$16 sps:$4 sm:$0xff]   ;;  %v8138_v55 = vld [vmem:[#allocation8 + $0x500] ss:$16 sps:$4 sm:$0xff]  }
 0x20e   : > { %3221 = vmatprep.subr.bf16.mxu0 %v8062_v56  ;;  %3307 = vmatprep.subr.bf16.mxu1 %v8065_v58  ;;  %v8141_v56 = vld [vmem:[#allocation8 + $0x508] ss:$16 sps:$4 sm:$0xff]   ;;  %v8146_v58 = vld [vmem:[#allocation8 + $0x524] ss:$16 sps:$4 sm:$0xff]  }
 0x211   : > { %3222 = vmatpush1.bf16.msra.mxu0 %v8060_v59  ;;  %3308 = vmatpush1.bf16.msra.mxu1 %v8063_v60  ;;  %v8149_v59 = vld [vmem:[#allocation8 + $0x52c] ss:$16 sps:$4 sm:$0xff]   ;;  %v8144_v60 = vld [vmem:[#allocation8 + $0x520] ss:$16 sps:$4 sm:$0xff]  }
 0x212   : > { %3223 = vmatprep.subr.bf16.mxu0 %v8068_v61  ;;  %3309 = vmatprep.subr.bf16.mxu1 %v8071_v62  ;;  %v8147_v61 = vld [vmem:[#allocation8 + $0x528] ss:$16 sps:$4 sm:$0xff]   ;;  %v8152_v62 = vld [vmem:[#allocation8 + $0x544] ss:$16 sps:$4 sm:$0xff]  }
 0x215   : > { %3224 = vmatpush1.bf16.msra.mxu0 %v8066_v63  ;;  %3310 = vmatpush1.bf16.msra.mxu1 %v8069_v0  ;;  %v8155_v63 = vld [vmem:[#allocation8 + $0x54c] ss:$16 sps:$4 sm:$0xff]   ;;  %v8150_v0 = vld [vmem:[#allocation8 + $0x540] ss:$16 sps:$4 sm:$0xff]  }
 0x216   : > { %3225 = vmatprep.subr.bf16.mxu0 %v8074_v1  ;;  %3311 = vmatprep.subr.bf16.mxu1 %v8077_v2  ;;  %v8153_v1 = vld [vmem:[#allocation8 + $0x548] ss:$16 sps:$4 sm:$0xff]   ;;  %v8158_v2 = vld [vmem:[#allocation8 + $0x564] ss:$16 sps:$4 sm:$0xff]  }
 0x219   : > { %3226 = vmatpush1.bf16.msra.mxu0 %v8072_v4  ;;  %3312 = vmatpush1.bf16.msra.mxu1 %v8075_v5  ;;  %v8156_v4 = vld [vmem:[#allocation8 + $0x560] ss:$16 sps:$4 sm:$0xff]   ;;  %v8159_v5 = vld [vmem:[#allocation8 + $0x568] ss:$16 sps:$4 sm:$0xff]  }
 0x21a   : > { %3227 = vmatprep.subr.bf16.mxu0 %v8080_v6  ;;  %3313 = vmatprep.subr.bf16.mxu1 %v8083_v7  ;;  %v8164_v6 = vld [vmem:[#allocation8 + $0x584] ss:$16 sps:$4 sm:$0xff]   ;;  %v8167_v7 = vld [vmem:[#allocation8 + $0x58c] ss:$16 sps:$4 sm:$0xff]  }
 0x21d   : > { %3228 = vmatpush1.bf16.msra.mxu0 %v8078_v10  ;;  %3314 = vmatpush1.bf16.msra.mxu1 %v8081_v11  ;;  %v8170_v10 = vld [vmem:[#allocation8 + $0x5a4] ss:$16 sps:$4 sm:$0xff]   ;;  %v8168_v11 = vld [vmem:[#allocation8 + $0x5a0] ss:$16 sps:$4 sm:$0xff]  }
 0x21e   : > { %3229 = vmatprep.subr.bf16.mxu0 %v8086_v12  ;;  %3315 = vmatprep.subr.bf16.mxu1 %v8089_v13  ;;  %v8171_v12 = vld [vmem:[#allocation8 + $0x5a8] ss:$16 sps:$4 sm:$0xff]   ;;  %v8173_v13 = vld [vmem:[#allocation8 + $0x5ac] ss:$16 sps:$4 sm:$0xff]  }
 0x221   : > { %3230 = vmatpush1.bf16.msra.mxu0 %v8084_v17  ;;  %3316 = vmatpush1.bf16.msra.mxu1 %v8087_v18  ;;  %v8177_v17 = vld [vmem:[#allocation8 + $0x5c8] ss:$16 sps:$4 sm:$0xff]   ;;  %v8182_v18 = vld [vmem:[#allocation8 + $0x5e4] ss:$16 sps:$4 sm:$0xff]  }
 0x222   : > { %4317 = vmatprep.subr.bf16.mxu0 %v8092_v19  ;;  %4403 = vmatprep.subr.bf16.mxu1 %v8095_v20  ;;  %v8185_v19 = vld [vmem:[#allocation8 + $0x5ec] ss:$16 sps:$4 sm:$0xff]   ;;  %v8180_v20 = vld [vmem:[#allocation8 + $0x5e0] ss:$16 sps:$4 sm:$0xff]  }
 0x224   : > { %3232 = vmatmul.mubr.bf16.vlgmr.msra.gmra.mrb[0].mxu0 %v2499_v27  ;;  %3318 = vmatmul.mubr.bf16.vlgmr.msra.gmra.mrb[0].mxu1 %v2499_v27 }
 0x225   : > { %4318 = vmatpush1.bf16.msra.mxu0 %v8090_v23  ;;  %4404 = vmatpush1.bf16.msra.mxu1 %v8093_v24  ;;  %v8191_v23 = vld [vmem:[#allocation8 + $0x60c] ss:$16 sps:$4 sm:$0xff]   ;;  %v3338_v24 = vlaneseq }
 0x226   : > { %4319 = vmatprep.subr.bf16.mxu0 %v8098_v25  ;;  %4405 = vmatprep.subr.bf16.mxu1 %v8101_v26 }
 0x227   : > { %v3339_v25 = vshrl.u32 %v3338_v24, 7  ;;  %v8204_v24 = vld [vmem:[#allocation8 + $0x660] ss:$16 sps:$4 sm:$0xff]  }
 0x229   : > { %4320 = vmatpush1.bf16.msra.mxu0 %v8096_v28  ;;  %4406 = vmatpush1.bf16.msra.mxu1 %v8099_v50  ;;  %v9141_v26 = vsub.s32 0, %v3339_v25  ;;  %v9143_v27 = vsub.s32 2, %v3339_v25  ;;  %v3336_v28 = vld [vmem:[#allocation5] sm:$0xf]  ;;  %v9145_v50 = vsub.s32 1, %v3339_v25 }
 0x22a   : > { %4321 = vmatprep.subr.bf16.mxu0 %v8104_v29  ;;  %4407 = vmatprep.subr.bf16.mxu1 %v8107_v30  ;;  %v9147_v29 = vsub.s32 3, %v3339_v25  ;;  %v3366_v30 = vld [vmem:[#allocation7] sm:$0xf]  ;;  %v8207_v25 = vld [vmem:[#allocation8 + $0x668] ss:$16 sps:$4 sm:$0xff]  }
 0x22d   : > { %4322 = vmatpush1.bf16.msra.mxu0 %v8102_v31  ;;  %4408 = vmatpush1.bf16.msra.mxu1 %v8105_v32  ;;  %v3341_v31 = vrot.slane %v3336_v28, %v9141_v26  ;;  %v3349_v32 = vrot.slane %v3336_v28, %v9143_v27 }
 0x22e   : > { %4323 = vmatprep.subr.bf16.mxu0 %v8110_v33  ;;  %4409 = vmatprep.subr.bf16.mxu1 %v8113_v34  ;;  %v3345_v33 = vrot.slane %v3336_v28, %v9145_v50  ;;  %v3353_v34 = vrot.slane %v3336_v28, %v9147_v29  ;;  %v8212_v28 = vld [vmem:[#allocation8 + $0x684] ss:$16 sps:$4 sm:$0xff]  }
 0x231   : > { %4324 = vmatpush1.bf16.msra.mxu0 %v8108_v35  ;;  %4410 = vmatpush1.bf16.msra.mxu1 %v8111_v36  ;;  %v3371_v35 = vrot.slane %v3366_v30, %v9141_v26  ;;  %v3379_v36 = vrot.slane %v3366_v30, %v9143_v27 }
 0x232   : > { %4325 = vmatprep.subr.bf16.mxu0 %v8116_v38  ;;  %4411 = vmatprep.subr.bf16.mxu1 %v8119_v39 }
 0x235   : > { %4326 = vmatpush1.bf16.msra.mxu0 %v8114_v57  ;;  %4412 = vmatpush1.bf16.msra.mxu1 %v8117_v40  ;;  %v3375_v57 = vrot.slane %v3366_v30, %v9145_v50  ;;  %v3383_v40 = vrot.slane %v3366_v30, %v9147_v29  ;;  %v8215_v30 = vld [vmem:[#allocation8 + $0x68c] ss:$16 sps:$4 sm:$0xff]  }
 0x236   : > { %4327 = vmatprep.subr.bf16.mxu0 %v8122_v41  ;;  %4413 = vmatprep.subr.bf16.mxu1 %v8125_v42 }
 0x239   : > { %4328 = vmatpush1.bf16.msra.mxu0 %v8120_v37  ;;  %4414 = vmatpush1.bf16.msra.mxu1 %v8123_v43 }
 0x23a   : > { %4329 = vmatprep.subr.bf16.mxu0 %v8128_v44  ;;  %4415 = vmatprep.subr.bf16.mxu1 %v8131_v45 }
 0x23d   : > { %4330 = vmatpush1.bf16.msra.mxu0 %v8126_v46  ;;  %4416 = vmatpush1.bf16.msra.mxu1 %v8129_v47 }
 0x23e   : > { %4331 = vmatprep.subr.bf16.mxu0 %v8134_v48  ;;  %4417 = vmatprep.subr.bf16.mxu1 %v8137_v49 }
 0x241   : > { %4332 = vmatpush1.bf16.msra.mxu0 %v8132_v51  ;;  %4418 = vmatpush1.bf16.msra.mxu1 %v8135_v52 }
 0x242   : > { %4333 = vmatprep.subr.bf16.mxu0 %v8140_v53  ;;  %4419 = vmatprep.subr.bf16.mxu1 %v8143_v54 }
 0x245   : > { %4334 = vmatpush1.bf16.msra.mxu0 %v8138_v55  ;;  %4420 = vmatpush1.bf16.msra.mxu1 %v8141_v56 }
 0x246   : > { %4335 = vmatprep.subr.bf16.mxu0 %v8146_v58  ;;  %4421 = vmatprep.subr.bf16.mxu1 %v8149_v59 }
 0x249   : > { %4336 = vmatpush1.bf16.msra.mxu0 %v8144_v60  ;;  %4422 = vmatpush1.bf16.msra.mxu1 %v8147_v61 }
 0x24a   : > { %4337 = vmatprep.subr.bf16.mxu0 %v8152_v62  ;;  %4423 = vmatprep.subr.bf16.mxu1 %v8155_v63 }
 0x24d   : > { %4338 = vmatpush1.bf16.msra.mxu0 %v8150_v0  ;;  %4424 = vmatpush1.bf16.msra.mxu1 %v8153_v1 }
 0x24e   : > { %4339 = vmatprep.subr.bf16.mxu0 %v8158_v2  ;;  %4425 = vmatprep.subr.bf16.mxu1 %v8161_v3 }
 0x251   : > { %4340 = vmatpush1.bf16.msra.mxu0 %v8156_v4  ;;  %4426 = vmatpush1.bf16.msra.mxu1 %v8159_v5 }
 0x252   : > { %4341 = vmatprep.subr.bf16.mxu0 %v8164_v6  ;;  %4427 = vmatprep.subr.bf16.mxu1 %v8167_v7 }
 0x255   : > { %4342 = vmatpush1.bf16.msra.mxu0 %v8162_v8  ;;  %4428 = vmatpush1.bf16.msra.mxu1 %v8165_v9 }
 0x256   : > { %4343 = vmatprep.subr.bf16.mxu0 %v8170_v10  ;;  %4429 = vmatprep.subr.bf16.mxu1 %v8173_v13  ;;  %v8189_v13 = vld [vmem:[#allocation8 + $0x608] ss:$16 sps:$4 sm:$0xff]  }
 0x259   : > { %4344 = vmatpush1.bf16.msra.mxu0 %v8168_v11  ;;  %4430 = vmatpush1.bf16.msra.mxu1 %v8171_v12  ;;  %v8186_v12 = vld [vmem:[#allocation8 + $0x600] ss:$16 sps:$4 sm:$0xff]  }
 0x25a   : > { %4345 = vmatprep.subr.bf16.mxu0 %v8176_v14  ;;  %4431 = vmatprep.subr.bf16.mxu1 %v8179_v15  ;;  %v8194_v14 = vld [vmem:[#allocation8 + $0x624] ss:$16 sps:$4 sm:$0xff]   ;;  %v8197_v15 = vld [vmem:[#allocation8 + $0x62c] ss:$16 sps:$4 sm:$0xff]  }
 0x25d   : > { %4346 = vmatpush1.bf16.msra.mxu0 %v8174_v16  ;;  %4432 = vmatpush1.bf16.msra.mxu1 %v8177_v17  ;;  %v8192_v16 = vld [vmem:[#allocation8 + $0x620] ss:$16 sps:$4 sm:$0xff]   ;;  %v8195_v17 = vld [vmem:[#allocation8 + $0x628] ss:$16 sps:$4 sm:$0xff]  }
 0x25e   : > { %4347 = vmatprep.subr.bf16.mxu0 %v8182_v18  ;;  %4433 = vmatprep.subr.bf16.mxu1 %v8185_v19  ;;  %v8200_v18 = vld [vmem:[#allocation8 + $0x644] ss:$16 sps:$4 sm:$0xff]   ;;  %v8203_v19 = vld [vmem:[#allocation8 + $0x64c] ss:$16 sps:$4 sm:$0xff]  }
 0x261   : > { %4348 = vmatpush1.bf16.msra.mxu0 %v8180_v20  ;;  %4434 = vmatpush1.bf16.msra.mxu1 %v8183_v21  ;;  %v8198_v20 = vld [vmem:[#allocation8 + $0x640] ss:$16 sps:$4 sm:$0xff]   ;;  %v8201_v21 = vld [vmem:[#allocation8 + $0x648] ss:$16 sps:$4 sm:$0xff]  }
 0x262   : > { %4360 = vmatprep.subr.bf16.mxu0 %v8188_v22  ;;  %4446 = vmatprep.subr.bf16.mxu1 %v8191_v23  ;;  %v8206_v22 = vld [vmem:[#allocation8 + $0x664] ss:$16 sps:$4 sm:$0xff]   ;;  %v8209_v23 = vld [vmem:[#allocation8 + $0x66c] ss:$16 sps:$4 sm:$0xff]  }
 0x2f7   : > { %v3233_v38 = vpop.f32.mrb[0].mxu0  ;;  %v3319_v39 = vpop.f32.mrb[0].mxu1 }
 0x2f8   : > { %v3358_v41 = vmul.f32 %v3341_v31, %v3233_v38  ;;  %v3360_v42 = vmul.f32 %v3349_v32, %v3319_v39  ;;  %v3235_v37 = vpop.f32.mrb[1].mxu0  ;;  %v3321_v43 = vpop.f32.mrb[1].mxu1  ;;  %v8224_v38 = vld [vmem:[#allocation8 + $0x6c4] ss:$16 sps:$4 sm:$0xff]   ;;  %v8227_v39 = vld [vmem:[#allocation8 + $0x6cc] ss:$16 sps:$4 sm:$0xff]  }
 0x2f9   : > { %v3359_v44 = vmul.f32 %v3345_v33, %v3235_v37  ;;  %v3361_v45 = vmul.f32 %v3353_v34, %v3321_v43  ;;  %v3237_v46 = vpop.f32.mrb[2].mxu0  ;;  %v3323_v47 = vpop.f32.mrb[2].mxu1  ;;  %v8228_v37 = vld [vmem:[#allocation8 + $0x6e0] ss:$16 sps:$4 sm:$0xff]   ;;  %v8231_v43 = vld [vmem:[#allocation8 + $0x6e8] ss:$16 sps:$4 sm:$0xff]  }
 0x2fa   : > { %v3388_v48 = vadd.f32 %v3371_v35, %v3358_v41  ;;  %v3390_v49 = vadd.f32 %v3379_v36, %v3360_v42  ;;  %v3362_v51 = vmul.f32 %v3341_v31, %v3237_v46  ;;  %v3364_v52 = vmul.f32 %v3349_v32, %v3323_v47  ;;  %v3239_v53 = vpop.f32.mrb[3].mxu0  ;;  %v3325_v54 = vpop.f32.mrb[3].mxu1  ;;  %v8210_v31 = vld [vmem:[#allocation8 + $0x680] ss:$16 sps:$4 sm:$0xff]   ;;  %v8213_v32 = vld [vmem:[#allocation8 + $0x688] ss:$16 sps:$4 sm:$0xff]  }
 0x2fb   : > { %v3389_v55 = vadd.f32 %v3375_v57, %v3359_v44  ;;  %v3391_v56 = vadd.f32 %v3383_v40, %v3361_v45  ;;  %v3363_v58 = vmul.f32 %v3345_v33, %v3239_v53  ;;  %v3365_v59 = vmul.f32 %v3353_v34, %v3325_v54  ;;  %v8218_v33 = vld [vmem:[#allocation8 + $0x6a4] ss:$16 sps:$4 sm:$0xff]   ;;  %v8221_v34 = vld [vmem:[#allocation8 + $0x6ac] ss:$16 sps:$4 sm:$0xff]   ;;  %v8234_v46 = vld [vmem:[#allocation8 + $0x700] ss:$16 sps:$4 sm:$0xff]  }
 0x2fc   : > { %v3392_v60 = vadd.f32 %v3371_v35, %v3362_v51  ;;  %v3394_v61 = vadd.f32 %v3379_v36, %v3364_v52  ;;  %v3396_v0 = vmax.f32 %v3388_v48, 0.0  ;;  %v3398_v1 = vmax.f32 %v3390_v49, 0.0  ;;  %v8216_v35 = vld [vmem:[#allocation8 + $0x6a0] ss:$16 sps:$4 sm:$0xff]   ;;  %v8219_v36 = vld [vmem:[#allocation8 + $0x6a8] ss:$16 sps:$4 sm:$0xff]  }
 0x2fd   : > { %v3393_v62 = vadd.f32 %v3375_v57, %v3363_v58  ;;  %v3395_v63 = vadd.f32 %v3383_v40, %v3365_v59  ;;  %v3397_v4 = vmax.f32 %v3389_v55, 0.0  ;;  %v3399_v5 = vmax.f32 %v3391_v56, 0.0  ;;  %v8222_v57 = vld [vmem:[#allocation8 + $0x6c0] ss:$16 sps:$4 sm:$0xff]   ;;  %v8225_v40 = vld [vmem:[#allocation8 + $0x6c8] ss:$16 sps:$4 sm:$0xff]  }
 0x2fe   : > { %v3400_v2 = vmax.f32 %v3392_v60, 0.0  ;;  %v3402_v3 = vmax.f32 %v3394_v61, 0.0  ;;  %v8230_v41 = vld [vmem:[#allocation8 + $0x6e4] ss:$16 sps:$4 sm:$0xff]   ;;  %v8233_v42 = vld [vmem:[#allocation8 + $0x6ec] ss:$16 sps:$4 sm:$0xff]  }
 0x2ff   : > { %v3401_v6 = vmax.f32 %v3393_v62, 0.0  ;;  %v3403_v7 = vmax.f32 %v3395_v63, 0.0  ;;  %v8236_v44 = vld [vmem:[#allocation8 + $0x704] ss:$16 sps:$4 sm:$0xff]   ;;  %v8239_v45 = vld [vmem:[#allocation8 + $0x70c] ss:$16 sps:$4 sm:$0xff]  }
 0x300   : > { %v9157_v8 = vpack.c.bf16 %v3400_v2, %v3396_v0  ;;  %v9159_v9 = vpack.c.bf16 %v3402_v3, %v3398_v1  ;;  %v8237_v47 = vld [vmem:[#allocation8 + $0x708] ss:$16 sps:$4 sm:$0xff]   ;;  %v8242_v48 = vld [vmem:[#allocation8 + $0x724] ss:$16 sps:$4 sm:$0xff]   ;;  %v8245_v49 = vld [vmem:[#allocation8 + $0x72c] ss:$16 sps:$4 sm:$0xff]  }
 0x301   : > { %v9161_v10 = vpack.c.bf16 %v3401_v6, %v3397_v4  ;;  %v9163_v11 = vpack.c.bf16 %v3403_v7, %v3399_v5  ;;  %v8240_v51 = vld [vmem:[#allocation8 + $0x720] ss:$16 sps:$4 sm:$0xff]   ;;  %v8243_v52 = vld [vmem:[#allocation8 + $0x728] ss:$16 sps:$4 sm:$0xff]   ;;  %v8248_v53 = vld [vmem:[#allocation8 + $0x744] ss:$16 sps:$4 sm:$0xff]  }
 0x302   : > { %3408 = vst [vmem:[#allocation2 + $0x20] sm:$0xff] %v9157_v8  ;;  %3410 = vst [vmem:[#allocation2 + $0x30] sm:$0xff] %v9159_v9  ;;  %v8251_v54 = vld [vmem:[#allocation8 + $0x74c] ss:$16 sps:$4 sm:$0xff]   ;;  %v8246_v55 = vld [vmem:[#allocation8 + $0x740] ss:$16 sps:$4 sm:$0xff]  }
 0x303   : > { %3409 = vst [vmem:[#allocation2 + $0x28] sm:$0xff] %v9161_v10  ;;  %3411 = vst [vmem:[#allocation2 + $0x38] sm:$0xff] %v9163_v11  ;;  %4349 = vmatprep.mubr.bf16.mxu0 %v9161_v10  ;;  %4435 = vmatprep.mubr.bf16.mxu1 %v9161_v10  ;;  %v8249_v56 = vld [vmem:[#allocation8 + $0x748] ss:$16 sps:$4 sm:$0xff]   ;;  %v8254_v58 = vld [vmem:[#allocation8 + $0x764] ss:$16 sps:$4 sm:$0xff]  }
 0x304   : > { %4350 = vmatmul.mubr.bf16.vlgmr.msra.gmra.mrb[4].mxu0 %v9157_v8  ;;  %4436 = vmatmul.mubr.bf16.vlgmr.msra.gmra.mrb[4].mxu1 %v9157_v8  ;;  %v8257_v59 = vld [vmem:[#allocation8 + $0x76c] ss:$16 sps:$4 sm:$0xff]   ;;  %v8252_v60 = vld [vmem:[#allocation8 + $0x760] ss:$16 sps:$4 sm:$0xff]   ;;  %v8255_v61 = vld [vmem:[#allocation8 + $0x768] ss:$16 sps:$4 sm:$0xff]  }
 0x305   : > { %4361 = vmatpush1.bf16.msra.mxu0 %v8186_v12  ;;  %4447 = vmatpush1.bf16.msra.mxu1 %v8189_v13  ;;  %v8260_v62 = vld [vmem:[#allocation8 + $0x784] ss:$16 sps:$4 sm:$0xff]   ;;  %v8263_v63 = vld [vmem:[#allocation8 + $0x78c] ss:$16 sps:$4 sm:$0xff]   ;;  %v8258_v0 = vld [vmem:[#allocation8 + $0x780] ss:$16 sps:$4 sm:$0xff]  }
 0x306   : > { %4392 = vmatprep.mubr.bf16.mxu0 %v9163_v11  ;;  %4478 = vmatprep.mubr.bf16.mxu1 %v9163_v11  ;;  %v8261_v1 = vld [vmem:[#allocation8 + $0x788] ss:$16 sps:$4 sm:$0xff]   ;;  %v8266_v2 = vld [vmem:[#allocation8 + $0x7a4] ss:$16 sps:$4 sm:$0xff]   ;;  %v8269_v3 = vld [vmem:[#allocation8 + $0x7ac] ss:$16 sps:$4 sm:$0xff]  }
 0x307   : > { %4362 = vmatprep.subr.bf16.mxu0 %v8194_v14  ;;  %4448 = vmatprep.subr.bf16.mxu1 %v8197_v15  ;;  %v8264_v4 = vld [vmem:[#allocation8 + $0x7a0] ss:$16 sps:$4 sm:$0xff]   ;;  %v8267_v5 = vld [vmem:[#allocation8 + $0x7a8] ss:$16 sps:$4 sm:$0xff]   ;;  %v8272_v6 = vld [vmem:[#allocation8 + $0x7c4] ss:$16 sps:$4 sm:$0xff]  }
 0x308   : > { %v8275_v7 = vld [vmem:[#allocation8 + $0x7cc] ss:$16 sps:$4 sm:$0xff]   ;;  %v4506_v12 = vshrl.u32 %v9161_v10, 16  ;;  %v8270_v13 = vld [vmem:[#allocation8 + $0x7c0] ss:$16 sps:$4 sm:$0xff]  }
 0x309   : > { %4363 = vmatpush1.bf16.msra.mxu0 %v8192_v16  ;;  %4449 = vmatpush1.bf16.msra.mxu1 %v8195_v17  ;;  %v8273_v14 = vld [vmem:[#allocation8 + $0x7c8] ss:$16 sps:$4 sm:$0xff]   ;;  %v3413_v15 = vld [vmem:[#allocation2 + $0x8] sm:$0x80]  ;;  %v8281_v17 = vld [vmem:[#allocation8 + $0x7ec] ss:$16 sps:$4 sm:$0xff]  }
 0x30a   : > { %4364 = vmatprep.subr.bf16.mxu0 %v8200_v18  ;;  %4450 = vmatprep.subr.bf16.mxu1 %v8203_v19  ;;  %v8278_v16 = vld [vmem:[#allocation8 + $0x7e4] ss:$16 sps:$4 sm:$0xff]   ;;  %v4508_v18 = vrot.slane %v4506_v12, 7  ;;  %v4502_v19 = vshrl.u32 %v3413_v15, 16  ;;  %v8345_v12 = vld [vmem:[#allocation8 + $0x148] ss:$16 sps:$4 sm:$0xff]  }
 0x30b   : > { %v8348_v15 = vld [vmem:[#allocation8 + $0x160] ss:$16 sps:$4 sm:$0xff]  }
 0x30d   : > { %4365 = vmatpush1.bf16.msra.mxu0 %v8198_v20  ;;  %4451 = vmatpush1.bf16.msra.mxu1 %v8201_v21  ;;  %v8276_v20 = vld [vmem:[#allocation8 + $0x7e0] ss:$16 sps:$4 sm:$0xff]   ;;  %v8279_v21 = vld [vmem:[#allocation8 + $0x7e8] ss:$16 sps:$4 sm:$0xff]  }
 0x30e   : > { %4366 = vmatprep.subr.bf16.mxu0 %v8206_v22  ;;  %4452 = vmatprep.subr.bf16.mxu1 %v8209_v23  ;;  %v4509_v22 = vshll.u32 %v9161_v10, 16  ;;  %v8284_v23 = vld [vmem:[#allocation8 + $0x4] ss:$16 sps:$4 sm:$0xff]  }
 0x311   : > { %4367 = vmatpush1.bf16.msra.mxu0 %v8204_v24  ;;  %4453 = vmatpush1.bf16.msra.mxu1 %v8207_v25  ;;  %v8287_v24 = vld [vmem:[#allocation8 + $0xc] ss:$16 sps:$4 sm:$0xff]   ;;  %v4504_v25 = vrot.slane %v4502_v19, 7  ;;  %v8354_v19 = vld [vmem:[#allocation8 + $0x180] ss:$16 sps:$4 sm:$0xff]  }
 0x312   : > { %4368 = vmatprep.subr.bf16.mxu0 %v8212_v28  ;;  %4454 = vmatprep.subr.bf16.mxu1 %v8215_v30  ;;  %v4511_v28 = vor.u32 %v4509_v22, %v4508_v18  ;;  %v8282_v30 = vld [vmem:[#allocation8] ss:$16 sps:$4 sm:$0xff]   ;;  %v8359_v18 = vld [vmem:[#allocation8 + $0x18c] ss:$16 sps:$4 sm:$0xff]  }
 0x313   : > { %v8365_v22 = vld [vmem:[#allocation8 + $0x1ac] ss:$16 sps:$4 sm:$0xff]  }
 0x314   : > { %v4512_v10 = vsel %vm1461_vm0, %v4504_v25, %v4511_v28  ;;  %v8368_v25 = vld [vmem:[#allocation8 + $0x1c4] ss:$16 sps:$4 sm:$0xff]   ;;  %v4494_v28 = vshrl.u32 %v9157_v8, 16 }
 0x315   : > { %4369 = vmatpush1.bf16.msra.mxu0 %v8210_v31  ;;  %4455 = vmatpush1.bf16.msra.mxu1 %v8213_v32  ;;  %v8285_v31 = vld [vmem:[#allocation8 + $0x8] ss:$16 sps:$4 sm:$0xff]   ;;  %v8290_v32 = vld [vmem:[#allocation8 + $0x24] ss:$16 sps:$4 sm:$0xff]  }
 0x316   : > { %4370 = vmatprep.subr.bf16.mxu0 %v8218_v33  ;;  %4456 = vmatprep.subr.bf16.mxu1 %v8221_v34  ;;  %v8293_v33 = vld [vmem:[#allocation8 + $0x2c] ss:$16 sps:$4 sm:$0xff]   ;;  %v8288_v34 = vld [vmem:[#allocation8 + $0x20] ss:$16 sps:$4 sm:$0xff]  }
 0x319   : > { %4371 = vmatpush1.bf16.msra.mxu0 %v8216_v35  ;;  %4457 = vmatpush1.bf16.msra.mxu1 %v8219_v36  ;;  %v8291_v35 = vld [vmem:[#allocation8 + $0x28] ss:$16 sps:$4 sm:$0xff]   ;;  %v8296_v36 = vld [vmem:[#allocation8 + $0x44] ss:$16 sps:$4 sm:$0xff]  }
 0x31a   : > { %4372 = vmatprep.subr.bf16.mxu0 %v8224_v38  ;;  %4458 = vmatprep.subr.bf16.mxu1 %v8227_v39  ;;  %v8299_v38 = vld [vmem:[#allocation8 + $0x4c] ss:$16 sps:$4 sm:$0xff]   ;;  %v8294_v39 = vld [vmem:[#allocation8 + $0x40] ss:$16 sps:$4 sm:$0xff]  }
 0x31d   : > { %4373 = vmatpush1.bf16.msra.mxu0 %v8222_v57  ;;  %4459 = vmatpush1.bf16.msra.mxu1 %v8225_v40  ;;  %v8297_v57 = vld [vmem:[#allocation8 + $0x48] ss:$16 sps:$4 sm:$0xff]   ;;  %v8302_v40 = vld [vmem:[#allocation8 + $0x64] ss:$16 sps:$4 sm:$0xff]  }
 0x31e   : > { %4374 = vmatprep.subr.bf16.mxu0 %v8230_v41  ;;  %4460 = vmatprep.subr.bf16.mxu1 %v8233_v42  ;;  %v8305_v41 = vld [vmem:[#allocation8 + $0x6c] ss:$16 sps:$4 sm:$0xff]   ;;  %v8300_v42 = vld [vmem:[#allocation8 + $0x60] ss:$16 sps:$4 sm:$0xff]  }
 0x321   : > { %4375 = vmatpush1.bf16.msra.mxu0 %v8228_v37  ;;  %4461 = vmatpush1.bf16.msra.mxu1 %v8231_v43  ;;  %v8303_v37 = vld [vmem:[#allocation8 + $0x68] ss:$16 sps:$4 sm:$0xff]   ;;  %v8308_v43 = vld [vmem:[#allocation8 + $0x84] ss:$16 sps:$4 sm:$0xff]  }
 0x322   : > { %4376 = vmatprep.subr.bf16.mxu0 %v8236_v44  ;;  %4462 = vmatprep.subr.bf16.mxu1 %v8239_v45  ;;  %v8311_v44 = vld [vmem:[#allocation8 + $0x8c] ss:$16 sps:$4 sm:$0xff]   ;;  %v8306_v45 = vld [vmem:[#allocation8 + $0x80] ss:$16 sps:$4 sm:$0xff]  }
 0x325   : > { %4377 = vmatpush1.bf16.msra.mxu0 %v8234_v46  ;;  %4463 = vmatpush1.bf16.msra.mxu1 %v8237_v47  ;;  %v8309_v46 = vld [vmem:[#allocation8 + $0x88] ss:$16 sps:$4 sm:$0xff]   ;;  %v8314_v47 = vld [vmem:[#allocation8 + $0xa4] ss:$16 sps:$4 sm:$0xff]  }
 0x326   : > { %4378 = vmatprep.subr.bf16.mxu0 %v8242_v48  ;;  %4464 = vmatprep.subr.bf16.mxu1 %v8245_v49  ;;  %v8317_v48 = vld [vmem:[#allocation8 + $0xac] ss:$16 sps:$4 sm:$0xff]   ;;  %v8312_v49 = vld [vmem:[#allocation8 + $0xa0] ss:$16 sps:$4 sm:$0xff]  }
 0x329   : > { %4379 = vmatpush1.bf16.msra.mxu0 %v8240_v51  ;;  %4465 = vmatpush1.bf16.msra.mxu1 %v8243_v52  ;;  %v8315_v51 = vld [vmem:[#allocation8 + $0xa8] ss:$16 sps:$4 sm:$0xff]   ;;  %v8320_v52 = vld [vmem:[#allocation8 + $0xc4] ss:$16 sps:$4 sm:$0xff]  }
 0x32a   : > { %4380 = vmatprep.subr.bf16.mxu0 %v8248_v53  ;;  %4466 = vmatprep.subr.bf16.mxu1 %v8251_v54  ;;  %v8323_v53 = vld [vmem:[#allocation8 + $0xcc] ss:$16 sps:$4 sm:$0xff]   ;;  %v8318_v54 = vld [vmem:[#allocation8 + $0xc0] ss:$16 sps:$4 sm:$0xff]  }
 0x32d   : > { %4381 = vmatpush1.bf16.msra.mxu0 %v8246_v55  ;;  %4467 = vmatpush1.bf16.msra.mxu1 %v8249_v56  ;;  %v8321_v55 = vld [vmem:[#allocation8 + $0xc8] ss:$16 sps:$4 sm:$0xff]   ;;  %v8326_v56 = vld [vmem:[#allocation8 + $0xe4] ss:$16 sps:$4 sm:$0xff]  }
 0x32e   : > { %4382 = vmatprep.subr.bf16.mxu0 %v8254_v58  ;;  %4468 = vmatprep.subr.bf16.mxu1 %v8257_v59  ;;  %v8329_v58 = vld [vmem:[#allocation8 + $0xec] ss:$16 sps:$4 sm:$0xff]   ;;  %v8324_v59 = vld [vmem:[#allocation8 + $0xe0] ss:$16 sps:$4 sm:$0xff]  }
 0x331   : > { %4383 = vmatpush1.bf16.msra.mxu0 %v8252_v60  ;;  %4469 = vmatpush1.bf16.msra.mxu1 %v8255_v61  ;;  %v8327_v60 = vld [vmem:[#allocation8 + $0xe8] ss:$16 sps:$4 sm:$0xff]   ;;  %v8332_v61 = vld [vmem:[#allocation8 + $0x104] ss:$16 sps:$4 sm:$0xff]  }
 0x332   : > { %4384 = vmatprep.subr.bf16.mxu0 %v8260_v62  ;;  %4470 = vmatprep.subr.bf16.mxu1 %v8263_v63  ;;  %v8335_v62 = vld [vmem:[#allocation8 + $0x10c] ss:$16 sps:$4 sm:$0xff]   ;;  %v8330_v63 = vld [vmem:[#allocation8 + $0x100] ss:$16 sps:$4 sm:$0xff]  }
 0x335   : > { %4385 = vmatpush1.bf16.msra.mxu0 %v8258_v0  ;;  %4471 = vmatpush1.bf16.msra.mxu1 %v8261_v1  ;;  %v8333_v0 = vld [vmem:[#allocation8 + $0x108] ss:$16 sps:$4 sm:$0xff]   ;;  %v8338_v1 = vld [vmem:[#allocation8 + $0x124] ss:$16 sps:$4 sm:$0xff]  }
 0x336   : > { %4386 = vmatprep.subr.bf16.mxu0 %v8266_v2  ;;  %4472 = vmatprep.subr.bf16.mxu1 %v8269_v3  ;;  %v8341_v2 = vld [vmem:[#allocation8 + $0x12c] ss:$16 sps:$4 sm:$0xff]   ;;  %v8336_v3 = vld [vmem:[#allocation8 + $0x120] ss:$16 sps:$4 sm:$0xff]  }
 0x339   : > { %4387 = vmatpush1.bf16.msra.mxu0 %v8264_v4  ;;  %4473 = vmatpush1.bf16.msra.mxu1 %v8267_v5  ;;  %v8339_v4 = vld [vmem:[#allocation8 + $0x128] ss:$16 sps:$4 sm:$0xff]   ;;  %v8344_v5 = vld [vmem:[#allocation8 + $0x144] ss:$16 sps:$4 sm:$0xff]  }
 0x33a   : > { %4388 = vmatprep.subr.bf16.mxu0 %v8272_v6  ;;  %4474 = vmatprep.subr.bf16.mxu1 %v8275_v7  ;;  %v8347_v6 = vld [vmem:[#allocation8 + $0x14c] ss:$16 sps:$4 sm:$0xff]   ;;  %v8342_v7 = vld [vmem:[#allocation8 + $0x140] ss:$16 sps:$4 sm:$0xff]  }
 0x33d   : > { %4389 = vmatpush1.bf16.msra.mxu0 %v8270_v13  ;;  %4475 = vmatpush1.bf16.msra.mxu1 %v8273_v14  ;;  %v8350_v13 = vld [vmem:[#allocation8 + $0x164] ss:$16 sps:$4 sm:$0xff]   ;;  %v8353_v14 = vld [vmem:[#allocation8 + $0x16c] ss:$16 sps:$4 sm:$0xff]  }
 0x33e   : > { %4390 = vmatprep.subr.bf16.mxu0 %v8278_v16  ;;  %4476 = vmatprep.subr.bf16.mxu1 %v8281_v17  ;;  %v8351_v16 = vld [vmem:[#allocation8 + $0x168] ss:$16 sps:$4 sm:$0xff]   ;;  %v8356_v17 = vld [vmem:[#allocation8 + $0x184] ss:$16 sps:$4 sm:$0xff]  }
 0x341   : > { %4391 = vmatpush1.bf16.msra.mxu0 %v8276_v20  ;;  %4477 = vmatpush1.bf16.msra.mxu1 %v8279_v21  ;;  %v8357_v20 = vld [vmem:[#allocation8 + $0x188] ss:$16 sps:$4 sm:$0xff]   ;;  %v8362_v21 = vld [vmem:[#allocation8 + $0x1a4] ss:$16 sps:$4 sm:$0xff]  }
 0x342   : > { %5181 = vmatprep.subr.bf16.mxu0 %v8284_v23  ;;  %5267 = vmatprep.subr.bf16.mxu1 %v8287_v24  ;;  %v8360_v23 = vld [vmem:[#allocation8 + $0x1a0] ss:$16 sps:$4 sm:$0xff]   ;;  %v8363_v24 = vld [vmem:[#allocation8 + $0x1a8] ss:$16 sps:$4 sm:$0xff]  }
 0x344   : > { %4393 = vmatmul.mubr.bf16.vlgmr.msra.gmra.mrb[4].mxu0 %v9159_v9  ;;  %4479 = vmatmul.mubr.bf16.vlgmr.msra.gmra.mrb[4].mxu1 %v9159_v9 }
 0x345   : > { %5182 = vmatpush1.bf16.msra.mxu0 %v8282_v30  ;;  %5213 = vmatprep.mubr.bf16.mxu0 %v4512_v10  ;;  %v8371_v30 = vld [vmem:[#allocation8 + $0x1cc] ss:$16 sps:$4 sm:$0xff]  }
 0x346   : > { %5268 = vmatpush1.bf16.msra.mxu1 %v8285_v31  ;;  %5299 = vmatprep.mubr.bf16.mxu1 %v4512_v10  ;;  %v3412_v31 = vld [vmem:[#allocation2] sm:$0x80]  ;;  %v8369_v10 = vld [vmem:[#allocation8 + $0x1c8] ss:$16 sps:$4 sm:$0xff]  }
 0x347   : > { %5183 = vmatprep.subr.bf16.mxu0 %v8290_v32  ;;  %5269 = vmatprep.subr.bf16.mxu1 %v8293_v33  ;;  %v4530_v32 = vshrl.u32 %v9163_v11, 16  ;;  %v8366_v33 = vld [vmem:[#allocation8 + $0x1c0] ss:$16 sps:$4 sm:$0xff]  }
 0x349   : > { %5184 = vmatpush1.bf16.msra.mxu0 %v8288_v34  ;;  %v8374_v34 = vld [vmem:[#allocation8 + $0x1e4] ss:$16 sps:$4 sm:$0xff]  }
 0x34a   : > { %5270 = vmatpush1.bf16.msra.mxu1 %v8291_v35  ;;  %5185 = vmatprep.subr.bf16.mxu0 %v8296_v36  ;;  %v3415_v35 = vld [vmem:[#allocation2 + $0x18] sm:$0x80]  ;;  %v4496_v36 = vrot.slane %v4494_v28, 7 }
 0x34b   : > { %5271 = vmatprep.subr.bf16.mxu1 %v8299_v38  ;;  %v8377_v38 = vld [vmem:[#allocation8 + $0x1ec] ss:$16 sps:$4 sm:$0xff]   ;;  %v8434_v28 = vld [vmem:[#allocation8 + $0x324] ss:$16 sps:$4 sm:$0xff]  }
 0x34d   : > { %5186 = vmatpush1.bf16.msra.mxu0 %v8294_v39  ;;  %v4490_v39 = vshrl.u32 %v3412_v31, 16  ;;  %v8432_v31 = vld [vmem:[#allocation8 + $0x320] ss:$16 sps:$4 sm:$0xff]  }
 0x34e   : > { %5272 = vmatpush1.bf16.msra.mxu1 %v8297_v57  ;;  %5187 = vmatprep.subr.bf16.mxu0 %v8302_v40  ;;  %v4497_v57 = vshll.u32 %v9157_v8, 16  ;;  %v4532_v40 = vrot.slane %v4530_v32, 7  ;;  %v8381_v8 = vld [vmem:[#allocation8 + $0x208] ss:$16 sps:$4 sm:$0xff]  }
 0x34f   : > { %5273 = vmatprep.subr.bf16.mxu1 %v8305_v41  ;;  %v8372_v41 = vld [vmem:[#allocation8 + $0x1e0] ss:$16 sps:$4 sm:$0xff]   ;;  %v8435_v32 = vld [vmem:[#allocation8 + $0x328] ss:$16 sps:$4 sm:$0xff]  }
 0x351   : > { %5188 = vmatpush1.bf16.msra.mxu0 %v8300_v42  ;;  %v4526_v42 = vshrl.u32 %v3415_v35, 16  ;;  %v8441_v35 = vld [vmem:[#allocation8 + $0x348] ss:$16 sps:$4 sm:$0xff]  }
 0x352   : > { %5274 = vmatpush1.bf16.msra.mxu1 %v8303_v37  ;;  %5189 = vmatprep.subr.bf16.mxu0 %v8308_v43  ;;  %v8375_v37 = vld [vmem:[#allocation8 + $0x1e8] ss:$16 sps:$4 sm:$0xff]   ;;  %v8380_v43 = vld [vmem:[#allocation8 + $0x204] ss:$16 sps:$4 sm:$0xff]  }
 0x353   : > { %5275 = vmatprep.subr.bf16.mxu1 %v8311_v44  ;;  %v4533_v44 = vshll.u32 %v9163_v11, 16 }
 0x355   : > { %5190 = vmatpush1.bf16.msra.mxu0 %v8306_v45  ;;  %v4492_v45 = vrot.slane %v4490_v39, 7  ;;  %v8444_v39 = vld [vmem:[#allocation8 + $0x360] ss:$16 sps:$4 sm:$0xff]  }
 0x356   : > { %5276 = vmatpush1.bf16.msra.mxu1 %v8309_v46  ;;  %5191 = vmatprep.subr.bf16.mxu0 %v8314_v47  ;;  %v4499_v46 = vor.u32 %v4497_v57, %v4496_v36  ;;  %v8383_v47 = vld [vmem:[#allocation8 + $0x20c] ss:$16 sps:$4 sm:$0xff]   ;;  %v8446_v36 = vld [vmem:[#allocation8 + $0x364] ss:$16 sps:$4 sm:$0xff]   ;;  %v8447_v57 = vld [vmem:[#allocation8 + $0x368] ss:$16 sps:$4 sm:$0xff]  }
 0x357   : > { %5277 = vmatprep.subr.bf16.mxu1 %v8317_v48  ;;  %v8378_v48 = vld [vmem:[#allocation8 + $0x200] ss:$16 sps:$4 sm:$0xff]  }
 0x359   : > { %5192 = vmatpush1.bf16.msra.mxu0 %v8312_v49  ;;  %v4528_v49 = vrot.slane %v4526_v42, 7  ;;  %v8450_v42 = vld [vmem:[#allocation8 + $0x380] ss:$16 sps:$4 sm:$0xff]  }
 0x35a   : > { %5278 = vmatpush1.bf16.msra.mxu1 %v8315_v51  ;;  %5193 = vmatprep.subr.bf16.mxu0 %v8320_v52  ;;  %v4535_v51 = vor.u32 %v4533_v44, %v4532_v40  ;;  %v4500_v52 = vsel %vm1461_vm0, %v4492_v45, %v4499_v46  ;;  %v8452_v40 = vld [vmem:[#allocation8 + $0x384] ss:$16 sps:$4 sm:$0xff]   ;;  %v8461_v44 = vld [vmem:[#allocation8 + $0x3ac] ss:$16 sps:$4 sm:$0xff]   ;;  %v8456_v45 = vld [vmem:[#allocation8 + $0x3a0] ss:$16 sps:$4 sm:$0xff]  }
 0x35b   : > { %5279 = vmatprep.subr.bf16.mxu1 %v8323_v53  ;;  %v8386_v53 = vld [vmem:[#allocation8 + $0x224] ss:$16 sps:$4 sm:$0xff]   ;;  %v8459_v46 = vld [vmem:[#allocation8 + $0x3a8] ss:$16 sps:$4 sm:$0xff]  }
 0x35c   : > { %v4536_v11 = vsel %vm1461_vm0, %v4528_v49, %v4535_v51  ;;  %v4518_v49 = vshrl.u32 %v9159_v9, 16  ;;  %v8467_v51 = vld [vmem:[#allocation8 + $0x3cc] ss:$16 sps:$4 sm:$0xff]  }
 0x35d   : > { %5194 = vmatpush1.bf16.msra.mxu0 %v8318_v54  ;;  %v8389_v54 = vld [vmem:[#allocation8 + $0x22c] ss:$16 sps:$4 sm:$0xff]  }
 0x35e   : > { %5280 = vmatpush1.bf16.msra.mxu1 %v8321_v55  ;;  %5195 = vmatprep.subr.bf16.mxu0 %v8326_v56  ;;  %v8384_v55 = vld [vmem:[#allocation8 + $0x220] ss:$16 sps:$4 sm:$0xff]   ;;  %v8387_v56 = vld [vmem:[#allocation8 + $0x228] ss:$16 sps:$4 sm:$0xff]  }
 0x35f   : > { %5281 = vmatprep.subr.bf16.mxu1 %v8329_v58  ;;  %v8392_v58 = vld [vmem:[#allocation8 + $0x244] ss:$16 sps:$4 sm:$0xff]  }
 0x361   : > { %5196 = vmatpush1.bf16.msra.mxu0 %v8324_v59  ;;  %v8395_v59 = vld [vmem:[#allocation8 + $0x24c] ss:$16 sps:$4 sm:$0xff]  }
 0x362   : > { %5282 = vmatpush1.bf16.msra.mxu1 %v8327_v60  ;;  %5197 = vmatprep.subr.bf16.mxu0 %v8332_v61  ;;  %v8390_v60 = vld [vmem:[#allocation8 + $0x240] ss:$16 sps:$4 sm:$0xff]   ;;  %v8393_v61 = vld [vmem:[#allocation8 + $0x248] ss:$16 sps:$4 sm:$0xff]  }
 0x363   : > { %5283 = vmatprep.subr.bf16.mxu1 %v8335_v62  ;;  %v8398_v62 = vld [vmem:[#allocation8 + $0x264] ss:$16 sps:$4 sm:$0xff]  }
 0x365   : > { %5198 = vmatpush1.bf16.msra.mxu0 %v8330_v63  ;;  %v8401_v63 = vld [vmem:[#allocation8 + $0x26c] ss:$16 sps:$4 sm:$0xff]  }
 0x366   : > { %5284 = vmatpush1.bf16.msra.mxu1 %v8333_v0  ;;  %5199 = vmatprep.subr.bf16.mxu0 %v8338_v1  ;;  %v8396_v0 = vld [vmem:[#allocation8 + $0x260] ss:$16 sps:$4 sm:$0xff]   ;;  %v8399_v1 = vld [vmem:[#allocation8 + $0x268] ss:$16 sps:$4 sm:$0xff]  }
 0x367   : > { %5285 = vmatprep.subr.bf16.mxu1 %v8341_v2  ;;  %v8404_v2 = vld [vmem:[#allocation8 + $0x284] ss:$16 sps:$4 sm:$0xff]  }
 0x369   : > { %5200 = vmatpush1.bf16.msra.mxu0 %v8336_v3  ;;  %v8407_v3 = vld [vmem:[#allocation8 + $0x28c] ss:$16 sps:$4 sm:$0xff]  }
 0x36a   : > { %5286 = vmatpush1.bf16.msra.mxu1 %v8339_v4  ;;  %5201 = vmatprep.subr.bf16.mxu0 %v8344_v5  ;;  %v8402_v4 = vld [vmem:[#allocation8 + $0x280] ss:$16 sps:$4 sm:$0xff]   ;;  %v8405_v5 = vld [vmem:[#allocation8 + $0x288] ss:$16 sps:$4 sm:$0xff]  }
 0x36b   : > { %5287 = vmatprep.subr.bf16.mxu1 %v8347_v6  ;;  %v8410_v6 = vld [vmem:[#allocation8 + $0x2a4] ss:$16 sps:$4 sm:$0xff]  }
 0x36d   : > { %5202 = vmatpush1.bf16.msra.mxu0 %v8342_v7  ;;  %v8413_v7 = vld [vmem:[#allocation8 + $0x2ac] ss:$16 sps:$4 sm:$0xff]  }
 0x36e   : > { %5288 = vmatpush1.bf16.msra.mxu1 %v8345_v12  ;;  %5203 = vmatprep.subr.bf16.mxu0 %v8350_v13  ;;  %v8408_v12 = vld [vmem:[#allocation8 + $0x2a0] ss:$16 sps:$4 sm:$0xff]   ;;  %v8411_v13 = vld [vmem:[#allocation8 + $0x2a8] ss:$16 sps:$4 sm:$0xff]  }
 0x36f   : > { %5289 = vmatprep.subr.bf16.mxu1 %v8353_v14  ;;  %v8416_v14 = vld [vmem:[#allocation8 + $0x2c4] ss:$16 sps:$4 sm:$0xff]  }
 0x371   : > { %5204 = vmatpush1.bf16.msra.mxu0 %v8348_v15  ;;  %v8419_v15 = vld [vmem:[#allocation8 + $0x2cc] ss:$16 sps:$4 sm:$0xff]  }
 0x372   : > { %5290 = vmatpush1.bf16.msra.mxu1 %v8351_v16  ;;  %5205 = vmatprep.subr.bf16.mxu0 %v8356_v17  ;;  %v8414_v16 = vld [vmem:[#allocation8 + $0x2c0] ss:$16 sps:$4 sm:$0xff]   ;;  %v8417_v17 = vld [vmem:[#allocation8 + $0x2c8] ss:$16 sps:$4 sm:$0xff]  }
 0x373   : > { %5291 = vmatprep.subr.bf16.mxu1 %v8359_v18  ;;  %v8422_v18 = vld [vmem:[#allocation8 + $0x2e4] ss:$16 sps:$4 sm:$0xff]  }
 0x375   : > { %5206 = vmatpush1.bf16.msra.mxu0 %v8354_v19  ;;  %v8425_v19 = vld [vmem:[#allocation8 + $0x2ec] ss:$16 sps:$4 sm:$0xff]  }
 0x376   : > { %5292 = vmatpush1.bf16.msra.mxu1 %v8357_v20  ;;  %5207 = vmatprep.subr.bf16.mxu0 %v8362_v21  ;;  %v8420_v20 = vld [vmem:[#allocation8 + $0x2e0] ss:$16 sps:$4 sm:$0xff]   ;;  %v8423_v21 = vld [vmem:[#allocation8 + $0x2e8] ss:$16 sps:$4 sm:$0xff]  }
 0x377   : > { %5293 = vmatprep.subr.bf16.mxu1 %v8365_v22  ;;  %v8428_v22 = vld [vmem:[#allocation8 + $0x304] ss:$16 sps:$4 sm:$0xff]  }
 0x379   : > { %5208 = vmatpush1.bf16.msra.mxu0 %v8360_v23  ;;  %v8431_v23 = vld [vmem:[#allocation8 + $0x30c] ss:$16 sps:$4 sm:$0xff]  }
 0x37a   : > { %5294 = vmatpush1.bf16.msra.mxu1 %v8363_v24  ;;  %5209 = vmatprep.subr.bf16.mxu0 %v8368_v25  ;;  %v8426_v24 = vld [vmem:[#allocation8 + $0x300] ss:$16 sps:$4 sm:$0xff]   ;;  %v8429_v25 = vld [vmem:[#allocation8 + $0x308] ss:$16 sps:$4 sm:$0xff]  }
 0x37b   : > { %5295 = vmatprep.subr.bf16.mxu1 %v8371_v30  ;;  %v8437_v30 = vld [vmem:[#allocation8 + $0x32c] ss:$16 sps:$4 sm:$0xff]  }
 0x37d   : > { %5210 = vmatpush1.bf16.msra.mxu0 %v8366_v33  ;;  %v8440_v33 = vld [vmem:[#allocation8 + $0x344] ss:$16 sps:$4 sm:$0xff]  }
 0x37e   : > { %5296 = vmatpush1.bf16.msra.mxu1 %v8369_v10  ;;  %5211 = vmatprep.subr.bf16.mxu0 %v8374_v34  ;;  %v8443_v10 = vld [vmem:[#allocation8 + $0x34c] ss:$16 sps:$4 sm:$0xff]   ;;  %v8438_v34 = vld [vmem:[#allocation8 + $0x340] ss:$16 sps:$4 sm:$0xff]  }
 0x37f   : > { %5297 = vmatprep.subr.bf16.mxu1 %v8377_v38  ;;  %v8449_v38 = vld [vmem:[#allocation8 + $0x36c] ss:$16 sps:$4 sm:$0xff]  }
 0x381   : > { %5212 = vmatpush1.bf16.msra.mxu0 %v8372_v41  ;;  %v8455_v41 = vld [vmem:[#allocation8 + $0x38c] ss:$16 sps:$4 sm:$0xff]  }
 0x382   : > { %5298 = vmatpush1.bf16.msra.mxu1 %v8375_v37  ;;  %5224 = vmatprep.subr.bf16.mxu0 %v8380_v43  ;;  %v8453_v37 = vld [vmem:[#allocation8 + $0x388] ss:$16 sps:$4 sm:$0xff]   ;;  %v8458_v43 = vld [vmem:[#allocation8 + $0x3a4] ss:$16 sps:$4 sm:$0xff]  }
 0x383   : > { %5310 = vmatprep.subr.bf16.mxu1 %v8383_v47  ;;  %v8464_v47 = vld [vmem:[#allocation8 + $0x3c4] ss:$16 sps:$4 sm:$0xff]  }
 0x384   : > { %5214 = vmatmul.mubr.bf16.vlgmr.msra.gmra.mrb[4].mxu0 %v4500_v52 }
 0x385   : > { %5300 = vmatmul.mubr.bf16.vlgmr.msra.gmra.mrb[4].mxu1 %v4500_v52  ;;  %5225 = vmatpush1.bf16.msra.mxu0 %v8378_v48  ;;  %v5354_v48 = vld [vmem:[#allocation2 + $0x28] sm:$0xff] }
 0x386   : > { %5256 = vmatprep.mubr.bf16.mxu0 %v4536_v11  ;;  %5311 = vmatpush1.bf16.msra.mxu1 %v8381_v8  ;;  %v3414_v8 = vld [vmem:[#allocation2 + $0x10] sm:$0x80]  ;;  %v8462_v52 = vld [vmem:[#allocation8 + $0x3c0] ss:$16 sps:$4 sm:$0xff]  }
 0x387   : > { %5342 = vmatprep.mubr.bf16.mxu1 %v4536_v11  ;;  %5226 = vmatprep.subr.bf16.mxu0 %v8386_v53  ;;  %v5505_v53 = vshll.u32 %v5354_v48, 16  ;;  %v8470_v11 = vld [vmem:[#allocation8 + $0x3e4] ss:$16 sps:$4 sm:$0xff]  }
 0x388   : > { %5312 = vmatprep.subr.bf16.mxu1 %v8389_v54  ;;  %v8465_v54 = vld [vmem:[#allocation8 + $0x3c8] ss:$16 sps:$4 sm:$0xff]  }
 0x389   : > { %5227 = vmatpush1.bf16.msra.mxu0 %v8384_v55  ;;  %v5358_v55 = vld [vmem:[#allocation2 + $0x48] sm:$0x1] }
 0x38a   : > { %5313 = vmatpush1.bf16.msra.mxu1 %v8387_v56  ;;  %5228 = vmatprep.subr.bf16.mxu0 %v8392_v58  ;;  %v4520_v56 = vrot.slane %v4518_v49, 7  ;;  %v8473_v58 = vld [vmem:[#allocation8 + $0x3ec] ss:$16 sps:$4 sm:$0xff]  }
 0x38b   : > { %5314 = vmatprep.subr.bf16.mxu1 %v8395_v59  ;;  %v4514_v59 = vshrl.u32 %v3414_v8, 16  ;;  %v8533_v49 = vld [vmem:[#allocation8 + $0x92c] ss:$16 sps:$4 sm:$0xff]   ;;  %v8531_v8 = vld [vmem:[#allocation8 + $0x928] ss:$16 sps:$4 sm:$0xff]  }
 0x38d   : > { %5229 = vmatpush1.bf16.msra.mxu0 %v8390_v60  ;;  %v4521_v60 = vshll.u32 %v9159_v9, 16  ;;  %v8477_v9 = vld [vmem:[#allocation8 + $0x808] ss:$16 sps:$4 sm:$0xff]  }
 0x38e   : > { %5315 = vmatpush1.bf16.msra.mxu1 %v8393_v61  ;;  %5230 = vmatprep.subr.bf16.mxu0 %v8398_v62  ;;  %v8468_v61 = vld [vmem:[#allocation8 + $0x3e0] ss:$16 sps:$4 sm:$0xff]   ;;  %v5507_v62 = vrot.slane %v5505_v53, 1  ;;  %v8539_v53 = vld [vmem:[#allocation8 + $0x94c] ss:$16 sps:$4 sm:$0xff]  }
 0x38f   : > { %5316 = vmatprep.subr.bf16.mxu1 %v8401_v63  ;;  %v5510_v63 = vshll.u32 %v5358_v55, 16  ;;  %v8542_v55 = vld [vmem:[#allocation8 + $0x964] ss:$16 sps:$4 sm:$0xff]  }
 0x391   : > { %5231 = vmatpush1.bf16.msra.mxu0 %v8396_v0  ;;  %v8471_v0 = vld [vmem:[#allocation8 + $0x3e8] ss:$16 sps:$4 sm:$0xff]  }
 0x392   : > { %5317 = vmatpush1.bf16.msra.mxu1 %v8399_v1  ;;  %5232 = vmatprep.subr.bf16.mxu0 %v8404_v2  ;;  %v8476_v1 = vld [vmem:[#allocation8 + $0x804] ss:$16 sps:$4 sm:$0xff]   ;;  %v4516_v2 = vrot.slane %v4514_v59, 7  ;;  %v8543_v59 = vld [vmem:[#allocation8 + $0x968] ss:$16 sps:$4 sm:$0xff]  }
 0x393   : > { %5318 = vmatprep.subr.bf16.mxu1 %v8407_v3  ;;  %v4523_v3 = vor.u32 %v4521_v60, %v4520_v56  ;;  %v8545_v56 = vld [vmem:[#allocation8 + $0x96c] ss:$16 sps:$4 sm:$0xff]   ;;  %v8548_v60 = vld [vmem:[#allocation8 + $0x984] ss:$16 sps:$4 sm:$0xff]  }
 0x395   : > { %5233 = vmatpush1.bf16.msra.mxu0 %v8402_v4  ;;  %v8479_v4 = vld [vmem:[#allocation8 + $0x80c] ss:$16 sps:$4 sm:$0xff]  }
 0x396   : > { %5319 = vmatpush1.bf16.msra.mxu1 %v8405_v5  ;;  %5234 = vmatprep.subr.bf16.mxu0 %v8410_v6  ;;  %v5503_v5 = vshrl.u32 %v5354_v48, 16  ;;  %v8474_v6 = vld [vmem:[#allocation8 + $0x800] ss:$16 sps:$4 sm:$0xff]   ;;  %v8530_v48 = vld [vmem:[#allocation8 + $0x924] ss:$16 sps:$4 sm:$0xff]  }
 0x397   : > { %5320 = vmatprep.subr.bf16.mxu1 %v8413_v7 }
 0x398   : > { %v5508_v7 = vor.u32 %v5507_v62, %v5503_v5  ;;  %v8546_v62 = vld [vmem:[#allocation8 + $0x980] ss:$16 sps:$4 sm:$0xff]   ;;  %v8560_v5 = vld [vmem:[#allocation8 + $0x9c4] ss:$16 sps:$4 sm:$0xff]  }
 0x399   : > { %5235 = vmatpush1.bf16.msra.mxu0 %v8408_v12  ;;  %v5512_v12 = vrot.slane %v5510_v63, 1  ;;  %v8549_v63 = vld [vmem:[#allocation8 + $0x988] ss:$16 sps:$4 sm:$0xff]  }
 0x39a   : > { %5321 = vmatpush1.bf16.msra.mxu1 %v8411_v13  ;;  %5236 = vmatprep.subr.bf16.mxu0 %v8416_v14  ;;  %v4524_v13 = vsel %vm1461_vm0, %v4516_v2, %v4523_v3  ;;  %v8482_v14 = vld [vmem:[#allocation8 + $0x824] ss:$16 sps:$4 sm:$0xff]   ;;  %v5353_v2 = vld [vmem:[#allocation2 + $0x20] sm:$0xff]  ;;  %v8552_v3 = vld [vmem:[#allocation8 + $0x9a0] ss:$16 sps:$4 sm:$0xff]  }
 0x39b   : > { %5322 = vmatprep.subr.bf16.mxu1 %v8419_v15  ;;  %v8485_v15 = vld [vmem:[#allocation8 + $0x82c] ss:$16 sps:$4 sm:$0xff]  }
 0x39d   : > { %5237 = vmatpush1.bf16.msra.mxu0 %v8414_v16  ;;  %v5513_v16 = vsel %vm2463_vm1, %v5508_v7, %v5512_v12  ;;  %v8563_v7 = vld [vmem:[#allocation8 + $0x9cc] ss:$16 sps:$4 sm:$0xff]   ;;  %v5493_v12 = vshll.u32 %v5353_v2, 16 }
 0x39e   : > { %5323 = vmatpush1.bf16.msra.mxu1 %v8417_v17  ;;  %5238 = vmatprep.subr.bf16.mxu0 %v8422_v18  ;;  %v8480_v17 = vld [vmem:[#allocation8 + $0x820] ss:$16 sps:$4 sm:$0xff]   ;;  %v8483_v18 = vld [vmem:[#allocation8 + $0x828] ss:$16 sps:$4 sm:$0xff]  }
 0x39f   : > { %5324 = vmatprep.subr.bf16.mxu1 %v8425_v19  ;;  %v8488_v19 = vld [vmem:[#allocation8 + $0x844] ss:$16 sps:$4 sm:$0xff]  }
 0x3a1   : > { %5239 = vmatpush1.bf16.msra.mxu0 %v8420_v20  ;;  %v8491_v20 = vld [vmem:[#allocation8 + $0x84c] ss:$16 sps:$4 sm:$0xff]  }
 0x3a2   : > { %5325 = vmatpush1.bf16.msra.mxu1 %v8423_v21  ;;  %5240 = vmatprep.subr.bf16.mxu0 %v8428_v22  ;;  %v8486_v21 = vld [vmem:[#allocation8 + $0x840] ss:$16 sps:$4 sm:$0xff]   ;;  %v8489_v22 = vld [vmem:[#allocation8 + $0x848] ss:$16 sps:$4 sm:$0xff]  }
 0x3a3   : > { %5326 = vmatprep.subr.bf16.mxu1 %v8431_v23  ;;  %v8494_v23 = vld [vmem:[#allocation8 + $0x864] ss:$16 sps:$4 sm:$0xff]  }
 0x3a5   : > { %5241 = vmatpush1.bf16.msra.mxu0 %v8426_v24  ;;  %v8497_v24 = vld [vmem:[#allocation8 + $0x86c] ss:$16 sps:$4 sm:$0xff]  }
 0x3a6   : > { %5327 = vmatpush1.bf16.msra.mxu1 %v8429_v25  ;;  %5242 = vmatprep.subr.bf16.mxu0 %v8434_v28  ;;  %v8492_v25 = vld [vmem:[#allocation8 + $0x860] ss:$16 sps:$4 sm:$0xff]   ;;  %v8495_v28 = vld [vmem:[#allocation8 + $0x868] ss:$16 sps:$4 sm:$0xff]  }
 0x3a7   : > { %5328 = vmatprep.subr.bf16.mxu1 %v8437_v30  ;;  %v8500_v30 = vld [vmem:[#allocation8 + $0x884] ss:$16 sps:$4 sm:$0xff]  }
 0x3a9   : > { %5243 = vmatpush1.bf16.msra.mxu0 %v8432_v31  ;;  %v8503_v31 = vld [vmem:[#allocation8 + $0x88c] ss:$16 sps:$4 sm:$0xff]  }
 0x3aa   : > { %5329 = vmatpush1.bf16.msra.mxu1 %v8435_v32  ;;  %5244 = vmatprep.subr.bf16.mxu0 %v8440_v33  ;;  %v8498_v32 = vld [vmem:[#allocation8 + $0x880] ss:$16 sps:$4 sm:$0xff]   ;;  %v8501_v33 = vld [vmem:[#allocation8 + $0x888] ss:$16 sps:$4 sm:$0xff]  }
 0x3ab   : > { %5330 = vmatprep.subr.bf16.mxu1 %v8443_v10  ;;  %v8506_v10 = vld [vmem:[#allocation8 + $0x8a4] ss:$16 sps:$4 sm:$0xff]  }
 0x3ad   : > { %5245 = vmatpush1.bf16.msra.mxu0 %v8438_v34  ;;  %v8509_v34 = vld [vmem:[#allocation8 + $0x8ac] ss:$16 sps:$4 sm:$0xff]  }
 0x3ae   : > { %5331 = vmatpush1.bf16.msra.mxu1 %v8441_v35  ;;  %5246 = vmatprep.subr.bf16.mxu0 %v8446_v36  ;;  %v8504_v35 = vld [vmem:[#allocation8 + $0x8a0] ss:$16 sps:$4 sm:$0xff]   ;;  %v8507_v36 = vld [vmem:[#allocation8 + $0x8a8] ss:$16 sps:$4 sm:$0xff]  }
 0x3af   : > { %5332 = vmatprep.subr.bf16.mxu1 %v8449_v38  ;;  %v8512_v38 = vld [vmem:[#allocation8 + $0x8c4] ss:$16 sps:$4 sm:$0xff]  }
 0x3b1   : > { %5247 = vmatpush1.bf16.msra.mxu0 %v8444_v39  ;;  %v8515_v39 = vld [vmem:[#allocation8 + $0x8cc] ss:$16 sps:$4 sm:$0xff]  }
 0x3b2   : > { %5333 = vmatpush1.bf16.msra.mxu1 %v8447_v57  ;;  %5248 = vmatprep.subr.bf16.mxu0 %v8452_v40  ;;  %v8510_v57 = vld [vmem:[#allocation8 + $0x8c0] ss:$16 sps:$4 sm:$0xff]   ;;  %v8513_v40 = vld [vmem:[#allocation8 + $0x8c8] ss:$16 sps:$4 sm:$0xff]  }
 0x3b3   : > { %5334 = vmatprep.subr.bf16.mxu1 %v8455_v41  ;;  %v8518_v41 = vld [vmem:[#allocation8 + $0x8e4] ss:$16 sps:$4 sm:$0xff]  }
 0x3b5   : > { %5249 = vmatpush1.bf16.msra.mxu0 %v8450_v42  ;;  %v8521_v42 = vld [vmem:[#allocation8 + $0x8ec] ss:$16 sps:$4 sm:$0xff]  }
 0x3b6   : > { %5335 = vmatpush1.bf16.msra.mxu1 %v8453_v37  ;;  %5250 = vmatprep.subr.bf16.mxu0 %v8458_v43  ;;  %v8516_v37 = vld [vmem:[#allocation8 + $0x8e0] ss:$16 sps:$4 sm:$0xff]   ;;  %v8519_v43 = vld [vmem:[#allocation8 + $0x8e8] ss:$16 sps:$4 sm:$0xff]  }
 0x3b7   : > { %5336 = vmatprep.subr.bf16.mxu1 %v8461_v44  ;;  %v8524_v44 = vld [vmem:[#allocation8 + $0x904] ss:$16 sps:$4 sm:$0xff]  }
 0x3b9   : > { %5251 = vmatpush1.bf16.msra.mxu0 %v8456_v45  ;;  %v8527_v45 = vld [vmem:[#allocation8 + $0x90c] ss:$16 sps:$4 sm:$0xff]  }
 0x3ba   : > { %5337 = vmatpush1.bf16.msra.mxu1 %v8459_v46  ;;  %5252 = vmatprep.subr.bf16.mxu0 %v8464_v47  ;;  %v8522_v46 = vld [vmem:[#allocation8 + $0x900] ss:$16 sps:$4 sm:$0xff]   ;;  %v8525_v47 = vld [vmem:[#allocation8 + $0x908] ss:$16 sps:$4 sm:$0xff]  }
 0x3bb   : > { %5338 = vmatprep.subr.bf16.mxu1 %v8467_v51  ;;  %v8528_v51 = vld [vmem:[#allocation8 + $0x920] ss:$16 sps:$4 sm:$0xff]  }
 0x3bd   : > { %5253 = vmatpush1.bf16.msra.mxu0 %v8462_v52  ;;  %v8536_v52 = vld [vmem:[#allocation8 + $0x944] ss:$16 sps:$4 sm:$0xff]  }
 0x3be   : > { %5339 = vmatpush1.bf16.msra.mxu1 %v8465_v54  ;;  %5254 = vmatprep.subr.bf16.mxu0 %v8470_v11  ;;  %v8534_v54 = vld [vmem:[#allocation8 + $0x940] ss:$16 sps:$4 sm:$0xff]   ;;  %v8537_v11 = vld [vmem:[#allocation8 + $0x948] ss:$16 sps:$4 sm:$0xff]  }
 0x3bf   : > { %5340 = vmatprep.subr.bf16.mxu1 %v8473_v58  ;;  %v8540_v58 = vld [vmem:[#allocation8 + $0x960] ss:$16 sps:$4 sm:$0xff]  }
 0x3c1   : > { %5255 = vmatpush1.bf16.msra.mxu0 %v8468_v61  ;;  %v8551_v61 = vld [vmem:[#allocation8 + $0x98c] ss:$16 sps:$4 sm:$0xff]  }
 0x3c2   : > { %5341 = vmatpush1.bf16.msra.mxu1 %v8471_v0  ;;  %6182 = vmatprep.subr.bf16.mxu0 %v8476_v1  ;;  %v8554_v0 = vld [vmem:[#allocation8 + $0x9a4] ss:$16 sps:$4 sm:$0xff]   ;;  %v8557_v1 = vld [vmem:[#allocation8 + $0x9ac] ss:$16 sps:$4 sm:$0xff]  }
 0x3c3   : > { %6268 = vmatprep.subr.bf16.mxu1 %v8479_v4  ;;  %v8555_v4 = vld [vmem:[#allocation8 + $0x9a8] ss:$16 sps:$4 sm:$0xff]  }
 0x3c4   : > { %5257 = vmatmul.mubr.bf16.vlgmr.msra.gmra.mrb[4].mxu0 %v4524_v13 }
 0x3c5   : > { %5343 = vmatmul.mubr.bf16.vlgmr.msra.gmra.mrb[4].mxu1 %v4524_v13  ;;  %6183 = vmatpush1.bf16.msra.mxu0 %v8474_v6  ;;  %v5356_v6 = vld [vmem:[#allocation2 + $0x38] sm:$0xff] }
 0x3c6   : > { %6214 = vmatprep.mubr.bf16.mxu0 %v5513_v16  ;;  %6269 = vmatpush1.bf16.msra.mxu1 %v8477_v9  ;;  %v5357_v9 = vld [vmem:[#allocation2 + $0x40] sm:$0x1]  ;;  %v8558_v13 = vld [vmem:[#allocation8 + $0x9c0] ss:$16 sps:$4 sm:$0xff]  }
 0x3c7   : > { %6300 = vmatprep.mubr.bf16.mxu1 %v5513_v16  ;;  %6184 = vmatprep.subr.bf16.mxu0 %v8482_v14  ;;  %v5529_v14 = vshll.u32 %v5356_v6, 16  ;;  %v8566_v16 = vld [vmem:[#allocation8 + $0x9e4] ss:$16 sps:$4 sm:$0xff]  }
 0x3c8   : > { %6270 = vmatprep.subr.bf16.mxu1 %v8485_v15  ;;  %v8561_v15 = vld [vmem:[#allocation8 + $0x9c8] ss:$16 sps:$4 sm:$0xff]  }
 0x3c9   : > { %6185 = vmatpush1.bf16.msra.mxu0 %v8480_v17  ;;  %v5360_v17 = vld [vmem:[#allocation2 + $0x58] sm:$0x1] }
 0x3ca   : > { %6271 = vmatpush1.bf16.msra.mxu1 %v8483_v18  ;;  %6186 = vmatprep.subr.bf16.mxu0 %v8488_v19  ;;  %v8569_v18 = vld [vmem:[#allocation8 + $0x9ec] ss:$16 sps:$4 sm:$0xff]   ;;  %v5495_v19 = vrot.slane %v5493_v12, 1  ;;  %v8624_v12 = vld [vmem:[#allocation8 + $0xb20] ss:$16 sps:$4 sm:$0xff]  }
 0x3cb   : > { %6272 = vmatprep.subr.bf16.mxu1 %v8491_v20  ;;  %v5498_v20 = vshll.u32 %v5357_v9, 16  ;;  %v8627_v9 = vld [vmem:[#allocation8 + $0xb28] ss:$16 sps:$4 sm:$0xff]  }
 0x3cd   : > { %6187 = vmatpush1.bf16.msra.mxu0 %v8486_v21  ;;  %v8564_v21 = vld [vmem:[#allocation8 + $0x9e0] ss:$16 sps:$4 sm:$0xff]  }
 0x3ce   : > { %6273 = vmatpush1.bf16.msra.mxu1 %v8489_v22  ;;  %6188 = vmatprep.subr.bf16.mxu0 %v8494_v23  ;;  %v5491_v22 = vshrl.u32 %v5353_v2, 16  ;;  %v5531_v23 = vrot.slane %v5529_v14, 1  ;;  %v8620_v2 = vld [vmem:[#allocation8 + $0xb04] ss:$16 sps:$4 sm:$0xff]   ;;  %v8635_v14 = vld [vmem:[#allocation8 + $0xb4c] ss:$16 sps:$4 sm:$0xff]  }
 0x3cf   : > { %6274 = vmatprep.subr.bf16.mxu1 %v8497_v24  ;;  %v5534_v24 = vshll.u32 %v5360_v17, 16  ;;  %v8638_v17 = vld [vmem:[#allocation8 + $0xb64] ss:$16 sps:$4 sm:$0xff]  }
 0x3d1   : > { %6189 = vmatpush1.bf16.msra.mxu0 %v8492_v25  ;;  %v8567_v25 = vld [vmem:[#allocation8 + $0x9e8] ss:$16 sps:$4 sm:$0xff]  }
 0x3d2   : > { %6275 = vmatpush1.bf16.msra.mxu1 %v8495_v28  ;;  %6190 = vmatprep.subr.bf16.mxu0 %v8500_v30  ;;  %v8572_v28 = vld [vmem:[#allocation8 + $0xa04] ss:$16 sps:$4 sm:$0xff]   ;;  %v5496_v30 = vor.u32 %v5495_v19, %v5491_v22  ;;  %v8636_v19 = vld [vmem:[#allocation8 + $0xb60] ss:$16 sps:$4 sm:$0xff]   ;;  %v8647_v22 = vld [vmem:[#allocation8 + $0xb8c] ss:$16 sps:$4 sm:$0xff]  }
 0x3d3   : > { %6276 = vmatprep.subr.bf16.mxu1 %v8503_v31  ;;  %v5500_v31 = vrot.slane %v5498_v20, 1  ;;  %v8639_v20 = vld [vmem:[#allocation8 + $0xb68] ss:$16 sps:$4 sm:$0xff]  }
 0x3d5   : > { %6191 = vmatpush1.bf16.msra.mxu0 %v8498_v32  ;;  %v8575_v32 = vld [vmem:[#allocation8 + $0xa0c] ss:$16 sps:$4 sm:$0xff]  }
 0x3d6   : > { %6277 = vmatpush1.bf16.msra.mxu1 %v8501_v33  ;;  %6192 = vmatprep.subr.bf16.mxu0 %v8506_v10  ;;  %v5527_v33 = vshrl.u32 %v5356_v6, 16  ;;  %v8570_v10 = vld [vmem:[#allocation8 + $0xa00] ss:$16 sps:$4 sm:$0xff]   ;;  %v8626_v6 = vld [vmem:[#allocation8 + $0xb24] ss:$16 sps:$4 sm:$0xff]  }
 0x3d7   : > { %6278 = vmatprep.subr.bf16.mxu1 %v8509_v34 }
 0x3d8   : > { %v5532_v34 = vor.u32 %v5531_v23, %v5527_v33  ;;  %v8642_v23 = vld [vmem:[#allocation8 + $0xb80] ss:$16 sps:$4 sm:$0xff]   ;;  %v8656_v33 = vld [vmem:[#allocation8 + $0xbc4] ss:$16 sps:$4 sm:$0xff]  }
 0x3d9   : > { %6193 = vmatpush1.bf16.msra.mxu0 %v8504_v35  ;;  %v5536_v35 = vrot.slane %v5534_v24, 1  ;;  %v8645_v24 = vld [vmem:[#allocation8 + $0xb88] ss:$16 sps:$4 sm:$0xff]  }
 0x3da   : > { %6279 = vmatpush1.bf16.msra.mxu1 %v8507_v36  ;;  %6194 = vmatprep.subr.bf16.mxu0 %v8512_v38  ;;  %v8573_v36 = vld [vmem:[#allocation8 + $0xa08] ss:$16 sps:$4 sm:$0xff]   ;;  %v5501_v38 = vsel %vm2463_vm1, %v5496_v30, %v5500_v31  ;;  %v8648_v31 = vld [vmem:[#allocation8 + $0xba0] ss:$16 sps:$4 sm:$0xff]  }
 0x3db   : > { %6280 = vmatprep.subr.bf16.mxu1 %v8515_v39  ;;  %v8578_v39 = vld [vmem:[#allocation8 + $0xa24] ss:$16 sps:$4 sm:$0xff]   ;;  %v5355_v30 = vld [vmem:[#allocation2 + $0x30] sm:$0xff] }
 0x3dd   : > { %6195 = vmatpush1.bf16.msra.mxu0 %v8510_v57  ;;  %v8581_v57 = vld [vmem:[#allocation8 + $0xa2c] ss:$16 sps:$4 sm:$0xff]  }
 0x3de   : > { %6281 = vmatpush1.bf16.msra.mxu1 %v8513_v40  ;;  %6196 = vmatprep.subr.bf16.mxu0 %v8518_v41  ;;  %v5537_v40 = vsel %vm2463_vm1, %v5532_v34, %v5536_v35  ;;  %v8576_v41 = vld [vmem:[#allocation8 + $0xa20] ss:$16 sps:$4 sm:$0xff]   ;;  %v5517_v34 = vshll.u32 %v5355_v30, 16  ;;  %v5359_v35 = vld [vmem:[#allocation2 + $0x50] sm:$0x1] }
 0x3df   : > { %6282 = vmatprep.subr.bf16.mxu1 %v8521_v42  ;;  %v8579_v42 = vld [vmem:[#allocation8 + $0xa28] ss:$16 sps:$4 sm:$0xff]  }
 0x3e1   : > { %6197 = vmatpush1.bf16.msra.mxu0 %v8516_v37  ;;  %v8584_v37 = vld [vmem:[#allocation8 + $0xa44] ss:$16 sps:$4 sm:$0xff]  }
 0x3e2   : > { %6283 = vmatpush1.bf16.msra.mxu1 %v8519_v43  ;;  %6198 = vmatprep.subr.bf16.mxu0 %v8524_v44  ;;  %v8587_v43 = vld [vmem:[#allocation8 + $0xa4c] ss:$16 sps:$4 sm:$0xff]   ;;  %v8582_v44 = vld [vmem:[#allocation8 + $0xa40] ss:$16 sps:$4 sm:$0xff]  }
 0x3e3   : > { %6284 = vmatprep.subr.bf16.mxu1 %v8527_v45  ;;  %v8585_v45 = vld [vmem:[#allocation8 + $0xa48] ss:$16 sps:$4 sm:$0xff]  }
 0x3e5   : > { %6199 = vmatpush1.bf16.msra.mxu0 %v8522_v46  ;;  %v8590_v46 = vld [vmem:[#allocation8 + $0xa64] ss:$16 sps:$4 sm:$0xff]  }
 0x3e6   : > { %6285 = vmatpush1.bf16.msra.mxu1 %v8525_v47  ;;  %6200 = vmatprep.subr.bf16.mxu0 %v8530_v48  ;;  %v8593_v47 = vld [vmem:[#allocation8 + $0xa6c] ss:$16 sps:$4 sm:$0xff]   ;;  %v8588_v48 = vld [vmem:[#allocation8 + $0xa60] ss:$16 sps:$4 sm:$0xff]  }
 0x3e7   : > { %6286 = vmatprep.subr.bf16.mxu1 %v8533_v49  ;;  %v8591_v49 = vld [vmem:[#allocation8 + $0xa68] ss:$16 sps:$4 sm:$0xff]  }
 0x3e9   : > { %6201 = vmatpush1.bf16.msra.mxu0 %v8528_v51  ;;  %v8596_v51 = vld [vmem:[#allocation8 + $0xa84] ss:$16 sps:$4 sm:$0xff]  }
 0x3ea   : > { %6287 = vmatpush1.bf16.msra.mxu1 %v8531_v8  ;;  %6202 = vmatprep.subr.bf16.mxu0 %v8536_v52  ;;  %v8599_v8 = vld [vmem:[#allocation8 + $0xa8c] ss:$16 sps:$4 sm:$0xff]   ;;  %v8594_v52 = vld [vmem:[#allocation8 + $0xa80] ss:$16 sps:$4 sm:$0xff]  }
 0x3eb   : > { %6288 = vmatprep.subr.bf16.mxu1 %v8539_v53  ;;  %v8597_v53 = vld [vmem:[#allocation8 + $0xa88] ss:$16 sps:$4 sm:$0xff]  }
 0x3ed   : > { %6203 = vmatpush1.bf16.msra.mxu0 %v8534_v54  ;;  %v8602_v54 = vld [vmem:[#allocation8 + $0xaa4] ss:$16 sps:$4 sm:$0xff]  }
 0x3ee   : > { %6289 = vmatpush1.bf16.msra.mxu1 %v8537_v11  ;;  %6204 = vmatprep.subr.bf16.mxu0 %v8542_v55  ;;  %v8605_v11 = vld [vmem:[#allocation8 + $0xaac] ss:$16 sps:$4 sm:$0xff]   ;;  %v8600_v55 = vld [vmem:[#allocation8 + $0xaa0] ss:$16 sps:$4 sm:$0xff]  }
 0x3ef   : > { %6290 = vmatprep.subr.bf16.mxu1 %v8545_v56  ;;  %v8603_v56 = vld [vmem:[#allocation8 + $0xaa8] ss:$16 sps:$4 sm:$0xff]  }
 0x3f1   : > { %6205 = vmatpush1.bf16.msra.mxu0 %v8540_v58  ;;  %v8608_v58 = vld [vmem:[#allocation8 + $0xac4] ss:$16 sps:$4 sm:$0xff]  }
 0x3f2   : > { %6291 = vmatpush1.bf16.msra.mxu1 %v8543_v59  ;;  %6206 = vmatprep.subr.bf16.mxu0 %v8548_v60  ;;  %v8611_v59 = vld [vmem:[#allocation8 + $0xacc] ss:$16 sps:$4 sm:$0xff]   ;;  %v8606_v60 = vld [vmem:[#allocation8 + $0xac0] ss:$16 sps:$4 sm:$0xff]  }
 0x3f3   : > { %6292 = vmatprep.subr.bf16.mxu1 %v8551_v61  ;;  %v8609_v61 = vld [vmem:[#allocation8 + $0xac8] ss:$16 sps:$4 sm:$0xff]  }
 0x3f5   : > { %6207 = vmatpush1.bf16.msra.mxu0 %v8546_v62  ;;  %v8614_v62 = vld [vmem:[#allocation8 + $0xae4] ss:$16 sps:$4 sm:$0xff]  }
 0x3f6   : > { %6293 = vmatpush1.bf16.msra.mxu1 %v8549_v63  ;;  %6208 = vmatprep.subr.bf16.mxu0 %v8554_v0  ;;  %v8617_v63 = vld [vmem:[#allocation8 + $0xaec] ss:$16 sps:$4 sm:$0xff]   ;;  %v8612_v0 = vld [vmem:[#allocation8 + $0xae0] ss:$16 sps:$4 sm:$0xff]  }
 0x3f7   : > { %6294 = vmatprep.subr.bf16.mxu1 %v8557_v1  ;;  %v8615_v1 = vld [vmem:[#allocation8 + $0xae8] ss:$16 sps:$4 sm:$0xff]  }
 0x3f9   : > { %6209 = vmatpush1.bf16.msra.mxu0 %v8552_v3  ;;  %v8623_v3 = vld [vmem:[#allocation8 + $0xb0c] ss:$16 sps:$4 sm:$0xff]  }
 0x3fa   : > { %6295 = vmatpush1.bf16.msra.mxu1 %v8555_v4  ;;  %6210 = vmatprep.subr.bf16.mxu0 %v8560_v5  ;;  %v8618_v4 = vld [vmem:[#allocation8 + $0xb00] ss:$16 sps:$4 sm:$0xff]   ;;  %v8621_v5 = vld [vmem:[#allocation8 + $0xb08] ss:$16 sps:$4 sm:$0xff]  }
 0x3fb   : > { %6296 = vmatprep.subr.bf16.mxu1 %v8563_v7  ;;  %v8629_v7 = vld [vmem:[#allocation8 + $0xb2c] ss:$16 sps:$4 sm:$0xff]  }
 0x3fd   : > { %6211 = vmatpush1.bf16.msra.mxu0 %v8558_v13  ;;  %v8632_v13 = vld [vmem:[#allocation8 + $0xb44] ss:$16 sps:$4 sm:$0xff]  }
 0x3fe   : > { %6297 = vmatpush1.bf16.msra.mxu1 %v8561_v15  ;;  %6212 = vmatprep.subr.bf16.mxu0 %v8566_v16  ;;  %v8630_v15 = vld [vmem:[#allocation8 + $0xb40] ss:$16 sps:$4 sm:$0xff]   ;;  %v8633_v16 = vld [vmem:[#allocation8 + $0xb48] ss:$16 sps:$4 sm:$0xff]  }
 0x3ff   : > { %6298 = vmatprep.subr.bf16.mxu1 %v8569_v18  ;;  %v8641_v18 = vld [vmem:[#allocation8 + $0xb6c] ss:$16 sps:$4 sm:$0xff]  }
 0x401   : > { %6213 = vmatpush1.bf16.msra.mxu0 %v8564_v21  ;;  %v8644_v21 = vld [vmem:[#allocation8 + $0xb84] ss:$16 sps:$4 sm:$0xff]  }
 0x402   : > { %6299 = vmatpush1.bf16.msra.mxu1 %v8567_v25  ;;  %6225 = vmatprep.subr.bf16.mxu0 %v8572_v28  ;;  %v8650_v25 = vld [vmem:[#allocation8 + $0xba4] ss:$16 sps:$4 sm:$0xff]   ;;  %v8653_v28 = vld [vmem:[#allocation8 + $0xbac] ss:$16 sps:$4 sm:$0xff]  }
 0x403   : > { %6311 = vmatprep.subr.bf16.mxu1 %v8575_v32  ;;  %v8651_v32 = vld [vmem:[#allocation8 + $0xba8] ss:$16 sps:$4 sm:$0xff]  }
 0x404   : > { %6215 = vmatmul.mubr.bf16.vlgmr.msra.gmra.mrb[4].mxu0 %v5501_v38 }
 0x405   : > { %6301 = vmatmul.mubr.bf16.vlgmr.msra.gmra.mrb[4].mxu1 %v5501_v38  ;;  %6226 = vmatpush1.bf16.msra.mxu0 %v8570_v10  ;;  %v8659_v10 = vld [vmem:[#allocation8 + $0xbcc] ss:$16 sps:$4 sm:$0xff]   ;;  %v8657_v38 = vld [vmem:[#allocation8 + $0xbc8] ss:$16 sps:$4 sm:$0xff]  }
 0x406   : > { %6257 = vmatprep.mubr.bf16.mxu0 %v5537_v40  ;;  %6312 = vmatpush1.bf16.msra.mxu1 %v8573_v36  ;;  %v8654_v36 = vld [vmem:[#allocation8 + $0xbc0] ss:$16 sps:$4 sm:$0xff]  }
 0x407   : > { %6343 = vmatprep.mubr.bf16.mxu1 %v5537_v40  ;;  %6227 = vmatprep.subr.bf16.mxu0 %v8578_v39  ;;  %v8662_v39 = vld [vmem:[#allocation8 + $0xbe4] ss:$16 sps:$4 sm:$0xff]   ;;  %v5519_v40 = vrot.slane %v5517_v34, 1 }
 0x408   : > { %6313 = vmatprep.subr.bf16.mxu1 %v8581_v57  ;;  %v8665_v57 = vld [vmem:[#allocation8 + $0xbec] ss:$16 sps:$4 sm:$0xff]  }
 0x409   : > { %6228 = vmatpush1.bf16.msra.mxu0 %v8576_v41  ;;  %v5522_v41 = vshll.u32 %v5359_v35, 16 }
 0x40a   : > { %6314 = vmatpush1.bf16.msra.mxu1 %v8579_v42  ;;  %6229 = vmatprep.subr.bf16.mxu0 %v8584_v37  ;;  %v8660_v42 = vld [vmem:[#allocation8 + $0xbe0] ss:$16 sps:$4 sm:$0xff]   ;;  %v5515_v37 = vshrl.u32 %v5355_v30, 16 }
 0x40b   : > { %6315 = vmatprep.subr.bf16.mxu1 %v8587_v43  ;;  %v8663_v43 = vld [vmem:[#allocation8 + $0xbe8] ss:$16 sps:$4 sm:$0xff]  }
 0x40d   : > { %6230 = vmatpush1.bf16.msra.mxu0 %v8582_v44  ;;  %v5520_v44 = vor.u32 %v5519_v40, %v5515_v37 }
 0x40e   : > { %6316 = vmatpush1.bf16.msra.mxu1 %v8585_v45  ;;  %6231 = vmatprep.subr.bf16.mxu0 %v8590_v46  ;;  %v5524_v45 = vrot.slane %v5522_v41, 1 }
 0x40f   : > { %6317 = vmatprep.subr.bf16.mxu1 %v8593_v47  ;;  %v6362_v47 = vld [vmem:[#allocation10] sm:$0xf] }
 0x410   : > { %v5525_v46 = vsel %vm2463_vm1, %v5520_v44, %v5524_v45 }
 0x411   : > { %6232 = vmatpush1.bf16.msra.mxu0 %v8588_v48  ;;  %v6392_v48 = vld [vmem:[#allocation11] sm:$0xf] }
 0x412   : > { %6318 = vmatpush1.bf16.msra.mxu1 %v8591_v49  ;;  %6233 = vmatprep.subr.bf16.mxu0 %v8596_v51  ;;  %v6367_v49 = vrot.slane %v6362_v47, %v9141_v26  ;;  %v6375_v51 = vrot.slane %v6362_v47, %v9143_v27 }
 0x413   : > { %6319 = vmatprep.subr.bf16.mxu1 %v8599_v8  ;;  %v6371_v8 = vrot.slane %v6362_v47, %v9145_v50 }
 0x415   : > { %6234 = vmatpush1.bf16.msra.mxu0 %v8594_v52  ;;  %v6397_v52 = vrot.slane %v6392_v48, %v9141_v26 }
 0x416   : > { %6320 = vmatpush1.bf16.msra.mxu1 %v8597_v53  ;;  %6235 = vmatprep.subr.bf16.mxu0 %v8602_v54  ;;  %v6379_v53 = vrot.slane %v6362_v47, %v9147_v29 }
 0x417   : > { %6321 = vmatprep.subr.bf16.mxu1 %v8605_v11  ;;  %v6405_v11 = vrot.slane %v6392_v48, %v9143_v27 }
 0x419   : > { %6236 = vmatpush1.bf16.msra.mxu0 %v8600_v55  ;;  %v6401_v55 = vrot.slane %v6392_v48, %v9145_v50 }
 0x41a   : > { %6322 = vmatpush1.bf16.msra.mxu1 %v8603_v56  ;;  %6237 = vmatprep.subr.bf16.mxu0 %v8608_v58 }
 0x41b   : > { %6323 = vmatprep.subr.bf16.mxu1 %v8611_v59 }
 0x41d   : > { %6238 = vmatpush1.bf16.msra.mxu0 %v8606_v60  ;;  %v6409_v60 = vrot.slane %v6392_v48, %v9147_v29  ;;  %v6426_v29 = vld [vmem:[%s9097_s11 + $0x20] sm:$0xff] }
 0x41e   : > { %6324 = vmatpush1.bf16.msra.mxu1 %v8609_v61  ;;  %6239 = vmatprep.subr.bf16.mxu0 %v8614_v62  ;;  %v6422_v61 = vld [vmem:[%s9097_s11] sm:$0xff] }
 0x41f   : > { %6325 = vmatprep.subr.bf16.mxu1 %v8617_v63 }
 0x421   : > { %6240 = vmatpush1.bf16.msra.mxu0 %v8612_v0 }
 0x422   : > { %6326 = vmatpush1.bf16.msra.mxu1 %v8615_v1  ;;  %6241 = vmatprep.subr.bf16.mxu0 %v8620_v2  ;;  %v6424_v2 = vld [vmem:[%s9097_s11 + $0x10] sm:$0xff] }
 0x423   : > { %6327 = vmatprep.subr.bf16.mxu1 %v8623_v3  ;;  %v6423_v3 = vld [vmem:[%s9097_s11 + $0x8] sm:$0xff] }
 0x425   : > { %6242 = vmatpush1.bf16.msra.mxu0 %v8618_v4 }
 0x426   : > { %6328 = vmatpush1.bf16.msra.mxu1 %v8621_v5  ;;  %6243 = vmatprep.subr.bf16.mxu0 %v8626_v6 }
 0x427   : > { %6329 = vmatprep.subr.bf16.mxu1 %v8629_v7 }
 0x429   : > { %6244 = vmatpush1.bf16.msra.mxu0 %v8624_v12  ;;  %v6425_v12 = vld [vmem:[%s9097_s11 + $0x18] sm:$0xff] }
 0x42a   : > { %6330 = vmatpush1.bf16.msra.mxu1 %v8627_v9  ;;  %6245 = vmatprep.subr.bf16.mxu0 %v8632_v13 }
 0x42b   : > { %6331 = vmatprep.subr.bf16.mxu1 %v8635_v14 }
 0x42d   : > { %6246 = vmatpush1.bf16.msra.mxu0 %v8630_v15 }
 0x42e   : > { %6332 = vmatpush1.bf16.msra.mxu1 %v8633_v16  ;;  %6247 = vmatprep.subr.bf16.mxu0 %v8638_v17 }
 0x42f   : > { %6333 = vmatprep.subr.bf16.mxu1 %v8641_v18  ;;  %v6428_v18 = vld [vmem:[%s9097_s11 + $0x30] sm:$0xff] }
 0x431   : > { %6248 = vmatpush1.bf16.msra.mxu0 %v8636_v19  ;;  %v6427_v19 = vld [vmem:[%s9097_s11 + $0x28] sm:$0xff] }
 0x432   : > { %6334 = vmatpush1.bf16.msra.mxu1 %v8639_v20  ;;  %6249 = vmatprep.subr.bf16.mxu0 %v8644_v21 }
 0x433   : > { %6335 = vmatprep.subr.bf16.mxu1 %v8647_v22 }
 0x435   : > { %6250 = vmatpush1.bf16.msra.mxu0 %v8642_v23 }
 0x436   : > { %6336 = vmatpush1.bf16.msra.mxu1 %v8645_v24  ;;  %6251 = vmatprep.subr.bf16.mxu0 %v8650_v25  ;;  %v6429_v25 = vld [vmem:[%s9097_s11 + $0x38] sm:$0xff] }
 0x437   : > { %6337 = vmatprep.subr.bf16.mxu1 %v8653_v28 }
 0x439   : > { %6252 = vmatpush1.bf16.msra.mxu0 %v8648_v31 }
 0x43a   : > { %6338 = vmatpush1.bf16.msra.mxu1 %v8651_v32  ;;  %6253 = vmatprep.subr.bf16.mxu0 %v8656_v33 }
 0x43b   : > { %6339 = vmatprep.subr.bf16.mxu1 %v8659_v10 }
 0x43d   : > { %6254 = vmatpush1.bf16.msra.mxu0 %v8654_v36 }
 0x43e   : > { %6340 = vmatpush1.bf16.msra.mxu1 %v8657_v38  ;;  %6255 = vmatprep.subr.bf16.mxu0 %v8662_v39 }
 0x43f   : > { %6341 = vmatprep.subr.bf16.mxu1 %v8665_v57 }
 0x441   : > { %6256 = vmatpush1.bf16.msra.mxu0 %v8660_v42 }
 0x442   : > { %6342 = vmatpush1.bf16.msra.mxu1 %v8663_v43 }
 0x444   : > { %6258 = vmatmul.mubr.bf16.vlgmr.msra.gmra.mrb[4].mxu0 %v5525_v46 }
 0x445   : > { %6344 = vmatmul.mubr.bf16.vlgmr.msra.gmra.mrb[4].mxu1 %v5525_v46 }
 0x517   : > { %v6259_v54 = vpop.f32.mrb[4].mxu0 }
 0x518   : > { %v6384_v56 = vmul.f32 %v6367_v49, %v6259_v54  ;;  %v6345_v58 = vpop.f32.mrb[4].mxu1  ;;  %v6261_v59 = vpop.f32.mrb[5].mxu0 }
 0x519   : > { %v6386_v62 = vmul.f32 %v6375_v51, %v6345_v58  ;;  %v6385_v63 = vmul.f32 %v6371_v8, %v6261_v59  ;;  %v6347_v0 = vpop.f32.mrb[5].mxu1  ;;  %v6263_v26 = vpop.f32.mrb[6].mxu0 }
 0x51a   : > { %v6414_v1 = vadd.f32 %v6397_v52, %v6384_v56  ;;  %v6387_v27 = vmul.f32 %v6379_v53, %v6347_v0  ;;  %v6388_v4 = vmul.f32 %v6367_v49, %v6263_v26  ;;  %v6349_v50 = vpop.f32.mrb[6].mxu1  ;;  %v6265_v5 = vpop.f32.mrb[7].mxu0 }
 0x51b   : > { %v6416_v6 = vadd.f32 %v6405_v11, %v6386_v62  ;;  %v6415_v7 = vadd.f32 %v6401_v55, %v6385_v63  ;;  %v6390_v9 = vmul.f32 %v6375_v51, %v6349_v50  ;;  %v6389_v13 = vmul.f32 %v6371_v8, %v6265_v5  ;;  %v6351_v14 = vpop.f32.mrb[7].mxu1 }
 0x51c   : > { %v6430_v15 = vadd.f32 %v6422_v61, %v6414_v1  ;;  %v6417_v16 = vadd.f32 %v6409_v60, %v6387_v27  ;;  %v6418_v17 = vadd.f32 %v6397_v52, %v6388_v4  ;;  %v6391_v20 = vmul.f32 %v6379_v53, %v6351_v14 }
 0x51d   : > { %v6432_v21 = vadd.f32 %v6424_v2, %v6416_v6  ;;  %v6431_v22 = vadd.f32 %v6423_v3, %v6415_v7  ;;  %v6420_v23 = vadd.f32 %v6405_v11, %v6390_v9  ;;  %v6419_v24 = vadd.f32 %v6401_v55, %v6389_v13 }
 0x51e   : > { %v6438_v28 = vmax.f32 %v6430_v15, 0.0  ;;  %v6433_v30 = vadd.f32 %v6425_v12, %v6417_v16  ;;  %v6434_v31 = vadd.f32 %v6426_v29, %v6418_v17  ;;  %v6421_v32 = vadd.f32 %v6409_v60, %v6391_v20 }
 0x51f   : > { %v6440_v33 = vmax.f32 %v6432_v21, 0.0  ;;  %v6439_v10 = vmax.f32 %v6431_v22, 0.0  ;;  %v6436_v34 = vadd.f32 %v6428_v18, %v6420_v23  ;;  %v6435_v35 = vadd.f32 %v6427_v19, %v6419_v24 }
 0x520   : > { %6446 = vst [vmem:[%s358_s19] sm:$0xff] %v6438_v28  ;;  %v6441_v36 = vmax.f32 %v6433_v30, 0.0  ;;  %v6442_v38 = vmax.f32 %v6434_v31, 0.0  ;;  %v6437_v39 = vadd.f32 %v6429_v25, %v6421_v32 }
 0x521   : > { %6448 = vst [vmem:[%s358_s19 + $0x10] sm:$0xff] %v6440_v33  ;;  %6447 = vst [vmem:[%s358_s19 + $0x8] sm:$0xff] %v6439_v10  ;;  %v6444_v57 = vmax.f32 %v6436_v34, 0.0  ;;  %v6443_v40 = vmax.f32 %v6435_v35, 0.0 }
 0x522   : > { %6449 = vst [vmem:[%s358_s19 + $0x18] sm:$0xff] %v6441_v36  ;;  %6450 = vst [vmem:[%s358_s19 + $0x20] sm:$0xff] %v6442_v38  ;;  %v6445_v41 = vmax.f32 %v6437_v39, 0.0 }
 0x523   : > { %6452 = vst [vmem:[%s358_s19 + $0x30] sm:$0xff] %v6444_v57  ;;  %6451 = vst [vmem:[%s358_s19 + $0x28] sm:$0xff] %v6443_v40 }
 0x524   : > { %6453 = vst [vmem:[%s358_s19 + $0x38] sm:$0xff] %v6445_v41 }
 0x525 PF: > { %s21_s24 = sadd.s32 1, %s8857_s24  }
 0x526   : > { %p18_p9 = scmp.ge.s32.totalorder %s21_s24, 4  }
 0x528   :  { %20 = sbr.rel (!%p18_p9) target bundleno = 4 (0x4), region = 107 }
 0x52f   :  { %6475 = vsyncpa [#allocation4], 1 }
 0x530   :  { %6477 = vsyncpa [#allocation4 + $0x1], 1 }
 0x531   :  { %6478 = vsyncpa [#allocation6], 1 }
 0x532   :  { %6479 = vsyncpa [#allocation9], 1 }
 0x533   :  { %6480 = vsyncpa [#allocation12], 1 }

</bundles_post_ra>
